<compile_context>
chip_gen: v5e
topology: v5e:2x2
jax: 0.10.0
libtpu: 0.0.40
codegen_flags: <defaults>
</compile_context>

<pallas_src>
import functools

import jax
import jax.numpy as jnp
from jax.experimental import pallas as pl
from jax.experimental.pallas import tpu as pltpu

# f32 keeps the dots executable on every backend (the sandbox's interpret/CPU
# path rejects bf16 x bf16 = f32).  On real v6e/v7x hardware flip these to
# jnp.bfloat16 for native-rate MXU and halved HBM traffic.
COMPUTE_DTYPE = jnp.float32
ACT_DTYPE = jnp.float32
NEG_SLOPE = 0.01                # nn.LeakyReLU default in the module
BLOCK_M = 512                   # M tile for the pipelined matmul paths
VMEM_LIMIT = 32 * 1024 * 1024   # safe on v5e / v6e / v7x (v7x physical = 64 MiB)


def _epilogue(y, act):
    """Fused activation epilogue on the f32 accumulator."""
    if act == "leaky_relu":
        return jnp.where(y > 0, y, NEG_SLOPE * y)
    if act == "sigmoid":
        return 1.0 / (1.0 + jnp.exp(-y))      # exact, matches torch numerics
    if act == "tanh":
        return jnp.tanh(y)
    return y


def _tile_rows(m, block):
    """Tile the long (row) axis: returns (tile, padded_m, grid)."""
    if m > block:
        m_pad = pl.cdiv(m, block) * block
        return block, m_pad, (m_pad // block,)
    return m, m, (1,)


# ----------------------------------------------------------------------------
# Kernel 1: out = act(X @ W + b), M-tiled, weight resident in VMEM.
# ----------------------------------------------------------------------------
def _mm_bias_act_kernel(x_ref, w_ref, b_ref, o_ref, *, act):
    y = jnp.dot(x_ref[...], w_ref[...], preferred_element_type=jnp.float32)
    y = y + b_ref[...]                          # (1, N) broadcasts over rows
    o_ref[...] = _epilogue(y, act).astype(o_ref.dtype)


def matmul_bias_act(x, w, b, act="none", out_dtype=ACT_DTYPE, block_m=BLOCK_M):
    """x: [M, K], w: [K, N], b: [N] -> act(x @ w + b) as [M, N]."""
    M, K = x.shape
    K2, N = w.shape
    assert K == K2
    x = x.astype(COMPUTE_DTYPE)
    w = w.astype(COMPUTE_DTYPE)
    b2 = b.astype(jnp.float32).reshape(1, N)

    tm, m_pad, grid = _tile_rows(M, block_m)
    if m_pad != M:
        x = jnp.pad(x, ((0, m_pad - M), (0, 0)))

    out = pl.pallas_call(
        functools.partial(_mm_bias_act_kernel, act=act),
        out_shape=jax.ShapeDtypeStruct((m_pad, N), out_dtype),
        grid=grid,
        in_specs=[
            pl.BlockSpec((tm, K), lambda i: (i, 0)),
            pl.BlockSpec((K, N), lambda i: (0, 0)),    # resident across M tiles
            pl.BlockSpec((1, N), lambda i: (0, 0)),
        ],
        out_specs=pl.BlockSpec((tm, N), lambda i: (i, 0)),
        compiler_params=pltpu.CompilerParams(
            dimension_semantics=("parallel",),
            vmem_limit_bytes=VMEM_LIMIT),
    )(x, w, b2)
    return out[:M] if m_pad != M else out


# ----------------------------------------------------------------------------
# Kernel 2 (lane-dense variant for very narrow N):
#   out[N, M] = act(W[N, K] @ X[M, K]^T + b[N, 1])
# The im2col block is consumed untransposed; the K-contraction transpose
# happens in VMEM (lax.dot_general), not as an XLA HBM transpose.
# ----------------------------------------------------------------------------
def _mm_nt_bias_act_kernel(w_ref, x_ref, b_ref, o_ref, *, act):
    y = jax.lax.dot_general(
        w_ref[...], x_ref[...],
        dimension_numbers=(((1,), (1,)), ((), ())),
        preferred_element_type=jnp.float32)
    y = y + b_ref[...]                          # (N, 1) broadcasts over lanes
    o_ref[...] = _epilogue(y, act).astype(o_ref.dtype)


def matmul_nt_bias_act(x, w_nk, b, act="none", out_dtype=ACT_DTYPE,
                       block_m=BLOCK_M):
    """x: [M, K], w_nk: [N, K], b: [N] -> act(x @ w_nk^T + b)^T as [N, M].
    M sits on the 128-lane axis so the store is lane-dense even when N is tiny
    (e.g. the 1-channel deconv)."""
    M, K = x.shape
    N, K2 = w_nk.shape
    assert K == K2
    x = x.astype(COMPUTE_DTYPE)
    w_nk = w_nk.astype(COMPUTE_DTYPE)
    b2 = b.astype(jnp.float32).reshape(N, 1)

    tm, m_pad, grid = _tile_rows(M, block_m)
    if m_pad != M:
        x = jnp.pad(x, ((0, m_pad - M), (0, 0)))

    out = pl.pallas_call(
        functools.partial(_mm_nt_bias_act_kernel, act=act),
        out_shape=jax.ShapeDtypeStruct((N, m_pad), out_dtype),
        grid=grid,
        in_specs=[
            pl.BlockSpec((N, K), lambda i: (0, 0)),     # resident
            pl.BlockSpec((tm, K), lambda i: (i, 0)),
            pl.BlockSpec((N, 1), lambda i: (0, 0)),
        ],
        out_specs=pl.BlockSpec((N, tm), lambda i: (0, i)),
        compiler_params=pltpu.CompilerParams(
            dimension_semantics=("parallel",),
            vmem_limit_bytes=VMEM_LIMIT),
    )(w_nk, x, b2)
    return out[:, :M] if m_pad != M else out


# ----------------------------------------------------------------------------
# Kernel 3: fused bottleneck  z = h @ We + be ;  d = leaky_relu(z @ Wd + bd)
# Tiled over the batch axis; both tiny weights stay resident in VMEM.
# ----------------------------------------------------------------------------
def _bottleneck_kernel(h_ref, we_ref, be_ref, wd_ref, bd_ref, z_ref, d_ref):
    z = jnp.dot(h_ref[...], we_ref[...], preferred_element_type=jnp.float32)
    z = z + be_ref[...]
    z_ref[...] = z.astype(z_ref.dtype)
    d = jnp.dot(z, wd_ref[...], preferred_element_type=jnp.float32)
    d = d + bd_ref[...]
    d_ref[...] = jnp.where(d > 0, d, NEG_SLOPE * d).astype(d_ref.dtype)


def bottleneck(h, we, be, wd, bd, block_b=BLOCK_M):
    """Both bottleneck linear layers in a single pallas_call."""
    B, F = h.shape
    C = we.shape[1]
    F2 = wd.shape[1]
    tb, b_pad, grid = _tile_rows(B, block_b)
    h = h.astype(COMPUTE_DTYPE)
    if b_pad != B:
        h = jnp.pad(h, ((0, b_pad - B), (0, 0)))

    z, d = pl.pallas_call(
        _bottleneck_kernel,
        out_shape=(jax.ShapeDtypeStruct((b_pad, C), jnp.float32),
                   jax.ShapeDtypeStruct((b_pad, F2), ACT_DTYPE)),
        grid=grid,
        in_specs=[
            pl.BlockSpec((tb, F), lambda i: (i, 0)),
            pl.BlockSpec((F, C), lambda i: (0, 0)),     # resident
            pl.BlockSpec((1, C), lambda i: (0, 0)),
            pl.BlockSpec((C, F2), lambda i: (0, 0)),    # resident
            pl.BlockSpec((1, F2), lambda i: (0, 0)),
        ],
        out_specs=(pl.BlockSpec((tb, C), lambda i: (i, 0)),
                   pl.BlockSpec((tb, F2), lambda i: (i, 0))),
        compiler_params=pltpu.CompilerParams(
            dimension_semantics=("parallel",),
            vmem_limit_bytes=VMEM_LIMIT),
    )(h, we.astype(COMPUTE_DTYPE), be.astype(jnp.float32).reshape(1, C),
      wd.astype(COMPUTE_DTYPE), bd.astype(jnp.float32).reshape(1, F2))
    if b_pad != B:
        z, d = z[:B], d[:B]
    return z, d


# ----------------------------------------------------------------------------
# Layout glue (pure XLA on KB-sized tensors): channels-last im2col.
# ----------------------------------------------------------------------------
def _im2col_nhwc(x, kh, kw, stride, pad_hw):
    """x: [B,H,W,C] -> (cols [B*Ho*Wo, kh*kw*C], Ho, Wo); K ordered (ki, kj, c)."""
    B, H, W, C = x.shape
    (p_t, p_b), (p_l, p_r) = pad_hw
    xp = jnp.pad(x, ((0, 0), (p_t, p_b), (p_l, p_r), (0, 0)))
    Ho = (H + p_t + p_b - kh) // stride + 1
    Wo = (W + p_l + p_r - kw) // stride + 1
    taps = []
    for i in range(kh):
        for j in range(kw):
            taps.append(xp[:, i::stride, j::stride, :][:, :Ho, :Wo, :])
    cols = jnp.stack(taps, axis=3)                    # [B, Ho, Wo, kh*kw, C]
    return cols.reshape(B * Ho * Wo, kh * kw * C), Ho, Wo


def conv2d_nhwc(x, wmat, bias, k, stride, pad, act):
    """x: [B,H,W,C] NHWC, wmat: prepacked [k*k*C, O], bias: [O]."""
    B = x.shape[0]
    O = wmat.shape[1]
    cols, Ho, Wo = _im2col_nhwc(x, k, k, stride, ((pad, pad), (pad, pad)))
    y = matmul_bias_act(cols, wmat, bias, act)        # [B*Ho*Wo, O]
    return y.reshape(B, Ho, Wo, O)                    # no activation transpose


def _phase_geometry(k, pad):
    """Stride-2 ConvTranspose along one dim, per output phase a in {0,1}:
       out[2q+a] = sum_u x[q + u + d_a] * w[k-1 - r_a - 2u],  u = 0..t_a-1."""
    geoms = []
    for a in range(2):
        r = ((k - 1 - pad) - a) % 2
        t = (k - 1 - r) // 2 + 1
        d = (a + r - (k - 1 - pad)) // 2
        geoms.append((r, t, d))
    win = max(t for _, t, _ in geoms)
    dmin = min(d for _, _, d in geoms)
    return geoms, win, dmin


def conv_transpose2d_nhwc(x, packed, k, pad, out_pad, act,
                          transposed_out=False):
    """PyTorch ConvTranspose2d (stride=2) via sub-pixel phase decomposition.
    x: [B,H,W,Cin] NHWC; packed holds the prepacked phase-stacked weight
    ([win*win*Cin, 4*Cout]) and tiled bias.  All 4 output phases come from one
    matmul of the un-dilated input's im2col; no zero-dilation, no wasted MACs."""
    B, H, W, Cin = x.shape
    Cout = packed["wmat"].shape[1] // 4
    _, win, dmin = _phase_geometry(k, pad)            # static Python ints
    Ho = (H - 1) * 2 - 2 * pad + k + out_pad
    Wo = (W - 1) * 2 - 2 * pad + k + out_pad
    Qh, Qw = (Ho + 1) // 2, (Wo + 1) // 2             # uniform per-phase grid
    p_lo = -dmin
    p_hi_h = (Qh + win - 1) - p_lo - H
    p_hi_w = (Qw + win - 1) - p_lo - W
    assert p_lo >= 0 and p_hi_h >= 0 and p_hi_w >= 0

    cols, qh, qw = _im2col_nhwc(x, win, win, 1,
                                ((p_lo, p_hi_h), (p_lo, p_hi_w)))
    assert (qh, qw) == (Qh, Qw)

    if transposed_out:                    # lane-dense store when Cout is tiny
        y = matmul_nt_bias_act(cols, packed["wmat_nk"], packed["bias4"], act)
        y = y.reshape(2, 2, Cout, B, Qh, Qw)               # [4*Cout, B*Qh*Qw]
        y = jnp.transpose(y, (3, 4, 0, 5, 1, 2))           # [B,Qh,2,Qw,2,Cout]
    else:
        y = matmul_bias_act(cols, packed["wmat"], packed["bias4"], act)
        y = y.reshape(B, Qh, Qw, 2, 2, Cout)               # [B*Qh*Qw, 4*Cout]
        y = jnp.transpose(y, (0, 1, 3, 2, 4, 5))           # [B,Qh,2,Qw,2,Cout]
    y = y.reshape(B, 2 * Qh, 2 * Qw, Cout)                 # interleave phases
    return y[:, :Ho, :Wo, :]


# ----------------------------------------------------------------------------
# Deterministic parameter init (xavier_uniform with gain=sqrt(2), bias=0),
# all kept in PyTorch layouts.
# ----------------------------------------------------------------------------
def _xavier(key, shape, fan_in, fan_out, gain):
    bound = gain * (6.0 / (fan_in + fan_out)) ** 0.5
    return jax.random.uniform(key, shape, jnp.float32, -bound, bound)


def init_params(key, input_shape=(28, 28, 1), num_clusters=10,
                filters=(32, 64, 128)):
    gain = 2.0 ** 0.5                               # nn.init.calculate_gain('relu')
    lin = ((input_shape[0] // 2 // 2 - 1) // 2) * \
          ((input_shape[1] // 2 // 2 - 1) // 2) * filters[2]
    ks = jax.random.split(key, 9)
    p = {}
    p["conv1_w"] = _xavier(ks[0], (filters[0], input_shape[2], 5, 5),
                           input_shape[2] * 25, filters[0] * 25, gain)
    p["conv1_b"] = jnp.zeros((filters[0],), jnp.float32)
    p["conv2_w"] = _xavier(ks[1], (filters[1], filters[0], 5, 5),
                           filters[0] * 25, filters[1] * 25, gain)
    p["conv2_b"] = jnp.zeros((filters[1],), jnp.float32)
    p["conv3_w"] = _xavier(ks[2], (filters[2], filters[1], 3, 3),
                           filters[1] * 9, filters[2] * 9, gain)
    p["conv3_b"] = jnp.zeros((filters[2],), jnp.float32)
    p["emb_w"] = _xavier(ks[3], (num_clusters, lin), lin, num_clusters, gain)
    p["emb_b"] = jnp.zeros((num_clusters,), jnp.float32)
    p["demb_w"] = _xavier(ks[4], (lin, num_clusters), num_clusters, lin, gain)
    p["demb_b"] = jnp.zeros((lin,), jnp.float32)
    p["deconv3_w"] = _xavier(ks[5], (filters[2], filters[1], 3, 3),
                             filters[1] * 9, filters[2] * 9, gain)
    p["deconv3_b"] = jnp.zeros((filters[1],), jnp.float32)
    p["deconv2_w"] = _xavier(ks[6], (filters[1], filters[0], 5, 5),
                             filters[0] * 25, filters[1] * 25, gain)
    p["deconv2_b"] = jnp.zeros((filters[0],), jnp.float32)
    p["deconv1_w"] = _xavier(ks[7], (filters[0], input_shape[2], 5, 5),
                             input_shape[2] * 25, filters[0] * 25, gain)
    p["deconv1_b"] = jnp.zeros((input_shape[2],), jnp.float32)
    return p


# ----------------------------------------------------------------------------
# One-time weight prepacking (OUTSIDE jit): conv weight matrices, NHWC-ordered
# linear weights, phase-stacked deconv weights.  Runs once per parameter
# update, not per forward.
# ----------------------------------------------------------------------------
def _conv_wmat(w_torch):
    """[O, C, kh, kw] (PyTorch) -> [kh*kw*C, O] im2col weight matrix."""
    O, C, kh, kw = w_torch.shape
    return jnp.transpose(w_torch, (2, 3, 1, 0)).reshape(kh * kw * C, O)


def _prepack_deconv(w_torch, bias, k, pad):
    """[Cin, Cout, k, k] -> phase-stacked [win*win*Cin, 4*Cout] (+ transposed)."""
    Cin, Cout = w_torch.shape[0], w_torch.shape[1]
    geoms, win, dmin = _phase_geometry(k, pad)
    wall = jnp.zeros((win, win, Cin, 2, 2, Cout), jnp.float32)
    for a in range(2):
        r_a, t_a, d_a = geoms[a]
        for bp in range(2):
            r_b, t_b, d_b = geoms[bp]
            for ui in range(t_a):
                vi, ki = ui + d_a - dmin, k - 1 - r_a - 2 * ui
                for uj in range(t_b):
                    vj, kj = uj + d_b - dmin, k - 1 - r_b - 2 * uj
                    wall = wall.at[vi, vj, :, a, bp, :].set(
                        w_torch[:, :, ki, kj].astype(jnp.float32))
    wmat = wall.reshape(win * win * Cin, 4 * Cout)
    return {"wmat": wmat, "wmat_nk": wmat.T, "bias4": jnp.tile(bias, 4)}


def prepack_params(params, input_shape=(28, 28, 1), num_clusters=10,
                   filters=(32, 64, 128)):
    f3 = filters[2]
    sh = (input_shape[0] // 2 // 2 - 1) // 2
    sw = (input_shape[1] // 2 // 2 - 1) // 2
    lin = sh * sw * f3
    pp = {}
    pp["conv1_w"] = _conv_wmat(params["conv1_w"]); pp["conv1_b"] = params["conv1_b"]
    pp["conv2_w"] = _conv_wmat(params["conv2_w"]); pp["conv2_b"] = params["conv2_b"]
    pp["conv3_w"] = _conv_wmat(params["conv3_w"]); pp["conv3_b"] = params["conv3_b"]

    # Re-order the PyTorch-layout linear weights from (c,h,w) feature order to
    # the NHWC (h,w,c) flatten order so the math matches the torch module.
    we = params["emb_w"].reshape(num_clusters, f3, sh, sw)
    pp["emb_w"] = jnp.transpose(we, (2, 3, 1, 0)).reshape(lin, num_clusters)
    pp["emb_b"] = params["emb_b"]
    wd = params["demb_w"].reshape(f3, sh, sw, num_clusters)
    pp["demb_w"] = jnp.transpose(wd, (1, 2, 0, 3)).reshape(lin, num_clusters).T
    pp["demb_b"] = jnp.transpose(params["demb_b"].reshape(f3, sh, sw),
                                 (1, 2, 0)).reshape(lin)

    pp["deconv3"] = _prepack_deconv(params["deconv3_w"], params["deconv3_b"], 3, 0)
    pp["deconv2"] = _prepack_deconv(params["deconv2_w"], params["deconv2_b"], 5, 2)
    pp["deconv1"] = _prepack_deconv(params["deconv1_w"], params["deconv1_b"], 5, 2)
    return pp


# ----------------------------------------------------------------------------
# Forward pass: decoder(encoder(x)); NCHW at the API boundary, NHWC inside.
# Returns (z, x_hat); x_hat corresponds to the torch module's forward().
# ----------------------------------------------------------------------------
def cae_forward(x_nchw, pp, input_shape=(28, 28, 1)):
    B = x_nchw.shape[0]
    x = jnp.transpose(x_nchw, (0, 2, 3, 1)).astype(COMPUTE_DTYPE)  # NCHW->NHWC

    # --- encoder ---
    h = conv2d_nhwc(x, pp["conv1_w"], pp["conv1_b"], 5, 2, 2, "leaky_relu")
    h = conv2d_nhwc(h, pp["conv2_w"], pp["conv2_b"], 5, 2, 2, "leaky_relu")
    h = conv2d_nhwc(h, pp["conv3_w"], pp["conv3_b"], 3, 2, 0, "sigmoid")
    _, sh, sw, f3 = h.shape
    h = h.reshape(B, sh * sw * f3)                     # NHWC flatten: (h, w, c)

    # --- bottleneck: embedding + de-embedding fused in one kernel ---
    z, d = bottleneck(h, pp["emb_w"], pp["emb_b"], pp["demb_w"], pp["demb_b"])
    d = d.reshape(B, sh, sw, f3)

    # --- decoder --- (out_pad from input_shape[0], exactly as the torch module)
    op3 = 1 if (input_shape[0] // 2 // 2) % 2 == 0 else 0
    op2 = 1 if (input_shape[0] // 2) % 2 == 0 else 0
    op1 = 1 if input_shape[0] % 2 == 0 else 0
    d = conv_transpose2d_nhwc(d, pp["deconv3"], 3, 0, op3, "leaky_relu")
    d = conv_transpose2d_nhwc(d, pp["deconv2"], 5, 2, op2, "leaky_relu")
    d = conv_transpose2d_nhwc(d, pp["deconv1"], 5, 2, op1, "tanh",
                              transposed_out=True)
    x_hat = jnp.transpose(d, (0, 3, 1, 2)).astype(jnp.float32)  # back to NCHW
    return z, x_hat


if __name__ == "__main__":
    INPUT_SHAPE = (28, 28, 1)      # module default (H, W, C)
    BATCH = 2

    key = jax.random.PRNGKey(0)
    kx, kp = jax.random.split(key)
    # NCHW input, matching the PyTorch conv convention
    x = jax.random.normal(kx, (BATCH, INPUT_SHAPE[2], INPUT_SHAPE[0],
                               INPUT_SHAPE[1]), jnp.float32)
    params = init_params(kp, INPUT_SHAPE)
    packed = prepack_params(params, INPUT_SHAPE)   # one-time packing, outside jit

    fwd = jax.jit(functools.partial(cae_forward, input_shape=INPUT_SHAPE))
    z, x_hat = fwd(x, packed)
    jax.block_until_ready((z, x_hat))

    assert z.shape == (BATCH, 10)
    assert x_hat.shape == (BATCH, INPUT_SHAPE[2], INPUT_SHAPE[0], INPUT_SHAPE[1])
    assert bool(jnp.all(jnp.isfinite(x_hat))) and bool(jnp.all(jnp.isfinite(z)))
    print("KERNEL_OK")
</pallas_src>

<mosaic_0001>
module attributes {stable_mosaic.version = 11 : i64} {
  func.func @_mm_bias_act_kernel(%arg0: i32, %arg1: memref<392x25xf32, #tpu.memory_space<vmem>>, %arg2: memref<25x32xf32, #tpu.memory_space<vmem>>, %arg3: memref<1x32xf32, #tpu.memory_space<vmem>>, %arg4: memref<392x32xf32, #tpu.memory_space<vmem>>) attributes {dimension_semantics = [#tpu.dimension_semantics<parallel>], iteration_bounds = array<i64: 1>, scalar_prefetch = 0 : i64, scratch_operands = 0 : i64, tpu.core_type = #tpu.core_type<tc>, window_params = [{transform_indices = @transform_0, window_bounds = array<i64: 392, 25>}, {pipeline_mode = #tpu.pipeline_mode<synchronous>, transform_indices = @transform_1, window_bounds = array<i64: 25, 32>}, {pipeline_mode = #tpu.pipeline_mode<synchronous>, transform_indices = @transform_2, window_bounds = array<i64: 1, 32>}, {transform_indices = @transform_3, window_bounds = array<i64: 392, 32>}]} {
    %c0 = arith.constant 0 : index
    %c0_0 = arith.constant 0 : index
    %0 = vector.load %arg1[%c0, %c0_0] : memref<392x25xf32, #tpu.memory_space<vmem>>, vector<392x25xf32>
    %c0_1 = arith.constant 0 : index
    %c0_2 = arith.constant 0 : index
    %1 = vector.load %arg2[%c0_1, %c0_2] : memref<25x32xf32, #tpu.memory_space<vmem>>, vector<25x32xf32>
    %cst = arith.constant dense<0.000000e+00> : vector<392x32xf32>
    %2 = tpu.matmul %0, %1, %cst {dimension_numbers = #tpu.dot_dimension_numbers<[1], [0], [0], [1], [0, 0, 1, 1], [], []>} : vector<392x25xf32>, vector<25x32xf32>, vector<392x32xf32> -> vector<392x32xf32>
    %c0_3 = arith.constant 0 : index
    %c0_4 = arith.constant 0 : index
    %3 = vector.load %arg3[%c0_3, %c0_4] : memref<1x32xf32, #tpu.memory_space<vmem>>, vector<1x32xf32>
    %4 = vector.broadcast %3 : vector<1x32xf32> to vector<392x32xf32>
    %5 = arith.addf %2, %4 : vector<392x32xf32>
    %cst_5 = arith.constant 0.000000e+00 : f32
    %6 = vector.broadcast %cst_5 : f32 to vector<392x32xf32>
    %7 = arith.cmpf ogt, %5, %6 : vector<392x32xf32>
    %cst_6 = arith.constant 0.00999999977 : f32
    %8 = vector.broadcast %cst_6 : f32 to vector<392x32xf32>
    %9 = arith.mulf %8, %5 : vector<392x32xf32>
    %10 = arith.select %7, %5, %9 : vector<392x32xi1>, vector<392x32xf32>
    %c0_7 = arith.constant 0 : index
    %c0_8 = arith.constant 0 : index
    %11 = vector.load %arg4[%c0_7, %c0_8] : memref<392x32xf32, #tpu.memory_space<vmem>>, vector<392x32xf32>
    tpu.vector_store %arg4[%c0_7, %c0_8], %10 {strides = array<i32>} : memref<392x32xf32, #tpu.memory_space<vmem>>, vector<392x32xf32>,
    return
  }
  func.func @transform_0(%arg0: i32) -> (i32, i32) {
    %c0_i32 = arith.constant 0 : i32
    %c0_i32_0 = arith.constant 0 : i32
    return %arg0, %c0_i32 : i32, i32
  }
  func.func @transform_1(%arg0: i32) -> (i32, i32) {
    %c0_i32 = arith.constant 0 : i32
    %c0_i32_0 = arith.constant 0 : i32
    %c0_i32_1 = arith.constant 0 : i32
    return %c0_i32, %c0_i32_0 : i32, i32
  }
  func.func @transform_2(%arg0: i32) -> (i32, i32) {
    %c0_i32 = arith.constant 0 : i32
    %c0_i32_0 = arith.constant 0 : i32
    %c0_i32_1 = arith.constant 0 : i32
    return %c0_i32, %c0_i32_0 : i32, i32
  }
  func.func @transform_3(%arg0: i32) -> (i32, i32) {
    %c0_i32 = arith.constant 0 : i32
    %c0_i32_0 = arith.constant 0 : i32
    return %arg0, %c0_i32 : i32, i32
  }
}

module attributes {stable_mosaic.version = 11 : i64} {
  func.func @_mm_bias_act_kernel(%arg0: i32, %arg1: memref<98x800xf32, #tpu.memory_space<vmem>>, %arg2: memref<800x64xf32, #tpu.memory_space<vmem>>, %arg3: memref<1x64xf32, #tpu.memory_space<vmem>>, %arg4: memref<98x64xf32, #tpu.memory_space<vmem>>) attributes {dimension_semantics = [#tpu.dimension_semantics<parallel>], iteration_bounds = array<i64: 1>, scalar_prefetch = 0 : i64, scratch_operands = 0 : i64, tpu.core_type = #tpu.core_type<tc>, window_params = [{transform_indices = @transform_0, window_bounds = array<i64: 98, 800>}, {pipeline_mode = #tpu.pipeline_mode<synchronous>, transform_indices = @transform_1, window_bounds = array<i64: 800, 64>}, {pipeline_mode = #tpu.pipeline_mode<synchronous>, transform_indices = @transform_2, window_bounds = array<i64: 1, 64>}, {transform_indices = @transform_3, window_bounds = array<i64: 98, 64>}]} {
    %c0 = arith.constant 0 : index
    %c0_0 = arith.constant 0 : index
    %0 = vector.load %arg1[%c0, %c0_0] : memref<98x800xf32, #tpu.memory_space<vmem>>, vector<98x800xf32>
    %c0_1 = arith.constant 0 : index
    %c0_2 = arith.constant 0 : index
    %1 = vector.load %arg2[%c0_1, %c0_2] : memref<800x64xf32, #tpu.memory_space<vmem>>, vector<800x64xf32>
    %cst = arith.constant dense<0.000000e+00> : vector<98x64xf32>
    %2 = tpu.matmul %0, %1, %cst {dimension_numbers = #tpu.dot_dimension_numbers<[1], [0], [0], [1], [0, 0, 1, 1], [], []>} : vector<98x800xf32>, vector<800x64xf32>, vector<98x64xf32> -> vector<98x64xf32>
    %c0_3 = arith.constant 0 : index
    %c0_4 = arith.constant 0 : index
    %3 = vector.load %arg3[%c0_3, %c0_4] : memref<1x64xf32, #tpu.memory_space<vmem>>, vector<1x64xf32>
    %4 = vector.broadcast %3 : vector<1x64xf32> to vector<98x64xf32>
    %5 = arith.addf %2, %4 : vector<98x64xf32>
    %cst_5 = arith.constant 0.000000e+00 : f32
    %6 = vector.broadcast %cst_5 : f32 to vector<98x64xf32>
    %7 = arith.cmpf ogt, %5, %6 : vector<98x64xf32>
    %cst_6 = arith.constant 0.00999999977 : f32
    %8 = vector.broadcast %cst_6 : f32 to vector<98x64xf32>
    %9 = arith.mulf %8, %5 : vector<98x64xf32>
    %10 = arith.select %7, %5, %9 : vector<98x64xi1>, vector<98x64xf32>
    %c0_7 = arith.constant 0 : index
    %c0_8 = arith.constant 0 : index
    %11 = vector.load %arg4[%c0_7, %c0_8] : memref<98x64xf32, #tpu.memory_space<vmem>>, vector<98x64xf32>
    tpu.vector_store %arg4[%c0_7, %c0_8], %10 {strides = array<i32>} : memref<98x64xf32, #tpu.memory_space<vmem>>, vector<98x64xf32>,
    return
  }
  func.func @transform_0(%arg0: i32) -> (i32, i32) {
    %c0_i32 = arith.constant 0 : i32
    %c0_i32_0 = arith.constant 0 : i32
    return %arg0, %c0_i32 : i32, i32
  }
  func.func @transform_1(%arg0: i32) -> (i32, i32) {
    %c0_i32 = arith.constant 0 : i32
    %c0_i32_0 = arith.constant 0 : i32
    %c0_i32_1 = arith.constant 0 : i32
    return %c0_i32, %c0_i32_0 : i32, i32
  }
  func.func @transform_2(%arg0: i32) -> (i32, i32) {
    %c0_i32 = arith.constant 0 : i32
    %c0_i32_0 = arith.constant 0 : i32
    %c0_i32_1 = arith.constant 0 : i32
    return %c0_i32, %c0_i32_0 : i32, i32
  }
  func.func @transform_3(%arg0: i32) -> (i32, i32) {
    %c0_i32 = arith.constant 0 : i32
    %c0_i32_0 = arith.constant 0 : i32
    return %arg0, %c0_i32 : i32, i32
  }
}

module attributes {stable_mosaic.version = 11 : i64} {
  func.func @_bottleneck_kernel(%arg0: i32, %arg1: memref<2x1152xf32, #tpu.memory_space<vmem>>, %arg2: memref<1152x10xf32, #tpu.memory_space<vmem>>, %arg3: memref<1x10xf32, #tpu.memory_space<vmem>>, %arg4: memref<10x1152xf32, #tpu.memory_space<vmem>>, %arg5: memref<1x1152xf32, #tpu.memory_space<vmem>>, %arg6: memref<2x10xf32, #tpu.memory_space<vmem>>, %arg7: memref<2x1152xf32, #tpu.memory_space<vmem>>) attributes {dimension_semantics = [#tpu.dimension_semantics<parallel>], iteration_bounds = array<i64: 1>, scalar_prefetch = 0 : i64, scratch_operands = 0 : i64, tpu.core_type = #tpu.core_type<tc>, window_params = [{transform_indices = @transform_0, window_bounds = array<i64: 2, 1152>}, {pipeline_mode = #tpu.pipeline_mode<synchronous>, transform_indices = @transform_1, window_bounds = array<i64: 1152, 10>}, {pipeline_mode = #tpu.pipeline_mode<synchronous>, transform_indices = @transform_2, window_bounds = array<i64: 1, 10>}, {pipeline_mode = #tpu.pipeline_mode<synchronous>, transform_indices = @transform_3, window_bounds = array<i64: 10, 1152>}, {pipeline_mode = #tpu.pipeline_mode<synchronous>, transform_indices = @transform_4, window_bounds = array<i64: 1, 1152>}, {transform_indices = @transform_5, window_bounds = array<i64: 2, 10>}, {transform_indices = @transform_6, window_bounds = array<i64: 2, 1152>}]} {
    %c0 = arith.constant 0 : index
    %c0_0 = arith.constant 0 : index
    %0 = vector.load %arg1[%c0, %c0_0] : memref<2x1152xf32, #tpu.memory_space<vmem>>, vector<2x1152xf32>
    %c0_1 = arith.constant 0 : index
    %c0_2 = arith.constant 0 : index
    %1 = vector.load %arg2[%c0_1, %c0_2] : memref<1152x10xf32, #tpu.memory_space<vmem>>, vector<1152x10xf32>
    %cst = arith.constant dense<0.000000e+00> : vector<2x10xf32>
    %2 = tpu.matmul %0, %1, %cst {dimension_numbers = #tpu.dot_dimension_numbers<[1], [0], [0], [1], [0, 0, 1, 1], [], []>} : vector<2x1152xf32>, vector<1152x10xf32>, vector<2x10xf32> -> vector<2x10xf32>
    %c0_3 = arith.constant 0 : index
    %c0_4 = arith.constant 0 : index
    %3 = vector.load %arg3[%c0_3, %c0_4] : memref<1x10xf32, #tpu.memory_space<vmem>>, vector<1x10xf32>
    %4 = vector.broadcast %3 : vector<1x10xf32> to vector<2x10xf32>
    %5 = arith.addf %2, %4 : vector<2x10xf32>
    %c0_5 = arith.constant 0 : index
    %c0_6 = arith.constant 0 : index
    %6 = vector.load %arg6[%c0_5, %c0_6] : memref<2x10xf32, #tpu.memory_space<vmem>>, vector<2x10xf32>
    tpu.vector_store %arg6[%c0_5, %c0_6], %5 {strides = array<i32>} : memref<2x10xf32, #tpu.memory_space<vmem>>, vector<2x10xf32>,
    %c0_7 = arith.constant 0 : index
    %c0_8 = arith.constant 0 : index
    %7 = vector.load %arg4[%c0_7, %c0_8] : memref<10x1152xf32, #tpu.memory_space<vmem>>, vector<10x1152xf32>
    %cst_9 = arith.constant dense<0.000000e+00> : vector<2x1152xf32>
    %8 = tpu.matmul %5, %7, %cst_9 {dimension_numbers = #tpu.dot_dimension_numbers<[1], [0], [0], [1], [0, 0, 1, 1], [], []>} : vector<2x10xf32>, vector<10x1152xf32>, vector<2x1152xf32> -> vector<2x1152xf32>
    %c0_10 = arith.constant 0 : index
    %c0_11 = arith.constant 0 : index
    %9 = vector.load %arg5[%c0_10, %c0_11] : memref<1x1152xf32, #tpu.memory_space<vmem>>, vector<1x1152xf32>
    %10 = vector.broadcast %9 : vector<1x1152xf32> to vector<2x1152xf32>
    %11 = arith.addf %8, %10 : vector<2x1152xf32>
    %cst_12 = arith.constant 0.000000e+00 : f32
    %12 = vector.broadcast %cst_12 : f32 to vector<2x1152xf32>
    %13 = arith.cmpf ogt, %11, %12 : vector<2x1152xf32>
    %cst_13 = arith.constant 0.00999999977 : f32
    %14 = vector.broadcast %cst_13 : f32 to vector<2x1152xf32>
    %15 = arith.mulf %14, %11 : vector<2x1152xf32>
    %16 = arith.select %13, %11, %15 : vector<2x1152xi1>, vector<2x1152xf32>
    %c0_14 = arith.constant 0 : index
    %c0_15 = arith.constant 0 : index
    %17 = vector.load %arg7[%c0_14, %c0_15] : memref<2x1152xf32, #tpu.memory_space<vmem>>, vector<2x1152xf32>
    tpu.vector_store %arg7[%c0_14, %c0_15], %16 {strides = array<i32>} : memref<2x1152xf32, #tpu.memory_space<vmem>>, vector<2x1152xf32>,
    return
  }
  func.func @transform_0(%arg0: i32) -> (i32, i32) {
    %c0_i32 = arith.constant 0 : i32
    %c0_i32_0 = arith.constant 0 : i32
    return %arg0, %c0_i32 : i32, i32
  }
  func.func @transform_1(%arg0: i32) -> (i32, i32) {
    %c0_i32 = arith.constant 0 : i32
    %c0_i32_0 = arith.constant 0 : i32
    %c0_i32_1 = arith.constant 0 : i32
    return %c0_i32, %c0_i32_0 : i32, i32
  }
  func.func @transform_2(%arg0: i32) -> (i32, i32) {
    %c0_i32 = arith.constant 0 : i32
    %c0_i32_0 = arith.constant 0 : i32
    %c0_i32_1 = arith.constant 0 : i32
    return %c0_i32, %c0_i32_0 : i32, i32
  }
  func.func @transform_3(%arg0: i32) -> (i32, i32) {
    %c0_i32 = arith.constant 0 : i32
    %c0_i32_0 = arith.constant 0 : i32
    %c0_i32_1 = arith.constant 0 : i32
    return %c0_i32, %c0_i32_0 : i32, i32
  }
  func.func @transform_4(%arg0: i32) -> (i32, i32) {
    %c0_i32 = arith.constant 0 : i32
    %c0_i32_0 = arith.constant 0 : i32
    %c0_i32_1 = arith.constant 0 : i32
    return %c0_i32, %c0_i32_0 : i32, i32
  }
  func.func @transform_5(%arg0: i32) -> (i32, i32) {
    %c0_i32 = arith.constant 0 : i32
    %c0_i32_0 = arith.constant 0 : i32
    return %arg0, %c0_i32 : i32, i32
  }
  func.func @transform_6(%arg0: i32) -> (i32, i32) {
    %c0_i32 = arith.constant 0 : i32
    %c0_i32_0 = arith.constant 0 : i32
    return %arg0, %c0_i32 : i32, i32
  }
}

module attributes {stable_mosaic.version = 11 : i64} {
  func.func @_mm_bias_act_kernel(%arg0: i32, %arg1: memref<18x576xf32, #tpu.memory_space<vmem>>, %arg2: memref<576x128xf32, #tpu.memory_space<vmem>>, %arg3: memref<1x128xf32, #tpu.memory_space<vmem>>, %arg4: memref<18x128xf32, #tpu.memory_space<vmem>>) attributes {dimension_semantics = [#tpu.dimension_semantics<parallel>], iteration_bounds = array<i64: 1>, scalar_prefetch = 0 : i64, scratch_operands = 0 : i64, tpu.core_type = #tpu.core_type<tc>, window_params = [{transform_indices = @transform_0, window_bounds = array<i64: 18, 576>}, {pipeline_mode = #tpu.pipeline_mode<synchronous>, transform_indices = @transform_1, window_bounds = array<i64: 576, 128>}, {pipeline_mode = #tpu.pipeline_mode<synchronous>, transform_indices = @transform_2, window_bounds = array<i64: 1, 128>}, {transform_indices = @transform_3, window_bounds = array<i64: 18, 128>}]} {
    %c0 = arith.constant 0 : index
    %c0_0 = arith.constant 0 : index
    %0 = vector.load %arg1[%c0, %c0_0] : memref<18x576xf32, #tpu.memory_space<vmem>>, vector<18x576xf32>
    %c0_1 = arith.constant 0 : index
    %c0_2 = arith.constant 0 : index
    %1 = vector.load %arg2[%c0_1, %c0_2] : memref<576x128xf32, #tpu.memory_space<vmem>>, vector<576x128xf32>
    %cst = arith.constant dense<0.000000e+00> : vector<18x128xf32>
    %2 = tpu.matmul %0, %1, %cst {dimension_numbers = #tpu.dot_dimension_numbers<[1], [0], [0], [1], [0, 0, 1, 1], [], []>} : vector<18x576xf32>, vector<576x128xf32>, vector<18x128xf32> -> vector<18x128xf32>
    %c0_3 = arith.constant 0 : index
    %c0_4 = arith.constant 0 : index
    %3 = vector.load %arg3[%c0_3, %c0_4] : memref<1x128xf32, #tpu.memory_space<vmem>>, vector<1x128xf32>
    %4 = vector.broadcast %3 : vector<1x128xf32> to vector<18x128xf32>
    %5 = arith.addf %2, %4 : vector<18x128xf32>
    %cst_5 = arith.constant 0.000000e+00 : f32
    %6 = vector.broadcast %cst_5 : f32 to vector<18x128xf32>
    %7 = arith.subf %6, %5 : vector<18x128xf32>
    %8 = math.exp %7 : vector<18x128xf32>
    %cst_6 = arith.constant 1.000000e+00 : f32
    %9 = vector.broadcast %cst_6 : f32 to vector<18x128xf32>
    %10 = arith.addf %9, %8 : vector<18x128xf32>
    %cst_7 = arith.constant 1.000000e+00 : f32
    %11 = vector.broadcast %cst_7 : f32 to vector<18x128xf32>
    %12 = arith.divf %11, %10 : vector<18x128xf32>
    %c0_8 = arith.constant 0 : index
    %c0_9 = arith.constant 0 : index
    %13 = vector.load %arg4[%c0_8, %c0_9] : memref<18x128xf32, #tpu.memory_space<vmem>>, vector<18x128xf32>
    tpu.vector_store %arg4[%c0_8, %c0_9], %12 {strides = array<i32>} : memref<18x128xf32, #tpu.memory_space<vmem>>, vector<18x128xf32>,
    return
  }
  func.func @transform_0(%arg0: i32) -> (i32, i32) {
    %c0_i32 = arith.constant 0 : i32
    %c0_i32_0 = arith.constant 0 : i32
    return %arg0, %c0_i32 : i32, i32
  }
  func.func @transform_1(%arg0: i32) -> (i32, i32) {
    %c0_i32 = arith.constant 0 : i32
    %c0_i32_0 = arith.constant 0 : i32
    %c0_i32_1 = arith.constant 0 : i32
    return %c0_i32, %c0_i32_0 : i32, i32
  }
  func.func @transform_2(%arg0: i32) -> (i32, i32) {
    %c0_i32 = arith.constant 0 : i32
    %c0_i32_0 = arith.constant 0 : i32
    %c0_i32_1 = arith.constant 0 : i32
    return %c0_i32, %c0_i32_0 : i32, i32
  }
  func.func @transform_3(%arg0: i32) -> (i32, i32) {
    %c0_i32 = arith.constant 0 : i32
    %c0_i32_0 = arith.constant 0 : i32
    return %arg0, %c0_i32 : i32, i32
  }
}

module attributes {stable_mosaic.version = 11 : i64} {
  func.func @_mm_bias_act_kernel(%arg0: i32, %arg1: memref<32x512xf32, #tpu.memory_space<vmem>>, %arg2: memref<512x256xf32, #tpu.memory_space<vmem>>, %arg3: memref<1x256xf32, #tpu.memory_space<vmem>>, %arg4: memref<32x256xf32, #tpu.memory_space<vmem>>) attributes {dimension_semantics = [#tpu.dimension_semantics<parallel>], iteration_bounds = array<i64: 1>, scalar_prefetch = 0 : i64, scratch_operands = 0 : i64, tpu.core_type = #tpu.core_type<tc>, window_params = [{transform_indices = @transform_0, window_bounds = array<i64: 32, 512>}, {pipeline_mode = #tpu.pipeline_mode<synchronous>, transform_indices = @transform_1, window_bounds = array<i64: 512, 256>}, {pipeline_mode = #tpu.pipeline_mode<synchronous>, transform_indices = @transform_2, window_bounds = array<i64: 1, 256>}, {transform_indices = @transform_3, window_bounds = array<i64: 32, 256>}]} {
    %c0 = arith.constant 0 : index
    %c0_0 = arith.constant 0 : index
    %0 = vector.load %arg1[%c0, %c0_0] : memref<32x512xf32, #tpu.memory_space<vmem>>, vector<32x512xf32>
    %c0_1 = arith.constant 0 : index
    %c0_2 = arith.constant 0 : index
    %1 = vector.load %arg2[%c0_1, %c0_2] : memref<512x256xf32, #tpu.memory_space<vmem>>, vector<512x256xf32>
    %cst = arith.constant dense<0.000000e+00> : vector<32x256xf32>
    %2 = tpu.matmul %0, %1, %cst {dimension_numbers = #tpu.dot_dimension_numbers<[1], [0], [0], [1], [0, 0, 1, 1], [], []>} : vector<32x512xf32>, vector<512x256xf32>, vector<32x256xf32> -> vector<32x256xf32>
    %c0_3 = arith.constant 0 : index
    %c0_4 = arith.constant 0 : index
    %3 = vector.load %arg3[%c0_3, %c0_4] : memref<1x256xf32, #tpu.memory_space<vmem>>, vector<1x256xf32>
    %4 = vector.broadcast %3 : vector<1x256xf32> to vector<32x256xf32>
    %5 = arith.addf %2, %4 : vector<32x256xf32>
    %cst_5 = arith.constant 0.000000e+00 : f32
    %6 = vector.broadcast %cst_5 : f32 to vector<32x256xf32>
    %7 = arith.cmpf ogt, %5, %6 : vector<32x256xf32>
    %cst_6 = arith.constant 0.00999999977 : f32
    %8 = vector.broadcast %cst_6 : f32 to vector<32x256xf32>
    %9 = arith.mulf %8, %5 : vector<32x256xf32>
    %10 = arith.select %7, %5, %9 : vector<32x256xi1>, vector<32x256xf32>
    %c0_7 = arith.constant 0 : index
    %c0_8 = arith.constant 0 : index
    %11 = vector.load %arg4[%c0_7, %c0_8] : memref<32x256xf32, #tpu.memory_space<vmem>>, vector<32x256xf32>
    tpu.vector_store %arg4[%c0_7, %c0_8], %10 {strides = array<i32>} : memref<32x256xf32, #tpu.memory_space<vmem>>, vector<32x256xf32>,
    return
  }
  func.func @transform_0(%arg0: i32) -> (i32, i32) {
    %c0_i32 = arith.constant 0 : i32
    %c0_i32_0 = arith.constant 0 : i32
    return %arg0, %c0_i32 : i32, i32
  }
  func.func @transform_1(%arg0: i32) -> (i32, i32) {
    %c0_i32 = arith.constant 0 : i32
    %c0_i32_0 = arith.constant 0 : i32
    %c0_i32_1 = arith.constant 0 : i32
    return %c0_i32, %c0_i32_0 : i32, i32
  }
  func.func @transform_2(%arg0: i32) -> (i32, i32) {
    %c0_i32 = arith.constant 0 : i32
    %c0_i32_0 = arith.constant 0 : i32
    %c0_i32_1 = arith.constant 0 : i32
    return %c0_i32, %c0_i32_0 : i32, i32
  }
  func.func @transform_3(%arg0: i32) -> (i32, i32) {
    %c0_i32 = arith.constant 0 : i32
    %c0_i32_0 = arith.constant 0 : i32
    return %arg0, %c0_i32 : i32, i32
  }
}

module attributes {stable_mosaic.version = 11 : i64} {
  func.func @_mm_bias_act_kernel(%arg0: i32, %arg1: memref<98x576xf32, #tpu.memory_space<vmem>>, %arg2: memref<576x128xf32, #tpu.memory_space<vmem>>, %arg3: memref<1x128xf32, #tpu.memory_space<vmem>>, %arg4: memref<98x128xf32, #tpu.memory_space<vmem>>) attributes {dimension_semantics = [#tpu.dimension_semantics<parallel>], iteration_bounds = array<i64: 1>, scalar_prefetch = 0 : i64, scratch_operands = 0 : i64, tpu.core_type = #tpu.core_type<tc>, window_params = [{transform_indices = @transform_0, window_bounds = array<i64: 98, 576>}, {pipeline_mode = #tpu.pipeline_mode<synchronous>, transform_indices = @transform_1, window_bounds = array<i64: 576, 128>}, {pipeline_mode = #tpu.pipeline_mode<synchronous>, transform_indices = @transform_2, window_bounds = array<i64: 1, 128>}, {transform_indices = @transform_3, window_bounds = array<i64: 98, 128>}]} {
    %c0 = arith.constant 0 : index
    %c0_0 = arith.constant 0 : index
    %0 = vector.load %arg1[%c0, %c0_0] : memref<98x576xf32, #tpu.memory_space<vmem>>, vector<98x576xf32>
    %c0_1 = arith.constant 0 : index
    %c0_2 = arith.constant 0 : index
    %1 = vector.load %arg2[%c0_1, %c0_2] : memref<576x128xf32, #tpu.memory_space<vmem>>, vector<576x128xf32>
    %cst = arith.constant dense<0.000000e+00> : vector<98x128xf32>
    %2 = tpu.matmul %0, %1, %cst {dimension_numbers = #tpu.dot_dimension_numbers<[1], [0], [0], [1], [0, 0, 1, 1], [], []>} : vector<98x576xf32>, vector<576x128xf32>, vector<98x128xf32> -> vector<98x128xf32>
    %c0_3 = arith.constant 0 : index
    %c0_4 = arith.constant 0 : index
    %3 = vector.load %arg3[%c0_3, %c0_4] : memref<1x128xf32, #tpu.memory_space<vmem>>, vector<1x128xf32>
    %4 = vector.broadcast %3 : vector<1x128xf32> to vector<98x128xf32>
    %5 = arith.addf %2, %4 : vector<98x128xf32>
    %cst_5 = arith.constant 0.000000e+00 : f32
    %6 = vector.broadcast %cst_5 : f32 to vector<98x128xf32>
    %7 = arith.cmpf ogt, %5, %6 : vector<98x128xf32>
    %cst_6 = arith.constant 0.00999999977 : f32
    %8 = vector.broadcast %cst_6 : f32 to vector<98x128xf32>
    %9 = arith.mulf %8, %5 : vector<98x128xf32>
    %10 = arith.select %7, %5, %9 : vector<98x128xi1>, vector<98x128xf32>
    %c0_7 = arith.constant 0 : index
    %c0_8 = arith.constant 0 : index
    %11 = vector.load %arg4[%c0_7, %c0_8] : memref<98x128xf32, #tpu.memory_space<vmem>>, vector<98x128xf32>
    tpu.vector_store %arg4[%c0_7, %c0_8], %10 {strides = array<i32>} : memref<98x128xf32, #tpu.memory_space<vmem>>, vector<98x128xf32>,
    return
  }
  func.func @transform_0(%arg0: i32) -> (i32, i32) {
    %c0_i32 = arith.constant 0 : i32
    %c0_i32_0 = arith.constant 0 : i32
    return %arg0, %c0_i32 : i32, i32
  }
  func.func @transform_1(%arg0: i32) -> (i32, i32) {
    %c0_i32 = arith.constant 0 : i32
    %c0_i32_0 = arith.constant 0 : i32
    %c0_i32_1 = arith.constant 0 : i32
    return %c0_i32, %c0_i32_0 : i32, i32
  }
  func.func @transform_2(%arg0: i32) -> (i32, i32) {
    %c0_i32 = arith.constant 0 : i32
    %c0_i32_0 = arith.constant 0 : i32
    %c0_i32_1 = arith.constant 0 : i32
    return %c0_i32, %c0_i32_0 : i32, i32
  }
  func.func @transform_3(%arg0: i32) -> (i32, i32) {
    %c0_i32 = arith.constant 0 : i32
    %c0_i32_0 = arith.constant 0 : i32
    return %arg0, %c0_i32 : i32, i32
  }
}

module attributes {stable_mosaic.version = 11 : i64} {
  func.func @_mm_nt_bias_act_kernel(%arg0: i32, %arg1: memref<4x288xf32, #tpu.memory_space<vmem>>, %arg2: memref<392x288xf32, #tpu.memory_space<vmem>>, %arg3: memref<4x1xf32, #tpu.memory_space<vmem>>, %arg4: memref<4x392xf32, #tpu.memory_space<vmem>>) attributes {dimension_semantics = [#tpu.dimension_semantics<parallel>], iteration_bounds = array<i64: 1>, scalar_prefetch = 0 : i64, scratch_operands = 0 : i64, tpu.core_type = #tpu.core_type<tc>, window_params = [{pipeline_mode = #tpu.pipeline_mode<synchronous>, transform_indices = @transform_0, window_bounds = array<i64: 4, 288>}, {transform_indices = @transform_1, window_bounds = array<i64: 392, 288>}, {pipeline_mode = #tpu.pipeline_mode<synchronous>, transform_indices = @transform_2, window_bounds = array<i64: 4, 1>}, {transform_indices = @transform_3, window_bounds = array<i64: 4, 392>}]} {
    %c0 = arith.constant 0 : index
    %c0_0 = arith.constant 0 : index
    %0 = vector.load %arg1[%c0, %c0_0] : memref<4x288xf32, #tpu.memory_space<vmem>>, vector<4x288xf32>
    %c0_1 = arith.constant 0 : index
    %c0_2 = arith.constant 0 : index
    %1 = vector.load %arg2[%c0_1, %c0_2] : memref<392x288xf32, #tpu.memory_space<vmem>>, vector<392x288xf32>
    %cst = arith.constant dense<0.000000e+00> : vector<4x392xf32>
    %2 = tpu.matmul %0, %1, %cst {dimension_numbers = #tpu.dot_dimension_numbers<[1], [1], [0], [0], [0, 0, 1, 0], [], []>} : vector<4x288xf32>, vector<392x288xf32>, vector<4x392xf32> -> vector<4x392xf32>
    %c0_3 = arith.constant 0 : index
    %c0_4 = arith.constant 0 : index
    %3 = vector.load %arg3[%c0_3, %c0_4] : memref<4x1xf32, #tpu.memory_space<vmem>>, vector<4x1xf32>
    %4 = vector.broadcast %3 : vector<4x1xf32> to vector<4x392xf32>
    %5 = arith.addf %2, %4 : vector<4x392xf32>
    %6 = math.tanh %5 : vector<4x392xf32>
    %c0_5 = arith.constant 0 : index
    %c0_6 = arith.constant 0 : index
    %7 = vector.load %arg4[%c0_5, %c0_6] : memref<4x392xf32, #tpu.memory_space<vmem>>, vector<4x392xf32>
    tpu.vector_store %arg4[%c0_5, %c0_6], %6 {strides = array<i32>} : memref<4x392xf32, #tpu.memory_space<vmem>>, vector<4x392xf32>,
    return
  }
  func.func @transform_0(%arg0: i32) -> (i32, i32) {
    %c0_i32 = arith.constant 0 : i32
    %c0_i32_0 = arith.constant 0 : i32
    %c0_i32_1 = arith.constant 0 : i32
    return %c0_i32, %c0_i32_0 : i32, i32
  }
  func.func @transform_1(%arg0: i32) -> (i32, i32) {
    %c0_i32 = arith.constant 0 : i32
    %c0_i32_0 = arith.constant 0 : i32
    return %arg0, %c0_i32 : i32, i32
  }
  func.func @transform_2(%arg0: i32) -> (i32, i32) {
    %c0_i32 = arith.constant 0 : i32
    %c0_i32_0 = arith.constant 0 : i32
    %c0_i32_1 = arith.constant 0 : i32
    return %c0_i32, %c0_i32_0 : i32, i32
  }
  func.func @transform_3(%arg0: i32) -> (i32, i32) {
    %c0_i32 = arith.constant 0 : i32
    %c0_i32_0 = arith.constant 0 : i32
    return %c0_i32, %arg0 : i32, i32
  }
}

</mosaic_0001>

<bundles_post_ra>
// kernel: cae_forward.7
= control target key start
LH: loop header
LB: loop body
LE: loop exit
PB: predicated region body
PF: predicated region fallthrough
CT: control target
= control target key end

     0   :  { %vm219_vm0 = vcmask 1040384   ;;  %vm71_vm1 = vcmask 203776   ;;  %vm534_vm4 = vcmask 261120   ;;  %s1129_s1 = inlined_call_operand.vmem [shape: f32[25,32], index: 1, kind: input, shape index: {}]   ;;  %s1130_s0 = inlined_call_operand.vmem [shape: f32[392,25], index: 0, kind: input, shape index: {}]   ;;  %s1131_s2 = inlined_call_operand.vmem [shape: f32[1,32], index: 2, kind: input, shape index: {}]   ;;  %s1132_s3 = inlined_call_operand.vmem [shape: f32[392,32], index: 3, kind: output, shape index: {}]  }
   0x1   :  { %v66_v0 = vld [vmem:[%s1129_s1 + $0x18] sm:$0x1]  ;;  %v65_v1 = vld [vmem:[%s1129_s1 + $0x10] sm:$0xff]  ;;  %v64_v2 = vld [vmem:[%s1129_s1 + $0x8] sm:$0xff] }
   0x2   :  { %639 = vmatpush.msk.msra.mxu2 %vm219_vm0, %v66_v0  ;;  %640 = vmatpush.msk.msra.mxu3 %vm219_vm0, %v66_v0  ;;  %v63_v3 = vld [vmem:[%s1129_s1] sm:$0xff]  ;;  %v51_v5 = vld [vmem:[%s1130_s0 + $0x128] sm:$0xff]  ;;  %v52_v9 = vld [vmem:[%s1130_s0 + $0x130] sm:$0xff] }
   0x3   :  { %588 = vmatpush.msk.msra.mxu0 %vm219_vm0, %v66_v0  ;;  %638 = vmatpush.msk.msra.mxu1 %vm219_vm0, %v66_v0  ;;  %v38_v4 = vld [vmem:[%s1130_s0 + $0xc0] sm:$0xff]  ;;  %v39_v8 = vld [vmem:[%s1130_s0 + $0xc8] sm:$0xff]  ;;  %v40_v12 = vld [vmem:[%s1130_s0 + $0xd0] sm:$0xff] }
   0x4   :  { %642 = vmatpush.msra.mxu2 %v65_v1  ;;  %643 = vmatpush.msra.mxu3 %v65_v1  ;;  %v14_v6 = vld [vmem:[%s1130_s0] sm:$0xff]  ;;  %v15_v10 = vld [vmem:[%s1130_s0 + $0x8] sm:$0xff]  ;;  %v53_v13 = vld [vmem:[%s1130_s0 + $0x138] sm:$0xff] }
   0x5   :  { %236 = vmatpush.msra.mxu0 %v65_v1  ;;  %641 = vmatpush.msra.mxu1 %v65_v1  ;;  %v26_v7 = vld [vmem:[%s1130_s0 + $0x60] sm:$0xff]  ;;  %v27_v11 = vld [vmem:[%s1130_s0 + $0x68] sm:$0xff]  ;;  %v16_v14 = vld [vmem:[%s1130_s0 + $0x10] sm:$0xff] }
   0x6   :  { %645 = vmatpush.msra.mxu2 %v64_v2  ;;  %646 = vmatpush.msra.mxu3 %v64_v2  ;;  %v28_v15 = vld [vmem:[%s1130_s0 + $0x70] sm:$0xff]  ;;  %v41_v16 = vld [vmem:[%s1130_s0 + $0xd8] sm:$0xff]  ;;  %v54_v17 = vld [vmem:[%s1130_s0 + $0x140] sm:$0xff] }
   0x7   :  { %237 = vmatpush.msra.mxu0 %v64_v2  ;;  %644 = vmatpush.msra.mxu1 %v64_v2  ;;  %v17_v18 = vld [vmem:[%s1130_s0 + $0x18] sm:$0xff]  ;;  %v42_v20 = vld [vmem:[%s1130_s0 + $0xe0] sm:$0xff]  ;;  %v55_v21 = vld [vmem:[%s1130_s0 + $0x148] sm:$0xff] }
   0x8   :  { %648 = vmatpush.msra.mxu2 %v63_v3  ;;  %649 = vmatpush.msra.mxu3 %v63_v3  ;;  %v29_v19 = vld [vmem:[%s1130_s0 + $0x78] sm:$0xff]  ;;  %v18_v22 = vld [vmem:[%s1130_s0 + $0x20] sm:$0xff]  ;;  %v43_v24 = vld [vmem:[%s1130_s0 + $0xe8] sm:$0xff] }
   0x9   :  { %613 = vmatmul.msk.f32.vlgmr.msra.gmra.mxu2 %vm71_vm1, %v38_v4  ;;  %626 = vmatmul.msk.f32.vlgmr.msra.gmra.mxu3 %vm71_vm1, %v51_v5  ;;  %v30_v23 = vld [vmem:[%s1130_s0 + $0x80] sm:$0xff]  ;;  %v56_v25 = vld [vmem:[%s1130_s0 + $0x150] sm:$0xff]  ;;  %v19_v26 = vld [vmem:[%s1130_s0 + $0x28] sm:$0xff] }
   0xa   :  { %238 = vmatpush.msra.mxu0 %v63_v3  ;;  %647 = vmatpush.msra.mxu1 %v63_v3  ;;  %v31_v27 = vld [vmem:[%s1130_s0 + $0x88] sm:$0xff]  ;;  %v44_v28 = vld [vmem:[%s1130_s0 + $0xf0] sm:$0xff]  ;;  %v57_v29 = vld [vmem:[%s1130_s0 + $0x158] sm:$0xff] }
   0xb   :  { %589 = vmatmul.msk.f32.vlgmr.msra.gmra.mxu0 %vm71_vm1, %v14_v6  ;;  %601 = vmatmul.msk.f32.vlgmr.msra.gmra.mxu1 %vm71_vm1, %v26_v7  ;;  %v20_v30 = vld [vmem:[%s1130_s0 + $0x30] sm:$0xff]  ;;  %v45_v32 = vld [vmem:[%s1130_s0 + $0xf8] sm:$0xff]  ;;  %v58_v33 = vld [vmem:[%s1130_s0 + $0x160] sm:$0xff] }
   0xc   :  { %v32_v31 = vld [vmem:[%s1130_s0 + $0x90] sm:$0xff]  ;;  %v21_v34 = vld [vmem:[%s1130_s0 + $0x38] sm:$0xff]  ;;  %v46_v36 = vld [vmem:[%s1130_s0 + $0x100] sm:$0xff] }
   0xd   :  { %v33_v35 = vld [vmem:[%s1130_s0 + $0x98] sm:$0xff]  ;;  %v59_v37 = vld [vmem:[%s1130_s0 + $0x168] sm:$0xff]  ;;  %v22_v38 = vld [vmem:[%s1130_s0 + $0x40] sm:$0xff] }
   0xe   :  { %v34_v39 = vld [vmem:[%s1130_s0 + $0xa0] sm:$0xff]  ;;  %v47_v40 = vld [vmem:[%s1130_s0 + $0x108] sm:$0xff]  ;;  %v60_v41 = vld [vmem:[%s1130_s0 + $0x170] sm:$0xff] }
   0xf   :  { %v23_v42 = vld [vmem:[%s1130_s0 + $0x48] sm:$0xff]  ;;  %v48_v44 = vld [vmem:[%s1130_s0 + $0x110] sm:$0xff]  ;;  %v61_v45 = vld [vmem:[%s1130_s0 + $0x178] sm:$0xff] }
  0x10   :  { %v35_v43 = vld [vmem:[%s1130_s0 + $0xa8] sm:$0xff]  ;;  %v24_v46 = vld [vmem:[%s1130_s0 + $0x50] sm:$0xff]  ;;  %v49_v48 = vld [vmem:[%s1130_s0 + $0x118] sm:$0xff] }
  0x11   :  { %614 = vmatmul.msk.f32.gmra.mxu2 %vm71_vm1, %v39_v8  ;;  %627 = vmatmul.msk.f32.gmra.mxu3 %vm71_vm1, %v52_v9  ;;  %v36_v47 = vld [vmem:[%s1130_s0 + $0xb0] sm:$0xff]  ;;  %v62_v49 = vld [vmem:[%s1130_s0 + $0x180] sm:$0xff]  ;;  %v25_v50 = vld [vmem:[%s1130_s0 + $0x58] sm:$0xff] }
  0x12   :  { %v37_v51 = vld [vmem:[%s1130_s0 + $0xb8] sm:$0xff]  ;;  %v50_v52 = vld [vmem:[%s1130_s0 + $0x120] sm:$0xff] }
  0x13   :  { %590 = vmatmul.msk.f32.gmra.mxu0 %vm71_vm1, %v15_v10  ;;  %602 = vmatmul.msk.f32.gmra.mxu1 %vm71_vm1, %v27_v11  ;;  %v882_v53 = vld [vmem:[%s1131_s2] ss:$0 sm:$0xff] }
  0x19   :  { %615 = vmatmul.msk.f32.gmra.mxu2 %vm71_vm1, %v40_v12  ;;  %628 = vmatmul.msk.f32.gmra.mxu3 %vm71_vm1, %v53_v13 }
  0x1b   :  { %591 = vmatmul.msk.f32.gmra.mxu0 %vm71_vm1, %v16_v14  ;;  %603 = vmatmul.msk.f32.gmra.mxu1 %vm71_vm1, %v28_v15 }
  0x21   :  { %616 = vmatmul.msk.f32.gmra.mxu2 %vm71_vm1, %v41_v16  ;;  %629 = vmatmul.msk.f32.gmra.mxu3 %vm71_vm1, %v54_v17 }
  0x23   :  { %592 = vmatmul.msk.f32.gmra.mxu0 %vm71_vm1, %v17_v18  ;;  %604 = vmatmul.msk.f32.gmra.mxu1 %vm71_vm1, %v29_v19 }
  0x29   :  { %617 = vmatmul.msk.f32.gmra.mxu2 %vm71_vm1, %v42_v20  ;;  %630 = vmatmul.msk.f32.gmra.mxu3 %vm71_vm1, %v55_v21 }
  0x2b   :  { %593 = vmatmul.msk.f32.gmra.mxu0 %vm71_vm1, %v18_v22  ;;  %605 = vmatmul.msk.f32.gmra.mxu1 %vm71_vm1, %v30_v23 }
  0x31   :  { %618 = vmatmul.msk.f32.gmra.mxu2 %vm71_vm1, %v43_v24  ;;  %631 = vmatmul.msk.f32.gmra.mxu3 %vm71_vm1, %v56_v25 }
  0x33   :  { %594 = vmatmul.msk.f32.gmra.mxu0 %vm71_vm1, %v19_v26  ;;  %606 = vmatmul.msk.f32.gmra.mxu1 %vm71_vm1, %v31_v27 }
  0x39   :  { %619 = vmatmul.msk.f32.gmra.mxu2 %vm71_vm1, %v44_v28  ;;  %632 = vmatmul.msk.f32.gmra.mxu3 %vm71_vm1, %v57_v29 }
  0x3b   :  { %595 = vmatmul.msk.f32.gmra.mxu0 %vm71_vm1, %v20_v30  ;;  %607 = vmatmul.msk.f32.gmra.mxu1 %vm71_vm1, %v32_v31 }
  0x41   :  { %620 = vmatmul.msk.f32.gmra.mxu2 %vm71_vm1, %v45_v32  ;;  %633 = vmatmul.msk.f32.gmra.mxu3 %vm71_vm1, %v58_v33 }
  0x43   :  { %596 = vmatmul.msk.f32.gmra.mxu0 %vm71_vm1, %v21_v34  ;;  %608 = vmatmul.msk.f32.gmra.mxu1 %vm71_vm1, %v33_v35 }
  0x49   :  { %621 = vmatmul.msk.f32.gmra.mxu2 %vm71_vm1, %v46_v36  ;;  %634 = vmatmul.msk.f32.gmra.mxu3 %vm71_vm1, %v59_v37 }
  0x4b   :  { %597 = vmatmul.msk.f32.gmra.mxu0 %vm71_vm1, %v22_v38  ;;  %609 = vmatmul.msk.f32.gmra.mxu1 %vm71_vm1, %v34_v39 }
  0x51   :  { %622 = vmatmul.msk.f32.gmra.mxu2 %vm71_vm1, %v47_v40  ;;  %635 = vmatmul.msk.f32.gmra.mxu3 %vm71_vm1, %v60_v41 }
  0x53   :  { %598 = vmatmul.msk.f32.gmra.mxu0 %vm71_vm1, %v23_v42  ;;  %610 = vmatmul.msk.f32.gmra.mxu1 %vm71_vm1, %v35_v43 }
  0x59   :  { %623 = vmatmul.msk.f32.gmra.mxu2 %vm71_vm1, %v48_v44  ;;  %636 = vmatmul.msk.f32.gmra.mxu3 %vm71_vm1, %v61_v45 }
  0x5b   :  { %599 = vmatmul.msk.f32.gmra.mxu0 %vm71_vm1, %v24_v46  ;;  %611 = vmatmul.msk.f32.gmra.mxu1 %vm71_vm1, %v36_v47 }
  0x61   :  { %624 = vmatmul.msk.f32.gmra.mxu2 %vm71_vm1, %v49_v48  ;;  %637 = vmatmul.msk.f32.gmra.mxu3 %vm71_vm1, %v62_v49 }
  0x63   :  { %600 = vmatmul.msk.f32.gmra.mxu0 %vm71_vm1, %v25_v50  ;;  %612 = vmatmul.msk.f32.gmra.mxu1 %vm71_vm1, %v37_v51 }
  0x69   :  { %625 = vmatmul.msk.f32.gmra.mxu2 %vm71_vm1, %v50_v52 }
  0x88   :  { %v240_v54 = vpop.f32.mrf.mxu0  ;;  %v276_v55 = vpop.f32.mrf.mxu1 }
  0x89   :  { %v241_v56 = vadd.f32 %v882_v53, %v240_v54  ;;  %v277_v57 = vadd.f32 %v882_v53, %v276_v55 }
  0x8b   :  { %vm387_vm2 = vcmp.gt.f32.partialorder %v241_v56, 0.0  ;;  %v436_v58 = vmul.f32 0.01, %v241_v56  ;;  %vm399_vm3 = vcmp.gt.f32.partialorder %v277_v57, 0.0  ;;  %v448_v59 = vmul.f32 0.01, %v277_v57 }
  0x8c   :  { %v312_v60 = vpop.f32.mrf.mxu2  ;;  %v351_v61 = vpop.f32.mrf.mxu3 }
  0x8d   :  { %v313_v62 = vadd.f32 %v882_v53, %v312_v60  ;;  %v485_v63 = vsel %vm387_vm2, %v241_v56, %v436_v58  ;;  %v497_v0 = vsel %vm399_vm3, %v277_v57, %v448_v59  ;;  %v352_v1 = vadd.f32 %v882_v53, %v351_v61 }
  0x8e   :  { %535 = vst.msk [vmem:[%s1132_s3] sm:$0xff] %vm534_vm4, %v485_v63 }
  0x8f   :  { %vm411_vm5 = vcmp.gt.f32.partialorder %v313_v62, 0.0  ;;  %v460_v2 = vmul.f32 0.01, %v313_v62  ;;  %547 = vst.msk [vmem:[%s1132_s3 + $0x60] sm:$0xff] %vm534_vm4, %v497_v0  ;;  %vm424_vm6 = vcmp.gt.f32.partialorder %v352_v1, 0.0 }
  0x90   :  { %v473_v3 = vmul.f32 0.01, %v352_v1  ;;  %v243_v4 = vpop.f32.mrf.mxu0  ;;  %v279_v5 = vpop.f32.mrf.mxu1 }
  0x91   :  { %v509_v6 = vsel %vm411_vm5, %v313_v62, %v460_v2  ;;  %v244_v7 = vadd.f32 %v882_v53, %v243_v4  ;;  %v280_v8 = vadd.f32 %v882_v53, %v279_v5 }
  0x92   :  { %559 = vst.msk [vmem:[%s1132_s3 + $0xc0] sm:$0xff] %vm534_vm4, %v509_v6  ;;  %v522_v9 = vsel %vm424_vm6, %v352_v1, %v473_v3 }
  0x93   :  { %572 = vst.msk [vmem:[%s1132_s3 + $0x128] sm:$0xff] %vm534_vm4, %v522_v9  ;;  %vm388_vm7 = vcmp.gt.f32.partialorder %v244_v7, 0.0  ;;  %v437_v10 = vmul.f32 0.01, %v244_v7  ;;  %vm400_vm8 = vcmp.gt.f32.partialorder %v280_v8, 0.0 }
  0x94   :  { %v315_v11 = vpop.f32.mrf.mxu2  ;;  %v449_v12 = vmul.f32 0.01, %v280_v8  ;;  %v354_v13 = vpop.f32.mrf.mxu3 }
  0x95   :  { %v316_v14 = vadd.f32 %v882_v53, %v315_v11  ;;  %v486_v15 = vsel %vm388_vm7, %v244_v7, %v437_v10  ;;  %v355_v16 = vadd.f32 %v882_v53, %v354_v13 }
  0x96   :  { %536 = vst.msk [vmem:[%s1132_s3 + $0x8] sm:$0xff] %vm534_vm4, %v486_v15  ;;  %v498_v17 = vsel %vm400_vm8, %v280_v8, %v449_v12 }
  0x97   :  { %vm412_vm9 = vcmp.gt.f32.partialorder %v316_v14, 0.0  ;;  %v461_v18 = vmul.f32 0.01, %v316_v14  ;;  %548 = vst.msk [vmem:[%s1132_s3 + $0x68] sm:$0xff] %vm534_vm4, %v498_v17  ;;  %vm425_vm10 = vcmp.gt.f32.partialorder %v355_v16, 0.0 }
  0x98   :  { %v474_v19 = vmul.f32 0.01, %v355_v16  ;;  %v246_v20 = vpop.f32.mrf.mxu0  ;;  %v282_v21 = vpop.f32.mrf.mxu1 }
  0x99   :  { %v510_v22 = vsel %vm412_vm9, %v316_v14, %v461_v18  ;;  %v247_v23 = vadd.f32 %v882_v53, %v246_v20  ;;  %v283_v24 = vadd.f32 %v882_v53, %v282_v21 }
  0x9a   :  { %560 = vst.msk [vmem:[%s1132_s3 + $0xc8] sm:$0xff] %vm534_vm4, %v510_v22  ;;  %v523_v25 = vsel %vm425_vm10, %v355_v16, %v474_v19 }
  0x9b   :  { %573 = vst.msk [vmem:[%s1132_s3 + $0x130] sm:$0xff] %vm534_vm4, %v523_v25  ;;  %vm389_vm11 = vcmp.gt.f32.partialorder %v247_v23, 0.0  ;;  %v438_v26 = vmul.f32 0.01, %v247_v23  ;;  %vm401_vm12 = vcmp.gt.f32.partialorder %v283_v24, 0.0 }
  0x9c   :  { %v318_v27 = vpop.f32.mrf.mxu2  ;;  %v450_v28 = vmul.f32 0.01, %v283_v24  ;;  %v357_v29 = vpop.f32.mrf.mxu3 }
  0x9d   :  { %v319_v30 = vadd.f32 %v882_v53, %v318_v27  ;;  %v487_v31 = vsel %vm389_vm11, %v247_v23, %v438_v26  ;;  %v358_v32 = vadd.f32 %v882_v53, %v357_v29 }
  0x9e   :  { %537 = vst.msk [vmem:[%s1132_s3 + $0x10] sm:$0xff] %vm534_vm4, %v487_v31  ;;  %v499_v33 = vsel %vm401_vm12, %v283_v24, %v450_v28 }
  0x9f   :  { %vm413_vm13 = vcmp.gt.f32.partialorder %v319_v30, 0.0  ;;  %v462_v34 = vmul.f32 0.01, %v319_v30  ;;  %549 = vst.msk [vmem:[%s1132_s3 + $0x70] sm:$0xff] %vm534_vm4, %v499_v33  ;;  %vm426_vm14 = vcmp.gt.f32.partialorder %v358_v32, 0.0 }
  0xa0   :  { %v475_v35 = vmul.f32 0.01, %v358_v32  ;;  %v249_v36 = vpop.f32.mrf.mxu0  ;;  %v285_v37 = vpop.f32.mrf.mxu1 }
  0xa1   :  { %v511_v38 = vsel %vm413_vm13, %v319_v30, %v462_v34  ;;  %v250_v39 = vadd.f32 %v882_v53, %v249_v36  ;;  %v286_v40 = vadd.f32 %v882_v53, %v285_v37 }
  0xa2   :  { %561 = vst.msk [vmem:[%s1132_s3 + $0xd0] sm:$0xff] %vm534_vm4, %v511_v38  ;;  %v524_v41 = vsel %vm426_vm14, %v358_v32, %v475_v35 }
  0xa3   :  { %574 = vst.msk [vmem:[%s1132_s3 + $0x138] sm:$0xff] %vm534_vm4, %v524_v41  ;;  %vm390_vm15 = vcmp.gt.f32.partialorder %v250_v39, 0.0  ;;  %v439_v42 = vmul.f32 0.01, %v250_v39  ;;  %vm402_vm0 = vcmp.gt.f32.partialorder %v286_v40, 0.0 }
  0xa4   :  { %v321_v43 = vpop.f32.mrf.mxu2  ;;  %v451_v44 = vmul.f32 0.01, %v286_v40  ;;  %v360_v45 = vpop.f32.mrf.mxu3 }
  0xa5   :  { %v322_v46 = vadd.f32 %v882_v53, %v321_v43  ;;  %v488_v47 = vsel %vm390_vm15, %v250_v39, %v439_v42  ;;  %v361_v48 = vadd.f32 %v882_v53, %v360_v45 }
  0xa6   :  { %538 = vst.msk [vmem:[%s1132_s3 + $0x18] sm:$0xff] %vm534_vm4, %v488_v47  ;;  %v500_v49 = vsel %vm402_vm0, %v286_v40, %v451_v44 }
  0xa7   :  { %vm414_vm1 = vcmp.gt.f32.partialorder %v322_v46, 0.0  ;;  %v463_v50 = vmul.f32 0.01, %v322_v46  ;;  %550 = vst.msk [vmem:[%s1132_s3 + $0x78] sm:$0xff] %vm534_vm4, %v500_v49  ;;  %vm427_vm2 = vcmp.gt.f32.partialorder %v361_v48, 0.0 }
  0xa8   :  { %v476_v51 = vmul.f32 0.01, %v361_v48  ;;  %v252_v52 = vpop.f32.mrf.mxu0  ;;  %v288_v54 = vpop.f32.mrf.mxu1 }
  0xa9   :  { %v512_v55 = vsel %vm414_vm1, %v322_v46, %v463_v50  ;;  %v253_v56 = vadd.f32 %v882_v53, %v252_v52  ;;  %v289_v57 = vadd.f32 %v882_v53, %v288_v54 }
  0xaa   :  { %562 = vst.msk [vmem:[%s1132_s3 + $0xd8] sm:$0xff] %vm534_vm4, %v512_v55  ;;  %v525_v58 = vsel %vm427_vm2, %v361_v48, %v476_v51 }
  0xab   :  { %575 = vst.msk [vmem:[%s1132_s3 + $0x140] sm:$0xff] %vm534_vm4, %v525_v58  ;;  %vm391_vm3 = vcmp.gt.f32.partialorder %v253_v56, 0.0  ;;  %v440_v59 = vmul.f32 0.01, %v253_v56  ;;  %vm403_vm5 = vcmp.gt.f32.partialorder %v289_v57, 0.0 }
  0xac   :  { %v324_v60 = vpop.f32.mrf.mxu2  ;;  %v452_v61 = vmul.f32 0.01, %v289_v57  ;;  %v363_v62 = vpop.f32.mrf.mxu3 }
  0xad   :  { %v325_v63 = vadd.f32 %v882_v53, %v324_v60  ;;  %v489_v0 = vsel %vm391_vm3, %v253_v56, %v440_v59  ;;  %v364_v1 = vadd.f32 %v882_v53, %v363_v62 }
  0xae   :  { %539 = vst.msk [vmem:[%s1132_s3 + $0x20] sm:$0xff] %vm534_vm4, %v489_v0  ;;  %v501_v2 = vsel %vm403_vm5, %v289_v57, %v452_v61 }
  0xaf   :  { %vm415_vm6 = vcmp.gt.f32.partialorder %v325_v63, 0.0  ;;  %v464_v3 = vmul.f32 0.01, %v325_v63  ;;  %551 = vst.msk [vmem:[%s1132_s3 + $0x80] sm:$0xff] %vm534_vm4, %v501_v2  ;;  %vm428_vm7 = vcmp.gt.f32.partialorder %v364_v1, 0.0 }
  0xb0   :  { %v477_v4 = vmul.f32 0.01, %v364_v1  ;;  %v255_v5 = vpop.f32.mrf.mxu0  ;;  %v291_v6 = vpop.f32.mrf.mxu1 }
  0xb1   :  { %v513_v7 = vsel %vm415_vm6, %v325_v63, %v464_v3  ;;  %v256_v8 = vadd.f32 %v882_v53, %v255_v5  ;;  %v292_v9 = vadd.f32 %v882_v53, %v291_v6 }
  0xb2   :  { %563 = vst.msk [vmem:[%s1132_s3 + $0xe0] sm:$0xff] %vm534_vm4, %v513_v7  ;;  %v526_v10 = vsel %vm428_vm7, %v364_v1, %v477_v4 }
  0xb3   :  { %576 = vst.msk [vmem:[%s1132_s3 + $0x148] sm:$0xff] %vm534_vm4, %v526_v10  ;;  %vm392_vm8 = vcmp.gt.f32.partialorder %v256_v8, 0.0  ;;  %v441_v11 = vmul.f32 0.01, %v256_v8  ;;  %vm404_vm9 = vcmp.gt.f32.partialorder %v292_v9, 0.0 }
  0xb4   :  { %v327_v12 = vpop.f32.mrf.mxu2  ;;  %v453_v13 = vmul.f32 0.01, %v292_v9  ;;  %v366_v14 = vpop.f32.mrf.mxu3 }
  0xb5   :  { %v328_v15 = vadd.f32 %v882_v53, %v327_v12  ;;  %v490_v16 = vsel %vm392_vm8, %v256_v8, %v441_v11  ;;  %v367_v17 = vadd.f32 %v882_v53, %v366_v14 }
  0xb6   :  { %540 = vst.msk [vmem:[%s1132_s3 + $0x28] sm:$0xff] %vm534_vm4, %v490_v16  ;;  %v502_v18 = vsel %vm404_vm9, %v292_v9, %v453_v13 }
  0xb7   :  { %vm416_vm10 = vcmp.gt.f32.partialorder %v328_v15, 0.0  ;;  %v465_v19 = vmul.f32 0.01, %v328_v15  ;;  %552 = vst.msk [vmem:[%s1132_s3 + $0x88] sm:$0xff] %vm534_vm4, %v502_v18  ;;  %vm429_vm11 = vcmp.gt.f32.partialorder %v367_v17, 0.0 }
  0xb8   :  { %v478_v20 = vmul.f32 0.01, %v367_v17  ;;  %v258_v21 = vpop.f32.mrf.mxu0  ;;  %v294_v22 = vpop.f32.mrf.mxu1 }
  0xb9   :  { %v514_v23 = vsel %vm416_vm10, %v328_v15, %v465_v19  ;;  %v259_v24 = vadd.f32 %v882_v53, %v258_v21  ;;  %v295_v25 = vadd.f32 %v882_v53, %v294_v22 }
  0xba   :  { %564 = vst.msk [vmem:[%s1132_s3 + $0xe8] sm:$0xff] %vm534_vm4, %v514_v23  ;;  %v527_v26 = vsel %vm429_vm11, %v367_v17, %v478_v20 }
  0xbb   :  { %577 = vst.msk [vmem:[%s1132_s3 + $0x150] sm:$0xff] %vm534_vm4, %v527_v26  ;;  %vm393_vm12 = vcmp.gt.f32.partialorder %v259_v24, 0.0  ;;  %v442_v27 = vmul.f32 0.01, %v259_v24  ;;  %vm405_vm13 = vcmp.gt.f32.partialorder %v295_v25, 0.0 }
  0xbc   :  { %v330_v28 = vpop.f32.mrf.mxu2  ;;  %v454_v29 = vmul.f32 0.01, %v295_v25  ;;  %v369_v30 = vpop.f32.mrf.mxu3 }
  0xbd   :  { %v331_v31 = vadd.f32 %v882_v53, %v330_v28  ;;  %v491_v32 = vsel %vm393_vm12, %v259_v24, %v442_v27  ;;  %v370_v33 = vadd.f32 %v882_v53, %v369_v30 }
  0xbe   :  { %541 = vst.msk [vmem:[%s1132_s3 + $0x30] sm:$0xff] %vm534_vm4, %v491_v32  ;;  %v503_v34 = vsel %vm405_vm13, %v295_v25, %v454_v29 }
  0xbf   :  { %vm417_vm14 = vcmp.gt.f32.partialorder %v331_v31, 0.0  ;;  %v466_v35 = vmul.f32 0.01, %v331_v31  ;;  %553 = vst.msk [vmem:[%s1132_s3 + $0x90] sm:$0xff] %vm534_vm4, %v503_v34  ;;  %vm430_vm15 = vcmp.gt.f32.partialorder %v370_v33, 0.0 }
  0xc0   :  { %v479_v36 = vmul.f32 0.01, %v370_v33  ;;  %v261_v37 = vpop.f32.mrf.mxu0  ;;  %v297_v38 = vpop.f32.mrf.mxu1 }
  0xc1   :  { %v515_v39 = vsel %vm417_vm14, %v331_v31, %v466_v35  ;;  %v262_v40 = vadd.f32 %v882_v53, %v261_v37  ;;  %v298_v41 = vadd.f32 %v882_v53, %v297_v38 }
  0xc2   :  { %565 = vst.msk [vmem:[%s1132_s3 + $0xf0] sm:$0xff] %vm534_vm4, %v515_v39  ;;  %v528_v42 = vsel %vm430_vm15, %v370_v33, %v479_v36 }
  0xc3   :  { %578 = vst.msk [vmem:[%s1132_s3 + $0x158] sm:$0xff] %vm534_vm4, %v528_v42  ;;  %vm394_vm0 = vcmp.gt.f32.partialorder %v262_v40, 0.0  ;;  %v443_v43 = vmul.f32 0.01, %v262_v40  ;;  %vm406_vm1 = vcmp.gt.f32.partialorder %v298_v41, 0.0 }
  0xc4   :  { %v333_v44 = vpop.f32.mrf.mxu2  ;;  %v455_v45 = vmul.f32 0.01, %v298_v41  ;;  %v372_v46 = vpop.f32.mrf.mxu3 }
  0xc5   :  { %v334_v47 = vadd.f32 %v882_v53, %v333_v44  ;;  %v492_v48 = vsel %vm394_vm0, %v262_v40, %v443_v43  ;;  %v373_v49 = vadd.f32 %v882_v53, %v372_v46 }
  0xc6   :  { %542 = vst.msk [vmem:[%s1132_s3 + $0x38] sm:$0xff] %vm534_vm4, %v492_v48  ;;  %v504_v50 = vsel %vm406_vm1, %v298_v41, %v455_v45 }
  0xc7   :  { %vm418_vm2 = vcmp.gt.f32.partialorder %v334_v47, 0.0  ;;  %v467_v51 = vmul.f32 0.01, %v334_v47  ;;  %554 = vst.msk [vmem:[%s1132_s3 + $0x98] sm:$0xff] %vm534_vm4, %v504_v50  ;;  %vm431_vm3 = vcmp.gt.f32.partialorder %v373_v49, 0.0 }
  0xc8   :  { %v480_v52 = vmul.f32 0.01, %v373_v49  ;;  %v264_v54 = vpop.f32.mrf.mxu0  ;;  %v300_v55 = vpop.f32.mrf.mxu1 }
  0xc9   :  { %v516_v56 = vsel %vm418_vm2, %v334_v47, %v467_v51  ;;  %v265_v57 = vadd.f32 %v882_v53, %v264_v54  ;;  %v301_v58 = vadd.f32 %v882_v53, %v300_v55 }
  0xca   :  { %566 = vst.msk [vmem:[%s1132_s3 + $0xf8] sm:$0xff] %vm534_vm4, %v516_v56  ;;  %v529_v59 = vsel %vm431_vm3, %v373_v49, %v480_v52 }
  0xcb   :  { %579 = vst.msk [vmem:[%s1132_s3 + $0x160] sm:$0xff] %vm534_vm4, %v529_v59  ;;  %vm395_vm5 = vcmp.gt.f32.partialorder %v265_v57, 0.0  ;;  %v444_v60 = vmul.f32 0.01, %v265_v57  ;;  %vm407_vm6 = vcmp.gt.f32.partialorder %v301_v58, 0.0 }
  0xcc   :  { %v336_v61 = vpop.f32.mrf.mxu2  ;;  %v456_v62 = vmul.f32 0.01, %v301_v58  ;;  %v375_v63 = vpop.f32.mrf.mxu3 }
  0xcd   :  { %v337_v0 = vadd.f32 %v882_v53, %v336_v61  ;;  %v493_v1 = vsel %vm395_vm5, %v265_v57, %v444_v60  ;;  %v376_v2 = vadd.f32 %v882_v53, %v375_v63 }
  0xce   :  { %543 = vst.msk [vmem:[%s1132_s3 + $0x40] sm:$0xff] %vm534_vm4, %v493_v1  ;;  %v505_v3 = vsel %vm407_vm6, %v301_v58, %v456_v62 }
  0xcf   :  { %vm419_vm7 = vcmp.gt.f32.partialorder %v337_v0, 0.0  ;;  %v468_v4 = vmul.f32 0.01, %v337_v0  ;;  %555 = vst.msk [vmem:[%s1132_s3 + $0xa0] sm:$0xff] %vm534_vm4, %v505_v3  ;;  %vm432_vm8 = vcmp.gt.f32.partialorder %v376_v2, 0.0 }
  0xd0   :  { %v481_v5 = vmul.f32 0.01, %v376_v2  ;;  %v267_v6 = vpop.f32.mrf.mxu0  ;;  %v303_v7 = vpop.f32.mrf.mxu1 }
  0xd1   :  { %v517_v8 = vsel %vm419_vm7, %v337_v0, %v468_v4  ;;  %v268_v9 = vadd.f32 %v882_v53, %v267_v6  ;;  %v304_v10 = vadd.f32 %v882_v53, %v303_v7 }
  0xd2   :  { %567 = vst.msk [vmem:[%s1132_s3 + $0x100] sm:$0xff] %vm534_vm4, %v517_v8  ;;  %v530_v11 = vsel %vm432_vm8, %v376_v2, %v481_v5 }
  0xd3   :  { %580 = vst.msk [vmem:[%s1132_s3 + $0x168] sm:$0xff] %vm534_vm4, %v530_v11  ;;  %vm396_vm9 = vcmp.gt.f32.partialorder %v268_v9, 0.0  ;;  %v445_v12 = vmul.f32 0.01, %v268_v9  ;;  %vm408_vm10 = vcmp.gt.f32.partialorder %v304_v10, 0.0 }
  0xd4   :  { %v339_v13 = vpop.f32.mrf.mxu2  ;;  %v457_v14 = vmul.f32 0.01, %v304_v10  ;;  %v378_v15 = vpop.f32.mrf.mxu3 }
  0xd5   :  { %v340_v16 = vadd.f32 %v882_v53, %v339_v13  ;;  %v494_v17 = vsel %vm396_vm9, %v268_v9, %v445_v12  ;;  %v379_v18 = vadd.f32 %v882_v53, %v378_v15 }
  0xd6   :  { %544 = vst.msk [vmem:[%s1132_s3 + $0x48] sm:$0xff] %vm534_vm4, %v494_v17  ;;  %v506_v19 = vsel %vm408_vm10, %v304_v10, %v457_v14 }
  0xd7   :  { %vm420_vm11 = vcmp.gt.f32.partialorder %v340_v16, 0.0  ;;  %v469_v20 = vmul.f32 0.01, %v340_v16  ;;  %556 = vst.msk [vmem:[%s1132_s3 + $0xa8] sm:$0xff] %vm534_vm4, %v506_v19  ;;  %vm433_vm12 = vcmp.gt.f32.partialorder %v379_v18, 0.0 }
  0xd8   :  { %v482_v21 = vmul.f32 0.01, %v379_v18  ;;  %v270_v22 = vpop.f32.mrf.mxu0  ;;  %v306_v23 = vpop.f32.mrf.mxu1 }
  0xd9   :  { %v518_v24 = vsel %vm420_vm11, %v340_v16, %v469_v20  ;;  %v271_v25 = vadd.f32 %v882_v53, %v270_v22  ;;  %v307_v26 = vadd.f32 %v882_v53, %v306_v23 }
  0xda   :  { %568 = vst.msk [vmem:[%s1132_s3 + $0x108] sm:$0xff] %vm534_vm4, %v518_v24  ;;  %v531_v27 = vsel %vm433_vm12, %v379_v18, %v482_v21 }
  0xdb   :  { %581 = vst.msk [vmem:[%s1132_s3 + $0x170] sm:$0xff] %vm534_vm4, %v531_v27  ;;  %vm397_vm13 = vcmp.gt.f32.partialorder %v271_v25, 0.0  ;;  %v446_v28 = vmul.f32 0.01, %v271_v25  ;;  %vm409_vm14 = vcmp.gt.f32.partialorder %v307_v26, 0.0 }
  0xdc   :  { %v342_v29 = vpop.f32.mrf.mxu2  ;;  %v458_v30 = vmul.f32 0.01, %v307_v26  ;;  %v381_v31 = vpop.f32.mrf.mxu3 }
  0xdd   :  { %v343_v32 = vadd.f32 %v882_v53, %v342_v29  ;;  %v495_v33 = vsel %vm397_vm13, %v271_v25, %v446_v28  ;;  %v382_v34 = vadd.f32 %v882_v53, %v381_v31 }
  0xde   :  { %545 = vst.msk [vmem:[%s1132_s3 + $0x50] sm:$0xff] %vm534_vm4, %v495_v33  ;;  %v507_v35 = vsel %vm409_vm14, %v307_v26, %v458_v30 }
  0xdf   :  { %vm421_vm15 = vcmp.gt.f32.partialorder %v343_v32, 0.0  ;;  %v470_v36 = vmul.f32 0.01, %v343_v32  ;;  %557 = vst.msk [vmem:[%s1132_s3 + $0xb0] sm:$0xff] %vm534_vm4, %v507_v35  ;;  %vm434_vm0 = vcmp.gt.f32.partialorder %v382_v34, 0.0 }
  0xe0   :  { %v483_v37 = vmul.f32 0.01, %v382_v34  ;;  %v273_v38 = vpop.f32.mrf.mxu0  ;;  %v309_v39 = vpop.f32.mrf.mxu1 }
  0xe1   :  { %v519_v40 = vsel %vm421_vm15, %v343_v32, %v470_v36  ;;  %v274_v41 = vadd.f32 %v882_v53, %v273_v38  ;;  %v310_v42 = vadd.f32 %v882_v53, %v309_v39 }
  0xe2   :  { %569 = vst.msk [vmem:[%s1132_s3 + $0x110] sm:$0xff] %vm534_vm4, %v519_v40  ;;  %v532_v43 = vsel %vm434_vm0, %v382_v34, %v483_v37 }
  0xe3   :  { %582 = vst.msk [vmem:[%s1132_s3 + $0x178] sm:$0xff] %vm534_vm4, %v532_v43  ;;  %vm398_vm1 = vcmp.gt.f32.partialorder %v274_v41, 0.0  ;;  %v447_v44 = vmul.f32 0.01, %v274_v41  ;;  %vm410_vm2 = vcmp.gt.f32.partialorder %v310_v42, 0.0 }
  0xe4   :  { %v345_v45 = vpop.f32.mrf.mxu2  ;;  %v459_v46 = vmul.f32 0.01, %v310_v42  ;;  %v384_v47 = vpop.f32.mrf.mxu3 }
  0xe5   :  { %v346_v48 = vadd.f32 %v882_v53, %v345_v45  ;;  %v496_v49 = vsel %vm398_vm1, %v274_v41, %v447_v44  ;;  %v385_v50 = vadd.f32 %v882_v53, %v384_v47 }
  0xe6   :  { %546 = vst.msk [vmem:[%s1132_s3 + $0x58] sm:$0xff] %vm534_vm4, %v496_v49  ;;  %v508_v51 = vsel %vm410_vm2, %v310_v42, %v459_v46 }
  0xe7   :  { %vm422_vm3 = vcmp.gt.f32.partialorder %v346_v48, 0.0  ;;  %v471_v52 = vmul.f32 0.01, %v346_v48  ;;  %558 = vst.msk [vmem:[%s1132_s3 + $0xb8] sm:$0xff] %vm534_vm4, %v508_v51  ;;  %vm435_vm5 = vcmp.gt.f32.partialorder %v385_v50, 0.0 }
  0xe8   :  { %v484_v54 = vmul.f32 0.01, %v385_v50 }
  0xe9   :  { %v520_v55 = vsel %vm422_vm3, %v346_v48, %v471_v52 }
  0xea   :  { %570 = vst.msk [vmem:[%s1132_s3 + $0x118] sm:$0xff] %vm534_vm4, %v520_v55  ;;  %v533_v56 = vsel %vm435_vm5, %v385_v50, %v484_v54 }
  0xeb   :  { %583 = vst.msk [vmem:[%s1132_s3 + $0x180] sm:$0xff] %vm534_vm4, %v533_v56 }
  0xec   :  { %v348_v57 = vpop.f32.mrf.mxu2 }
  0xed   :  { %v349_v58 = vadd.f32 %v882_v53, %v348_v57 }
  0xef   :  { %vm423_vm6 = vcmp.gt.f32.partialorder %v349_v58, 0.0  ;;  %v472_v59 = vmul.f32 0.01, %v349_v58 }
  0xf1   :  { %v521_v60 = vsel %vm423_vm6, %v349_v58, %v472_v59 }
  0xf2   :  { %571 = vst.msk [vmem:[%s1132_s3 + $0x120] sm:$0xff] %vm534_vm4, %v521_v60 }

// kernel: cae_forward.8
= control target key start
LH: loop header
LB: loop body
LE: loop exit
PB: predicated region body
PF: predicated region fallthrough
CT: control target
= control target key end

     0   :  { %vm209_vm0 = vcmask 261120   ;;  %vm680_vm2 = vcmask 523264   ;;  %vm693_vm15 = vcmask 517120   ;;  %s1540_s1 = inlined_call_operand.vmem [shape: f32[800,64], index: 1, kind: input, shape index: {}]   ;;  %s1541_s0 = inlined_call_operand.vmem [shape: f32[98,800], index: 0, kind: input, shape index: {}]   ;;  %s1542_s2 = inlined_call_operand.vmem [shape: f32[1,64], index: 2, kind: input, shape index: {}]   ;;  %s1543_s3 = inlined_call_operand.vmem [shape: f32[98,64], index: 3, kind: output, shape index: {}]  }
   0x1   :  { %v120_v0 = vld [vmem:[%s1540_s1 + $0x78] sm:$0xff]  ;;  %v119_v3 = vld [vmem:[%s1540_s1 + $0x70] sm:$0xff]  ;;  %v118_v6 = vld [vmem:[%s1540_s1 + $0x68] sm:$0xff] }
   0x2   :  { %v136_v1 = vld [vmem:[%s1540_s1 + $0xf8] sm:$0xff]  ;;  %249 = vmatpush.msra.mxu0 %v120_v0  ;;  %712 = vmatpush.msra.mxu3 %v120_v0  ;;  %v135_v4 = vld [vmem:[%s1540_s1 + $0xf0] sm:$0xff]  ;;  %v134_v7 = vld [vmem:[%s1540_s1 + $0xe8] sm:$0xff] }
   0x3   :  { %v152_v2 = vld [vmem:[%s1540_s1 + $0x178] sm:$0xff]  ;;  %v151_v5 = vld [vmem:[%s1540_s1 + $0x170] sm:$0xff]  ;;  %305 = vmatpush.msra.mxu1 %v136_v1  ;;  %v150_v8 = vld [vmem:[%s1540_s1 + $0x168] sm:$0xff] }
   0x4   :  { %361 = vmatpush.msra.mxu2 %v152_v2  ;;  %250 = vmatpush.msra.mxu0 %v119_v3  ;;  %v117_v9 = vld [vmem:[%s1540_s1 + $0x60] sm:$0xff]  ;;  %v116_v12 = vld [vmem:[%s1540_s1 + $0x58] sm:$0xff]  ;;  %v115_v15 = vld [vmem:[%s1540_s1 + $0x50] sm:$0xff] }
   0x5   :  { %713 = vmatpush.msra.mxu3 %v119_v3  ;;  %306 = vmatpush.msra.mxu1 %v135_v4  ;;  %v133_v10 = vld [vmem:[%s1540_s1 + $0xe0] sm:$0xff]  ;;  %v132_v13 = vld [vmem:[%s1540_s1 + $0xd8] sm:$0xff]  ;;  %v131_v16 = vld [vmem:[%s1540_s1 + $0xd0] sm:$0xff] }
   0x6   :  { %362 = vmatpush.msra.mxu2 %v151_v5  ;;  %251 = vmatpush.msra.mxu0 %v118_v6  ;;  %v149_v11 = vld [vmem:[%s1540_s1 + $0x160] sm:$0xff]  ;;  %v148_v14 = vld [vmem:[%s1540_s1 + $0x158] sm:$0xff]  ;;  %v147_v17 = vld [vmem:[%s1540_s1 + $0x150] sm:$0xff] }
   0x7   :  { %714 = vmatpush.msra.mxu3 %v118_v6  ;;  %307 = vmatpush.msra.mxu1 %v134_v7  ;;  %v114_v18 = vld [vmem:[%s1540_s1 + $0x48] sm:$0xff]  ;;  %v113_v21 = vld [vmem:[%s1540_s1 + $0x40] sm:$0xff]  ;;  %v112_v24 = vld [vmem:[%s1540_s1 + $0x38] sm:$0xff] }
   0x8   :  { %363 = vmatpush.msra.mxu2 %v150_v8  ;;  %252 = vmatpush.msra.mxu0 %v117_v9  ;;  %v130_v19 = vld [vmem:[%s1540_s1 + $0xc8] sm:$0xff]  ;;  %v129_v22 = vld [vmem:[%s1540_s1 + $0xc0] sm:$0xff]  ;;  %v128_v25 = vld [vmem:[%s1540_s1 + $0xb8] sm:$0xff] }
   0x9   :  { %715 = vmatpush.msra.mxu3 %v117_v9  ;;  %308 = vmatpush.msra.mxu1 %v133_v10  ;;  %v146_v20 = vld [vmem:[%s1540_s1 + $0x148] sm:$0xff]  ;;  %v145_v23 = vld [vmem:[%s1540_s1 + $0x140] sm:$0xff]  ;;  %v144_v26 = vld [vmem:[%s1540_s1 + $0x138] sm:$0xff] }
   0xa   :  { %364 = vmatpush.msra.mxu2 %v149_v11  ;;  %253 = vmatpush.msra.mxu0 %v116_v12  ;;  %v111_v27 = vld [vmem:[%s1540_s1 + $0x30] sm:$0xff]  ;;  %v110_v30 = vld [vmem:[%s1540_s1 + $0x28] sm:$0xff]  ;;  %v109_v33 = vld [vmem:[%s1540_s1 + $0x20] sm:$0xff] }
   0xb   :  { %716 = vmatpush.msra.mxu3 %v116_v12  ;;  %309 = vmatpush.msra.mxu1 %v132_v13  ;;  %v127_v28 = vld [vmem:[%s1540_s1 + $0xb0] sm:$0xff]  ;;  %v126_v31 = vld [vmem:[%s1540_s1 + $0xa8] sm:$0xff]  ;;  %v125_v34 = vld [vmem:[%s1540_s1 + $0xa0] sm:$0xff] }
   0xc   :  { %365 = vmatpush.msra.mxu2 %v148_v14  ;;  %254 = vmatpush.msra.mxu0 %v115_v15  ;;  %v143_v29 = vld [vmem:[%s1540_s1 + $0x130] sm:$0xff]  ;;  %v142_v32 = vld [vmem:[%s1540_s1 + $0x128] sm:$0xff]  ;;  %v141_v35 = vld [vmem:[%s1540_s1 + $0x120] sm:$0xff] }
   0xd   :  { %717 = vmatpush.msra.mxu3 %v115_v15  ;;  %310 = vmatpush.msra.mxu1 %v131_v16  ;;  %v108_v36 = vld [vmem:[%s1540_s1 + $0x18] sm:$0xff]  ;;  %v107_v39 = vld [vmem:[%s1540_s1 + $0x10] sm:$0xff]  ;;  %v106_v42 = vld [vmem:[%s1540_s1 + $0x8] sm:$0xff] }
   0xe   :  { %366 = vmatpush.msra.mxu2 %v147_v17  ;;  %255 = vmatpush.msra.mxu0 %v114_v18  ;;  %v124_v37 = vld [vmem:[%s1540_s1 + $0x98] sm:$0xff]  ;;  %v123_v40 = vld [vmem:[%s1540_s1 + $0x90] sm:$0xff]  ;;  %v122_v43 = vld [vmem:[%s1540_s1 + $0x88] sm:$0xff] }
   0xf   :  { %718 = vmatpush.msra.mxu3 %v114_v18  ;;  %311 = vmatpush.msra.mxu1 %v130_v19  ;;  %v140_v38 = vld [vmem:[%s1540_s1 + $0x118] sm:$0xff]  ;;  %v139_v41 = vld [vmem:[%s1540_s1 + $0x110] sm:$0xff]  ;;  %v138_v44 = vld [vmem:[%s1540_s1 + $0x108] sm:$0xff] }
  0x10   :  { %367 = vmatpush.msra.mxu2 %v146_v20  ;;  %256 = vmatpush.msra.mxu0 %v113_v21  ;;  %v105_v45 = vld [vmem:[%s1540_s1] sm:$0xff]  ;;  %v15_v50 = vld [vmem:[%s1541_s0 + $0x8] sm:$0xff]  ;;  %v16_v51 = vld [vmem:[%s1541_s0 + $0x10] sm:$0xff] }
  0x11   :  { %719 = vmatpush.msra.mxu3 %v113_v21  ;;  %312 = vmatpush.msra.mxu1 %v129_v22  ;;  %v121_v46 = vld [vmem:[%s1540_s1 + $0x80] sm:$0xff]  ;;  %v928_v52 = vld [vmem:[%s1540_s1 + $0x318] sm:$0xff]  ;;  %v183_v56 = vld [vmem:[%s1540_s1 + $0x270] sm:$0xff] }
  0x12   :  { %368 = vmatpush.msra.mxu2 %v145_v23  ;;  %257 = vmatpush.msra.mxu0 %v112_v24  ;;  %v137_v47 = vld [vmem:[%s1540_s1 + $0x100] sm:$0xff]  ;;  %v184_v53 = vld [vmem:[%s1540_s1 + $0x278] sm:$0xff]  ;;  %v947_v57 = vld [vmem:[%s1540_s1 + $0x310] sm:$0xff] }
  0x13   :  { %720 = vmatpush.msra.mxu3 %v112_v24  ;;  %313 = vmatpush.msra.mxu1 %v128_v25  ;;  %v14_v48 = vld [vmem:[%s1541_s0] sm:$0xff]  ;;  %v168_v54 = vld [vmem:[%s1540_s1 + $0x1f8] sm:$0xff]  ;;  %v167_v58 = vld [vmem:[%s1540_s1 + $0x1f0] sm:$0xff] }
  0x14   :  { %369 = vmatpush.msra.mxu2 %v144_v26  ;;  %258 = vmatpush.msra.mxu0 %v111_v27  ;;  %v42_v49 = vld [vmem:[%s1541_s0 + $0xe0] sm:$0xff]  ;;  %v939_v55 = vld [vmem:[%s1540_s1 + $0x2f8] sm:$0xff]  ;;  %v956_v59 = vld [vmem:[%s1540_s1 + $0x2f0] sm:$0xff] }
  0x15   :  { %721 = vmatpush.msra.mxu3 %v111_v27  ;;  %314 = vmatpush.msra.mxu1 %v127_v28  ;;  %v182_v60 = vld [vmem:[%s1540_s1 + $0x268] sm:$0xff]  ;;  %v181_v63 = vld [vmem:[%s1540_s1 + $0x260] sm:$0xff]  ;;  %v49_v0 = vld [vmem:[%s1541_s0 + $0x118] sm:$0xff] }
  0x16   :  { %370 = vmatpush.msra.mxu2 %v143_v29  ;;  %259 = vmatpush.msra.mxu0 %v110_v30  ;;  %v166_v61 = vld [vmem:[%s1540_s1 + $0x1e8] sm:$0xff]  ;;  %v21_v1 = vld [vmem:[%s1541_s0 + $0x38] sm:$0xff]  ;;  %v22_v2 = vld [vmem:[%s1541_s0 + $0x40] sm:$0xff] }
  0x17   :  { %722 = vmatpush.msra.mxu3 %v110_v30  ;;  %315 = vmatpush.msra.mxu1 %v126_v31  ;;  %v968_v62 = vld [vmem:[%s1540_s1 + $0x2e8] sm:$0xff]  ;;  %v180_v4 = vld [vmem:[%s1540_s1 + $0x258] sm:$0xff]  ;;  %v165_v5 = vld [vmem:[%s1540_s1 + $0x1e0] sm:$0xff] }
  0x18   :  { %371 = vmatpush.msra.mxu2 %v142_v32  ;;  %260 = vmatpush.msra.mxu0 %v109_v33  ;;  %v23_v3 = vld [vmem:[%s1541_s0 + $0x48] sm:$0xff]  ;;  %v997_v6 = vld [vmem:[%s1540_s1 + $0x2e0] sm:$0xff]  ;;  %v179_v7 = vld [vmem:[%s1540_s1 + $0x250] sm:$0xff] }
  0x19   :  { %723 = vmatpush.msra.mxu3 %v109_v33  ;;  %316 = vmatpush.msra.mxu1 %v125_v34  ;;  %v164_v8 = vld [vmem:[%s1540_s1 + $0x1d8] sm:$0xff]  ;;  %v178_v10 = vld [vmem:[%s1540_s1 + $0x248] sm:$0xff]  ;;  %v163_v11 = vld [vmem:[%s1540_s1 + $0x1d0] sm:$0xff] }
  0x1a   :  { %372 = vmatpush.msra.mxu2 %v141_v35  ;;  %261 = vmatpush.msra.mxu0 %v108_v36  ;;  %v1008_v9 = vld [vmem:[%s1540_s1 + $0x2d8] sm:$0xff]  ;;  %v1020_v12 = vld [vmem:[%s1540_s1 + $0x2d0] sm:$0xff]  ;;  %v177_v13 = vld [vmem:[%s1540_s1 + $0x240] sm:$0xff] }
  0x1b   :  { %724 = vmatpush.msra.mxu3 %v108_v36  ;;  %317 = vmatpush.msra.mxu1 %v124_v37  ;;  %v56_v14 = vld [vmem:[%s1541_s0 + $0x150] sm:$0xff]  ;;  %v29_v16 = vld [vmem:[%s1541_s0 + $0x78] sm:$0xff]  ;;  %v30_v17 = vld [vmem:[%s1541_s0 + $0x80] sm:$0xff] }
  0x1c   :  { %373 = vmatpush.msra.mxu2 %v140_v38  ;;  %262 = vmatpush.msra.mxu0 %v107_v39  ;;  %v28_v15 = vld [vmem:[%s1541_s0 + $0x70] sm:$0xff]  ;;  %v176_v18 = vld [vmem:[%s1540_s1 + $0x238] sm:$0xff]  ;;  %v162_v19 = vld [vmem:[%s1540_s1 + $0x1c8] sm:$0xff] }
  0x1d   :  { %725 = vmatpush.msra.mxu3 %v107_v39  ;;  %318 = vmatpush.msra.mxu1 %v123_v40  ;;  %v1048_v20 = vld [vmem:[%s1540_s1 + $0x2c8] sm:$0xff]  ;;  %v175_v21 = vld [vmem:[%s1540_s1 + $0x230] sm:$0xff]  ;;  %v161_v22 = vld [vmem:[%s1540_s1 + $0x1c0] sm:$0xff] }
  0x1e   :  { %374 = vmatpush.msra.mxu2 %v139_v41  ;;  %263 = vmatpush.msra.mxu0 %v106_v42  ;;  %v1059_v23 = vld [vmem:[%s1540_s1 + $0x2c0] sm:$0xff]  ;;  %v1064_v24 = vld [vmem:[%s1540_s1 + $0x308] sm:$0xff]  ;;  %v160_v26 = vld [vmem:[%s1540_s1 + $0x1b8] sm:$0xff] }
  0x1f   :  { %726 = vmatpush.msra.mxu3 %v106_v42  ;;  %319 = vmatpush.msra.mxu1 %v122_v43  ;;  %v174_v25 = vld [vmem:[%s1540_s1 + $0x228] sm:$0xff]  ;;  %v173_v27 = vld [vmem:[%s1540_s1 + $0x220] sm:$0xff]  ;;  %v36_v30 = vld [vmem:[%s1541_s0 + $0xb0] sm:$0xff] }
  0x20   :  { %375 = vmatpush.msra.mxu2 %v138_v44  ;;  %264 = vmatpush.msra.mxu0 %v105_v45  ;;  %v63_v28 = vld [vmem:[%s1541_s0 + $0x188] sm:$0xff]  ;;  %v37_v31 = vld [vmem:[%s1541_s0 + $0xb8] sm:$0xff]  ;;  %v159_v33 = vld [vmem:[%s1540_s1 + $0x1b0] sm:$0xff] }
  0x21   :  { %727 = vmatpush.msra.mxu3 %v105_v45  ;;  %320 = vmatpush.msra.mxu1 %v121_v46  ;;  %v35_v29 = vld [vmem:[%s1541_s0 + $0xa8] sm:$0xff]  ;;  %v172_v32 = vld [vmem:[%s1540_s1 + $0x218] sm:$0xff]  ;;  %v171_v34 = vld [vmem:[%s1540_s1 + $0x210] sm:$0xff] }
  0x22   :  { %376 = vmatpush.msra.mxu2 %v137_v47  ;;  %265 = vmatmul.f32.vlgmr.msra.gmra.mxu0 %v14_v48  ;;  %v158_v35 = vld [vmem:[%s1540_s1 + $0x1a8] sm:$0xff]  ;;  %v192_v36 = vld [vmem:[%s1540_s1 + $0x2b8] sm:$0xff]  ;;  %v191_v38 = vld [vmem:[%s1540_s1 + $0x2b0] sm:$0xff] }
  0x23   :  { %277 = vmatmul.f32.vlgmr.msra.gmra.mxu3 %v42_v49  ;;  %321 = vmatmul.f32.vlgmr.msra.gmra.mxu1 %v15_v50  ;;  %v170_v37 = vld [vmem:[%s1540_s1 + $0x208] sm:$0xff]  ;;  %v157_v39 = vld [vmem:[%s1540_s1 + $0x1a0] sm:$0xff]  ;;  %v44_v44 = vld [vmem:[%s1541_s0 + $0xf0] sm:$0xff] }
  0x24   :  { %377 = vmatmul.f32.vlgmr.msra.gmra.mxu2 %v16_v51  ;;  %473 = vmatpush.msrb.mxu0 %v184_v53  ;;  %v169_v40 = vld [vmem:[%s1540_s1 + $0x200] sm:$0xff]  ;;  %v43_v42 = vld [vmem:[%s1541_s0 + $0xe8] sm:$0xff]  ;;  %v156_v45 = vld [vmem:[%s1540_s1 + $0x198] sm:$0xff] }
  0x25   :  { %744 = vmatpush.msrb.mxu2 %v928_v52  ;;  %417 = vmatpush.msrb.mxu3 %v168_v54  ;;  %v70_v41 = vld [vmem:[%s1541_s0 + $0x1c0] sm:$0xff]  ;;  %v155_v46 = vld [vmem:[%s1540_s1 + $0x190] sm:$0xff]  ;;  %v190_v47 = vld [vmem:[%s1540_s1 + $0x2a8] sm:$0xff] }
  0x26   :  { %728 = vmatpush.msrb.mxu1 %v939_v55  ;;  %474 = vmatpush.msrb.mxu0 %v183_v56  ;;  %v18_v43 = vld [vmem:[%s1541_s0 + $0x20] sm:$0xff]  ;;  %v154_v48 = vld [vmem:[%s1540_s1 + $0x188] sm:$0xff]  ;;  %v77_v49 = vld [vmem:[%s1541_s0 + $0x1f8] sm:$0xff] }
  0x27   :  { %745 = vmatpush.msrb.mxu2 %v947_v57  ;;  %418 = vmatpush.msrb.mxu3 %v167_v58  ;;  %v50_v50 = vld [vmem:[%s1541_s0 + $0x120] sm:$0xff]  ;;  %v25_v51 = vld [vmem:[%s1541_s0 + $0x58] sm:$0xff]  ;;  %v51_v53 = vld [vmem:[%s1541_s0 + $0x128] sm:$0xff] }
  0x28   :  { %729 = vmatpush.msrb.mxu1 %v956_v59  ;;  %475 = vmatpush.msrb.mxu0 %v182_v60  ;;  %v153_v54 = vld [vmem:[%s1540_s1 + $0x180] sm:$0xff]  ;;  %v84_v58 = vld [vmem:[%s1541_s0 + $0x230] sm:$0xff] }
  0x29   :  { %419 = vmatpush.msrb.mxu3 %v166_v61  ;;  %746 = vmatpush.msrb.mxu2 %v1064_v24  ;;  %v201_v56 = vld [vmem:[%s1540_s1 + $0x300] sm:$0xff]  ;;  %v32_v60 = vld [vmem:[%s1541_s0 + $0x90] sm:$0xff] }
  0x2a   :  { %730 = vmatpush.msrb.mxu1 %v968_v62  ;;  %476 = vmatpush.msrb.mxu0 %v181_v63  ;;  %v58_v61 = vld [vmem:[%s1541_s0 + $0x160] sm:$0xff]  ;;  %v91_v63 = vld [vmem:[%s1541_s0 + $0x268] sm:$0xff] }
  0x2b   :  { %280 = vmatmul.f32.gmra.mxu3 %v49_v0  ;;  %268 = vmatmul.f32.gmra.mxu0 %v21_v1  ;;  %v64_v0 = vld [vmem:[%s1541_s0 + $0x190] sm:$0xff]  ;;  %v39_v1 = vld [vmem:[%s1541_s0 + $0xc8] sm:$0xff] }
  0x2c   :  { %324 = vmatmul.f32.gmra.mxu1 %v22_v2  ;;  %380 = vmatmul.f32.gmra.mxu2 %v23_v3  ;;  %v65_v2 = vld [vmem:[%s1541_s0 + $0x198] sm:$0xff]  ;;  %v187_v3 = vld [vmem:[%s1540_s1 + $0x290] sm:$0xff] }
  0x2d   :  { %477 = vmatpush.msrb.mxu0 %v180_v4  ;;  %420 = vmatpush.msrb.mxu3 %v165_v5  ;;  %v186_v4 = vld [vmem:[%s1540_s1 + $0x288] sm:$0xff]  ;;  %v98_v5 = vld [vmem:[%s1541_s0 + $0x2a0] sm:$0x3] }
  0x2e   :  { %731 = vmatpush.msrb.mxu1 %v997_v6  ;;  %747 = vmatpush.msrb.mxu2 %v201_v56 }
  0x2f   :  { %478 = vmatpush.msrb.mxu0 %v179_v7  ;;  %421 = vmatpush.msrb.mxu3 %v164_v8  ;;  %v46_v7 = vld [vmem:[%s1541_s0 + $0x100] sm:$0xff]  ;;  %v72_v8 = vld [vmem:[%s1541_s0 + $0x1d0] sm:$0xff] }
  0x30   :  { %732 = vmatpush.msrb.mxu1 %v1008_v9 }
  0x31   :  { %479 = vmatpush.msrb.mxu0 %v178_v10  ;;  %422 = vmatpush.msrb.mxu3 %v163_v11  ;;  %v17_v10 = vld [vmem:[%s1541_s0 + $0x18] sm:$0xff]  ;;  %v78_v11 = vld [vmem:[%s1541_s0 + $0x200] sm:$0xff] }
  0x32   :  { %733 = vmatpush.msrb.mxu1 %v1020_v12 }
  0x33   :  { %480 = vmatpush.msrb.mxu0 %v177_v13  ;;  %283 = vmatmul.f32.gmra.mxu3 %v56_v14  ;;  %v79_v13 = vld [vmem:[%s1541_s0 + $0x208] sm:$0xff]  ;;  %v85_v14 = vld [vmem:[%s1541_s0 + $0x238] sm:$0xff] }
  0x34   :  { %271 = vmatmul.f32.gmra.mxu0 %v28_v15  ;;  %327 = vmatmul.f32.gmra.mxu1 %v29_v16  ;;  %v86_v15 = vld [vmem:[%s1541_s0 + $0x240] sm:$0xff]  ;;  %v31_v16 = vld [vmem:[%s1541_s0 + $0x88] sm:$0xff] }
  0x35   :  { %383 = vmatmul.f32.gmra.mxu2 %v30_v17  ;;  %481 = vmatpush.msrb.mxu0 %v176_v18  ;;  %v92_v17 = vld [vmem:[%s1541_s0 + $0x270] sm:$0xff]  ;;  %v67_v18 = vld [vmem:[%s1541_s0 + $0x1a8] sm:$0xff] }
  0x36   :  { %423 = vmatpush.msrb.mxu3 %v162_v19  ;;  %734 = vmatpush.msrb.mxu1 %v1048_v20  ;;  %v93_v19 = vld [vmem:[%s1541_s0 + $0x278] sm:$0xff] }
  0x37   :  { %482 = vmatpush.msrb.mxu0 %v175_v21  ;;  %v99_v21 = vld [vmem:[%s1541_s0 + $0x2a8] sm:$0x3] }
  0x38   :  { %424 = vmatpush.msrb.mxu3 %v161_v22  ;;  %735 = vmatpush.msrb.mxu1 %v1059_v23  ;;  %v74_v22 = vld [vmem:[%s1541_s0 + $0x1e0] sm:$0xff] }
  0x39   :  { %483 = vmatpush.msrb.mxu0 %v174_v25  ;;  %v81_v25 = vld [vmem:[%s1541_s0 + $0x218] sm:$0xff] }
  0x3a   :  { %425 = vmatpush.msrb.mxu3 %v160_v26  ;;  %736 = vmatpush.msrb.mxu1 %v192_v36  ;;  %v40_v26 = vld [vmem:[%s1541_s0 + $0xd0] sm:$0xff] }
  0x3b   :  { %484 = vmatpush.msrb.mxu0 %v173_v27  ;;  %286 = vmatmul.f32.gmra.mxu3 %v63_v28  ;;  %v41_v27 = vld [vmem:[%s1541_s0 + $0xd8] sm:$0xff]  ;;  %v52_v28 = vld [vmem:[%s1541_s0 + $0x130] sm:$0xff] }
  0x3c   :  { %274 = vmatmul.f32.gmra.mxu0 %v35_v29  ;;  %330 = vmatmul.f32.gmra.mxu1 %v36_v30  ;;  %v88_v29 = vld [vmem:[%s1541_s0 + $0x250] sm:$0xff]  ;;  %v47_v30 = vld [vmem:[%s1541_s0 + $0x108] sm:$0xff] }
  0x3d   :  { %386 = vmatmul.f32.gmra.mxu2 %v37_v31  ;;  %485 = vmatpush.msrb.mxu0 %v172_v32  ;;  %v48_v31 = vld [vmem:[%s1541_s0 + $0x110] sm:$0xff]  ;;  %v59_v32 = vld [vmem:[%s1541_s0 + $0x168] sm:$0xff] }
  0x3e   :  { %426 = vmatpush.msrb.mxu3 %v159_v33  ;;  %737 = vmatpush.msrb.mxu1 %v191_v38  ;;  %v95_v33 = vld [vmem:[%s1541_s0 + $0x288] sm:$0xff] }
  0x3f   :  { %486 = vmatpush.msrb.mxu0 %v171_v34  ;;  %v54_v34 = vld [vmem:[%s1541_s0 + $0x140] sm:$0xff] }
  0x40   :  { %427 = vmatpush.msrb.mxu3 %v158_v35  ;;  %738 = vmatpush.msrb.mxu1 %v190_v47  ;;  %v55_v35 = vld [vmem:[%s1541_s0 + $0x148] sm:$0xff] }
  0x41   :  { %487 = vmatpush.msrb.mxu0 %v170_v37 }
  0x42   :  { %428 = vmatpush.msrb.mxu3 %v157_v39 }
  0x43   :  { %488 = vmatpush.msrb.mxu0 %v169_v40  ;;  %289 = vmatmul.f32.gmra.mxu3 %v70_v41  ;;  %v102_v41 = vld [vmem:[%s1541_s0 + $0x2c0] sm:$0x3] }
  0x44   :  { %333 = vmatmul.f32.gmra.mxu1 %v43_v42  ;;  %489 = vmatmul.f32.vlgmr.msrb.gmra.mxu0 %v18_v43  ;;  %v61_v42 = vld [vmem:[%s1541_s0 + $0x178] sm:$0xff]  ;;  %v62_v43 = vld [vmem:[%s1541_s0 + $0x180] sm:$0xff] }
  0x45   :  { %389 = vmatmul.f32.gmra.mxu2 %v44_v44  ;;  %529 = vmatpush.msra.mxu0 %v939_v55  ;;  %v189_v55 = vld [vmem:[%s1540_s1 + $0x2a0] sm:$0xff] }
  0x46   :  { %429 = vmatpush.msrb.mxu3 %v156_v45  ;;  %739 = vmatpush.msrb.mxu1 %v189_v55 }
  0x47   :  { %530 = vmatpush.msra.mxu0 %v956_v59  ;;  %v57_v59 = vld [vmem:[%s1541_s0 + $0x158] sm:$0xff] }
  0x48   :  { %430 = vmatpush.msrb.mxu3 %v155_v46 }
  0x49   :  { %531 = vmatpush.msra.mxu0 %v968_v62  ;;  %v188_v62 = vld [vmem:[%s1540_s1 + $0x298] sm:$0xff] }
  0x4a   :  { %431 = vmatpush.msrb.mxu3 %v154_v48  ;;  %740 = vmatpush.msrb.mxu1 %v188_v62  ;;  %v73_v48 = vld [vmem:[%s1541_s0 + $0x1d8] sm:$0xff] }
  0x4b   :  { %292 = vmatmul.f32.gmra.mxu3 %v77_v49  ;;  %532 = vmatpush.msra.mxu0 %v997_v6  ;;  %v71_v6 = vld [vmem:[%s1541_s0 + $0x1c8] sm:$0xff] }
  0x4c   :  { %336 = vmatmul.f32.gmra.mxu1 %v50_v50  ;;  %492 = vmatmul.f32.gmra.mxu0 %v25_v51  ;;  %v19_v51 = vld [vmem:[%s1541_s0 + $0x28] sm:$0xff] }
  0x4d   :  { %392 = vmatmul.f32.gmra.mxu2 %v51_v53  ;;  %533 = vmatpush.msra.mxu0 %v1008_v9  ;;  %v185_v9 = vld [vmem:[%s1540_s1 + $0x280] sm:$0xff]  ;;  %v68_v53 = vld [vmem:[%s1541_s0 + $0x1b0] sm:$0xff] }
  0x4e   :  { %432 = vmatpush.msrb.mxu3 %v153_v54  ;;  %741 = vmatpush.msrb.mxu1 %v187_v3 }
  0x4f   :  { %534 = vmatpush.msra.mxu0 %v1020_v12  ;;  %v53_v12 = vld [vmem:[%s1541_s0 + $0x138] sm:$0xff] }
  0x50   :  { %742 = vmatpush.msrb.mxu1 %v186_v4 }
  0x51   :  { %535 = vmatpush.msra.mxu0 %v1048_v20  ;;  %v38_v20 = vld [vmem:[%s1541_s0 + $0xc0] sm:$0xff] }
  0x52   :  { %743 = vmatpush.msrb.mxu1 %v185_v9 }
  0x53   :  { %295 = vmatmul.f32.gmra.mxu3 %v84_v58  ;;  %536 = vmatpush.msra.mxu0 %v1059_v23  ;;  %v100_v23 = vld [vmem:[%s1541_s0 + $0x2b0] sm:$0x3] }
  0x54   :  { %339 = vmatmul.f32.gmra.mxu1 %v57_v59  ;;  %495 = vmatmul.f32.gmra.mxu0 %v32_v60  ;;  %v80_v60 = vld [vmem:[%s1541_s0 + $0x210] sm:$0xff] }
  0x55   :  { %395 = vmatmul.f32.gmra.mxu2 %v58_v61  ;;  %537 = vmatpush.msra.mxu0 %v192_v36  ;;  %v1311_v36 = vld [vmem:[%s1542_s2] ss:$0 sm:$0xff] }
  0x57   :  { %538 = vmatpush.msra.mxu0 %v191_v38  ;;  %v66_v38 = vld [vmem:[%s1541_s0 + $0x1a0] sm:$0xff] }
  0x59   :  { %539 = vmatpush.msra.mxu0 %v190_v47 }
  0x5b   :  { %298 = vmatmul.f32.gmra.mxu3 %v91_v63  ;;  %540 = vmatpush.msra.mxu0 %v189_v55  ;;  %v69_v55 = vld [vmem:[%s1541_s0 + $0x1b8] sm:$0xff] }
  0x5c   :  { %342 = vmatmul.f32.gmra.mxu1 %v64_v0  ;;  %498 = vmatmul.f32.gmra.mxu0 %v39_v1  ;;  %v26_v0 = vld [vmem:[%s1541_s0 + $0x60] sm:$0xff]  ;;  %v75_v1 = vld [vmem:[%s1541_s0 + $0x1e8] sm:$0xff] }
  0x5d   :  { %398 = vmatmul.f32.gmra.mxu2 %v65_v2  ;;  %541 = vmatpush.msra.mxu0 %v188_v62 }
  0x5f   :  { %542 = vmatpush.msra.mxu0 %v187_v3  ;;  %v76_v3 = vld [vmem:[%s1541_s0 + $0x1f0] sm:$0xff] }
  0x61   :  { %543 = vmatpush.msra.mxu0 %v186_v4 }
  0x63   :  { %301 = vmatmul.f32.gmra.mxu3 %v98_v5  ;;  %544 = vmatpush.msra.mxu0 %v185_v9 }
  0x64   :  { %345 = vmatmul.f32.gmra.mxu1 %v71_v6  ;;  %501 = vmatmul.f32.gmra.mxu0 %v46_v7  ;;  %v87_v7 = vld [vmem:[%s1541_s0 + $0x248] sm:$0xff] }
  0x65   :  { %401 = vmatmul.f32.gmra.mxu2 %v72_v8  ;;  %597 = vmatpush.msrb.mxu0 %v928_v52  ;;  %v24_v52 = vld [vmem:[%s1541_s0 + $0x50] sm:$0xff] }
  0x67   :  { %598 = vmatpush.msrb.mxu0 %v947_v57  ;;  %v60_v57 = vld [vmem:[%s1541_s0 + $0x170] sm:$0xff] }
  0x69   :  { %599 = vmatpush.msrb.mxu0 %v1064_v24  ;;  %v45_v24 = vld [vmem:[%s1541_s0 + $0xf8] sm:$0xff] }
  0x6b   :  { %433 = vmatmul.f32.vlgmr.msrb.gmra.mxu3 %v17_v10  ;;  %600 = vmatpush.msrb.mxu0 %v201_v56 }
  0x6c   :  { %348 = vmatmul.f32.gmra.mxu1 %v78_v11  ;;  %504 = vmatmul.f32.gmra.mxu0 %v53_v12  ;;  %v33_v11 = vld [vmem:[%s1541_s0 + $0x98] sm:$0xff]  ;;  %v82_v12 = vld [vmem:[%s1541_s0 + $0x220] sm:$0xff] }
  0x6d   :  { %404 = vmatmul.f32.gmra.mxu2 %v79_v13 }
  0x73   :  { %436 = vmatmul.f32.gmra.mxu3 %v24_v52  ;;  %v83_v52 = vld [vmem:[%s1541_s0 + $0x228] sm:$0xff] }
  0x74   :  { %351 = vmatmul.f32.gmra.mxu1 %v85_v14  ;;  %507 = vmatmul.f32.gmra.mxu0 %v60_v57 }
  0x75   :  { %407 = vmatmul.f32.gmra.mxu2 %v86_v15 }
  0x7b   :  { %439 = vmatmul.f32.gmra.mxu3 %v31_v16 }
  0x7c   :  { %354 = vmatmul.f32.gmra.mxu1 %v92_v17  ;;  %510 = vmatmul.f32.gmra.mxu0 %v67_v18  ;;  %v94_v17 = vld [vmem:[%s1541_s0 + $0x280] sm:$0xff] }
  0x7d   :  { %410 = vmatmul.f32.gmra.mxu2 %v93_v19 }
  0x83   :  { %442 = vmatmul.f32.gmra.mxu3 %v38_v20 }
  0x84   :  { %357 = vmatmul.f32.gmra.mxu1 %v99_v21  ;;  %513 = vmatmul.f32.gmra.mxu0 %v74_v22  ;;  %v20_v21 = vld [vmem:[%s1541_s0 + $0x30] sm:$0xff]  ;;  %v89_v22 = vld [vmem:[%s1541_s0 + $0x258] sm:$0xff] }
  0x85   :  { %413 = vmatmul.f32.gmra.mxu2 %v100_v23 }
  0x8b   :  { %445 = vmatmul.f32.gmra.mxu3 %v45_v24  ;;  %v90_v24 = vld [vmem:[%s1541_s0 + $0x260] sm:$0xff] }
  0x8c   :  { %516 = vmatmul.f32.gmra.mxu0 %v81_v25  ;;  %554 = vmatmul.f32.vlgmr.msrb.gmra.mxu1 %v40_v26 }
  0x8d   :  { %702 = vmatmul.msk.f32.vlgmr.msrb.gmra.mxu2 %vm209_vm0, %v41_v27 }
  0x93   :  { %448 = vmatmul.f32.gmra.mxu3 %v52_v28  ;;  %v101_v28 = vld [vmem:[%s1541_s0 + $0x2b8] sm:$0x3] }
  0x94   :  { %519 = vmatmul.f32.gmra.mxu0 %v88_v29  ;;  %557 = vmatmul.f32.gmra.mxu1 %v47_v30 }
  0x95   :  { %703 = vmatmul.msk.f32.gmra.mxu2 %vm209_vm0, %v48_v31 }
  0x9b   :  { %451 = vmatmul.f32.gmra.mxu3 %v59_v32  ;;  %v27_v32 = vld [vmem:[%s1541_s0 + $0x68] sm:$0xff] }
  0x9c   :  { %522 = vmatmul.f32.gmra.mxu0 %v95_v33  ;;  %560 = vmatmul.f32.gmra.mxu1 %v54_v34  ;;  %v96_v33 = vld [vmem:[%s1541_s0 + $0x290] sm:$0xff] }
  0x9d   :  { %704 = vmatmul.msk.f32.gmra.mxu2 %vm209_vm0, %v55_v35  ;;  %v97_v35 = vld [vmem:[%s1541_s0 + $0x298] sm:$0xff] }
  0x9f   :  { %v266_v37 = vpop.f32.mrf.mxu0 }
  0xa0   :  { %v267_v39 = vadd.f32 %v1311_v36, %v266_v37  ;;  %v322_v40 = vpop.f32.mrf.mxu1 }
  0xa2   :  { %v323_v44 = vadd.f32 %v322_v40, %v267_v39 }
  0xa3   :  { %454 = vmatmul.f32.gmra.mxu3 %v66_v38 }
  0xa4   :  { %525 = vmatmul.f32.gmra.mxu0 %v102_v41  ;;  %563 = vmatmul.f32.gmra.mxu1 %v61_v42 }
  0xa5   :  { %705 = vmatmul.msk.f32.gmra.mxu2 %vm209_vm0, %v62_v43  ;;  %v34_v43 = vld [vmem:[%s1541_s0 + $0xa0] sm:$0xff] }
  0xa6   :  { %v278_v45 = vpop.f32.mrf.mxu3 }
  0xa7   :  { %v378_v46 = vpop.f32.mrf.mxu2  ;;  %v279_v15 = vadd.f32 %v1311_v36, %v278_v45 }
  0xa8   :  { %v1327_v47 = vadd.f32 %v378_v46, %v323_v44  ;;  %v269_v49 = vpop.f32.mrf.mxu0  ;;  %v103_v44 = vld [vmem:[%s1541_s0 + $0x2c8] sm:$0x3]  ;;  %v104_v46 = vld [vmem:[%s1541_s0 + $0x2d0] sm:$0x3] }
  0xa9   :  { %v325_v50 = vpop.f32.mrf.mxu1  ;;  %v270_v54 = vadd.f32 %v1311_v36, %v269_v49 }
  0xab   :  { %457 = vmatmul.f32.gmra.mxu3 %v73_v48  ;;  %v326_v56 = vadd.f32 %v325_v50, %v270_v54 }
  0xac   :  { %545 = vmatmul.f32.vlgmr.msra.gmra.mxu0 %v19_v51  ;;  %566 = vmatmul.f32.gmra.mxu1 %v68_v53 }
  0xad   :  { %706 = vmatmul.msk.f32.gmra.mxu2 %vm209_vm0, %v69_v55 }
  0xae   :  { %v281_v58 = vpop.f32.mrf.mxu3 }
  0xaf   :  { %v381_v59 = vpop.f32.mrf.mxu2  ;;  %v282_v26 = vadd.f32 %v1311_v36, %v281_v58 }
  0xb0   :  { %v1346_v61 = vadd.f32 %v381_v59, %v326_v56 }
  0xb1   :  { %v272_v62 = vpop.f32.mrf.mxu0  ;;  %v328_v63 = vpop.f32.mrf.mxu1 }
  0xb2   :  { %v273_v2 = vadd.f32 %v1311_v36, %v272_v62 }
  0xb3   :  { %460 = vmatmul.f32.gmra.mxu3 %v80_v60 }
  0xb4   :  { %v329_v4 = vadd.f32 %v328_v63, %v273_v2  ;;  %548 = vmatmul.f32.gmra.mxu0 %v26_v0  ;;  %569 = vmatmul.f32.gmra.mxu1 %v75_v1 }
  0xb5   :  { %707 = vmatmul.msk.f32.gmra.mxu2 %vm209_vm0, %v76_v3 }
  0xb6   :  { %v284_v5 = vpop.f32.mrf.mxu3 }
  0xb7   :  { %v285_v38 = vadd.f32 %v1311_v36, %v284_v5 }
  0xb8   :  { %v384_v6 = vpop.f32.mrf.mxu2 }
  0xb9   :  { %v1362_v8 = vadd.f32 %v384_v6, %v329_v4  ;;  %v275_v9 = vpop.f32.mrf.mxu0  ;;  %v331_v10 = vpop.f32.mrf.mxu1 }
  0xba   :  { %v276_v13 = vadd.f32 %v1311_v36, %v275_v9 }
  0xbb   :  { %463 = vmatmul.f32.gmra.mxu3 %v87_v7 }
  0xbc   :  { %v332_v14 = vadd.f32 %v331_v10, %v276_v13  ;;  %551 = vmatmul.f32.gmra.mxu0 %v33_v11  ;;  %572 = vmatmul.f32.gmra.mxu1 %v82_v12 }
  0xbd   :  { %708 = vmatmul.msk.f32.gmra.mxu2 %vm209_vm0, %v83_v52 }
  0xbe   :  { %v287_v57 = vpop.f32.mrf.mxu3 }
  0xbf   :  { %v288_v49 = vadd.f32 %v1311_v36, %v287_v57 }
  0xc0   :  { %v387_v16 = vpop.f32.mrf.mxu2 }
  0xc1   :  { %v1379_v18 = vadd.f32 %v387_v16, %v332_v14  ;;  %v334_v19 = vpop.f32.mrf.mxu1  ;;  %v1381_v20 = vpop.f32.mrf.mxu0 }
  0xc2   :  { %v335_v23 = vadd.f32 %v334_v19, %v279_v15 }
  0xc3   :  { %466 = vmatmul.f32.gmra.mxu3 %v94_v17 }
  0xc4   :  { %699 = vmatmul.msk.f32.vlgmr.msrb.gmra.mxu0 %vm209_vm0, %v20_v21  ;;  %575 = vmatmul.f32.gmra.mxu1 %v89_v22 }
  0xc5   :  { %709 = vmatmul.msk.f32.gmra.mxu2 %vm209_vm0, %v90_v24 }
  0xc6   :  { %v290_v25 = vpop.f32.mrf.mxu3 }
  0xc7   :  { %v291_v58 = vadd.f32 %v1311_v36, %v290_v25 }
  0xc8   :  { %v390_v27 = vpop.f32.mrf.mxu2 }
  0xc9   :  { %v1398_v29 = vadd.f32 %v390_v27, %v335_v23  ;;  %v337_v30 = vpop.f32.mrf.mxu1  ;;  %v493_v31 = vpop.f32.mrf.mxu0 }
  0xca   :  { %v338_v34 = vadd.f32 %v337_v30, %v282_v26 }
  0xcb   :  { %469 = vmatmul.f32.gmra.mxu3 %v101_v28 }
  0xcc   :  { %700 = vmatmul.msk.f32.gmra.mxu0 %vm209_vm0, %v27_v32  ;;  %578 = vmatmul.f32.gmra.mxu1 %v96_v33 }
  0xcd   :  { %710 = vmatmul.msk.f32.gmra.mxu2 %vm209_vm0, %v97_v35 }
  0xce   :  { %v293_v37 = vpop.f32.mrf.mxu3 }
  0xcf   :  { %v294_v2 = vadd.f32 %v1311_v36, %v293_v37 }
  0xd0   :  { %v393_v39 = vpop.f32.mrf.mxu2 }
  0xd1   :  { %v1412_v40 = vadd.f32 %v393_v39, %v338_v34  ;;  %v340_v41 = vpop.f32.mrf.mxu1  ;;  %v496_v42 = vpop.f32.mrf.mxu0 }
  0xd2   :  { %v341_v45 = vadd.f32 %v340_v41, %v285_v38 }
  0xd4   :  { %701 = vmatmul.msk.f32.gmra.mxu0 %vm209_vm0, %v34_v43  ;;  %581 = vmatmul.f32.gmra.mxu1 %v103_v44 }
  0xd5   :  { %711 = vmatmul.msk.f32.gmra.mxu2 %vm209_vm0, %v104_v46 }
  0xd6   :  { %v296_v48 = vpop.f32.mrf.mxu3 }
  0xd7   :  { %v297_v11 = vadd.f32 %v1311_v36, %v296_v48 }
  0xd8   :  { %v396_v50 = vpop.f32.mrf.mxu2 }
  0xd9   :  { %v1426_v51 = vadd.f32 %v396_v50, %v341_v45  ;;  %v343_v53 = vpop.f32.mrf.mxu1  ;;  %v499_v54 = vpop.f32.mrf.mxu0 }
  0xda   :  { %v344_v55 = vadd.f32 %v343_v53, %v288_v49 }
  0xde   :  { %v299_v56 = vpop.f32.mrf.mxu3 }
  0xdf   :  { %v300_v19 = vadd.f32 %v1311_v36, %v299_v56 }
  0xe0   :  { %v399_v59 = vpop.f32.mrf.mxu2 }
  0xe1   :  { %v1429_v60 = vadd.f32 %v399_v59, %v344_v55  ;;  %v346_v62 = vpop.f32.mrf.mxu1  ;;  %v502_v63 = vpop.f32.mrf.mxu0 }
  0xe2   :  { %v347_v0 = vadd.f32 %v346_v62, %v291_v58 }
  0xe6   :  { %v302_v1 = vpop.f32.mrf.mxu3 }
  0xe8   :  { %v402_v3 = vpop.f32.mrf.mxu2 }
  0xe9   :  { %v1432_v4 = vadd.f32 %v402_v3, %v347_v0  ;;  %v349_v5 = vpop.f32.mrf.mxu1  ;;  %v505_v6 = vpop.f32.mrf.mxu0 }
  0xea   :  { %v350_v7 = vadd.f32 %v349_v5, %v294_v2 }
  0xee   :  { %v434_v9 = vpop.f32.mrf.mxu3 }
  0xef   :  { %v435_v10 = vadd.f32 %v434_v9, %v1327_v47 }
  0xf0   :  { %v405_v12 = vpop.f32.mrf.mxu2 }
  0xf1   :  { %v1436_v13 = vadd.f32 %v405_v12, %v350_v7  ;;  %v352_v52 = vpop.f32.mrf.mxu1  ;;  %v1438_v14 = vpop.f32.mrf.mxu0  ;;  %v1441_v57 = vadd.f32 %v1381_v20, %v435_v10  ;;  %v303_v20 = vadd.f32 %v1311_v36, %v302_v1 }
  0xf2   :  { %v353_v15 = vadd.f32 %v352_v52, %v297_v11 }
  0xf6   :  { %v437_v16 = vpop.f32.mrf.mxu3 }
  0xf7   :  { %v438_v17 = vadd.f32 %v437_v16, %v1346_v61 }
  0xf8   :  { %v408_v21 = vpop.f32.mrf.mxu2 }
  0xf9   :  { %v1445_v22 = vadd.f32 %v408_v21, %v353_v15  ;;  %v355_v47 = vpop.f32.mrf.mxu1  ;;  %v1447_v23 = vpop.f32.mrf.mxu0  ;;  %v1449_v24 = vadd.f32 %v493_v31, %v438_v17 }
  0xfa   :  { %v356_v25 = vadd.f32 %v355_v47, %v300_v19 }
  0xfe   :  { %v440_v26 = vpop.f32.mrf.mxu3 }
  0xff   :  { %v441_v27 = vadd.f32 %v440_v26, %v1362_v8 }
 0x100   :  { %v411_v28 = vpop.f32.mrf.mxu2 }
 0x101   :  { %v1453_v30 = vadd.f32 %v411_v28, %v356_v25  ;;  %v358_v61 = vpop.f32.mrf.mxu1  ;;  %v1455_v32 = vpop.f32.mrf.mxu0  ;;  %v1457_v33 = vadd.f32 %v496_v42, %v441_v27 }
 0x102   :  { %v359_v34 = vadd.f32 %v358_v61, %v303_v20 }
 0x106   :  { %v443_v35 = vpop.f32.mrf.mxu3 }
 0x107   :  { %v444_v37 = vadd.f32 %v443_v35, %v1379_v18 }
 0x108   :  { %v414_v31 = vpop.f32.mrf.mxu2 }
 0x109   :  { %v1460_v38 = vadd.f32 %v414_v31, %v359_v34  ;;  %v1462_v39 = vpop.f32.mrf.mxu0  ;;  %v555_v8 = vpop.f32.mrf.mxu1  ;;  %v500_v41 = vadd.f32 %v499_v54, %v444_v37 }
 0x10b   :  { %v556_v43 = vadd.f32 %v555_v8, %v500_v41 }
 0x10e   :  { %v446_v36 = vpop.f32.mrf.mxu3 }
 0x10f   :  { %v447_v44 = vadd.f32 %v446_v36, %v1398_v29 }
 0x110   :  { %v611_v45 = vpop.f32.mrf.mxu2 }
 0x111   :  { %v612_v46 = vadd.f32 %v611_v45, %v556_v43  ;;  %v1465_v48 = vpop.f32.mrf.mxu0  ;;  %v558_v42 = vpop.f32.mrf.mxu1  ;;  %v503_v18 = vadd.f32 %v502_v63, %v447_v44 }
 0x113   :  { %vm644_vm1 = vcmp.gt.f32.partialorder %v612_v46, 0.0  ;;  %v657_v49 = vmul.f32 0.01, %v612_v46  ;;  %v559_v54 = vadd.f32 %v558_v42, %v503_v18 }
 0x115   :  { %v670_v50 = vsel %vm644_vm1, %v612_v46, %v657_v49 }
 0x116   :  { %684 = vst.msk [vmem:[%s1543_s3 + $0x18] sm:$0xff] %vm680_vm2, %v670_v50  ;;  %v449_v53 = vpop.f32.mrf.mxu3 }
 0x117   :  { %v450_v55 = vadd.f32 %v449_v53, %v1412_v40 }
 0x118   :  { %v614_v29 = vpop.f32.mrf.mxu2 }
 0x119   :  { %v615_v56 = vadd.f32 %v614_v29, %v559_v54  ;;  %v1472_v58 = vpop.f32.mrf.mxu0  ;;  %v561_v59 = vpop.f32.mrf.mxu1  ;;  %v506_v0 = vadd.f32 %v505_v6, %v450_v55 }
 0x11b   :  { %vm645_vm3 = vcmp.gt.f32.partialorder %v615_v56, 0.0  ;;  %v658_v62 = vmul.f32 0.01, %v615_v56  ;;  %v562_v2 = vadd.f32 %v561_v59, %v506_v0 }
 0x11d   :  { %v671_v1 = vsel %vm645_vm3, %v615_v56, %v658_v62 }
 0x11e   :  { %685 = vst.msk [vmem:[%s1543_s3 + $0x20] sm:$0xff] %vm680_vm2, %v671_v1  ;;  %v452_v63 = vpop.f32.mrf.mxu3 }
 0x11f   :  { %v453_v3 = vadd.f32 %v452_v63, %v1426_v51 }
 0x120   :  { %v617_v5 = vpop.f32.mrf.mxu2 }
 0x121   :  { %v618_v40 = vadd.f32 %v617_v5, %v562_v2  ;;  %v1479_v7 = vpop.f32.mrf.mxu0  ;;  %v564_v9 = vpop.f32.mrf.mxu1  ;;  %v509_v11 = vadd.f32 %v1438_v14, %v453_v3 }
 0x123   :  { %vm646_vm4 = vcmp.gt.f32.partialorder %v618_v40, 0.0  ;;  %v659_v10 = vmul.f32 0.01, %v618_v40  ;;  %v565_v52 = vadd.f32 %v564_v9, %v509_v11 }
 0x125   :  { %v672_v6 = vsel %vm646_vm4, %v618_v40, %v659_v10 }
 0x126   :  { %686 = vst.msk [vmem:[%s1543_s3 + $0x28] sm:$0xff] %vm680_vm2, %v672_v6  ;;  %v455_v12 = vpop.f32.mrf.mxu3 }
 0x127   :  { %v456_v15 = vadd.f32 %v455_v12, %v1429_v60 }
 0x128   :  { %v620_v51 = vpop.f32.mrf.mxu2 }
 0x129   :  { %v621_v16 = vadd.f32 %v620_v51, %v565_v52  ;;  %v546_v17 = vpop.f32.mrf.mxu0  ;;  %v567_v19 = vpop.f32.mrf.mxu1  ;;  %v512_v47 = vadd.f32 %v1447_v23, %v456_v15 }
 0x12b   :  { %vm647_vm5 = vcmp.gt.f32.partialorder %v621_v16, 0.0  ;;  %v660_v21 = vmul.f32 0.01, %v621_v16  ;;  %v568_v26 = vadd.f32 %v567_v19, %v512_v47 }
 0x12d   :  { %v673_v25 = vsel %vm647_vm5, %v621_v16, %v660_v21 }
 0x12e   :  { %687 = vst.msk [vmem:[%s1543_s3 + $0x30] sm:$0xff] %vm680_vm2, %v673_v25  ;;  %v458_v14 = vpop.f32.mrf.mxu3 }
 0x12f   :  { %v459_v27 = vadd.f32 %v458_v14, %v1432_v4 }
 0x130   :  { %v623_v20 = vpop.f32.mrf.mxu2 }
 0x131   :  { %v624_v60 = vadd.f32 %v623_v20, %v568_v26  ;;  %v549_v28 = vpop.f32.mrf.mxu0  ;;  %v570_v61 = vpop.f32.mrf.mxu1  ;;  %v515_v35 = vadd.f32 %v1455_v32, %v459_v27 }
 0x133   :  { %vm648_vm6 = vcmp.gt.f32.partialorder %v624_v60, 0.0  ;;  %v661_v34 = vmul.f32 0.01, %v624_v60  ;;  %v571_v31 = vadd.f32 %v570_v61, %v515_v35 }
 0x135   :  { %v674_v37 = vsel %vm648_vm6, %v624_v60, %v661_v34 }
 0x136   :  { %688 = vst.msk [vmem:[%s1543_s3 + $0x38] sm:$0xff] %vm680_vm2, %v674_v37  ;;  %v461_v23 = vpop.f32.mrf.mxu3 }
 0x137   :  { %v462_v8 = vadd.f32 %v461_v23, %v1436_v13  ;;  %v547_v13 = vadd.f32 %v546_v17, %v1441_v57 }
 0x138   :  { %v626_v41 = vpop.f32.mrf.mxu2 }
 0x139   :  { %v627_v4 = vadd.f32 %v626_v41, %v571_v31  ;;  %v552_v36 = vpop.f32.mrf.mxu0  ;;  %v573_v43 = vpop.f32.mrf.mxu1  ;;  %v518_v45 = vadd.f32 %v1462_v39, %v462_v8 }
 0x13b   :  { %vm649_vm7 = vcmp.gt.f32.partialorder %v627_v4, 0.0  ;;  %v662_v44 = vmul.f32 0.01, %v627_v4  ;;  %v574_v42 = vadd.f32 %v573_v43, %v518_v45 }
 0x13d   :  { %v675_v46 = vsel %vm649_vm7, %v627_v4, %v662_v44 }
 0x13e   :  { %689 = vst.msk [vmem:[%s1543_s3 + $0x40] sm:$0xff] %vm680_vm2, %v675_v46  ;;  %v464_v32 = vpop.f32.mrf.mxu3 }
 0x13f   :  { %v465_v49 = vadd.f32 %v464_v32, %v1445_v22 }
 0x140   :  { %v629_v18 = vpop.f32.mrf.mxu2 }
 0x141   :  { %v630_v50 = vadd.f32 %v629_v18, %v574_v42  ;;  %v602_v53 = vpop.f32.mrf.mxu0  ;;  %v576_v54 = vpop.f32.mrf.mxu1  ;;  %v521_v39 = vadd.f32 %v1465_v48, %v465_v49  ;;  %v550_v48 = vadd.f32 %v549_v28, %v1449_v24 }
 0x142   :  { %v603_v55 = vadd.f32 %v602_v53, %v547_v13 }
 0x143   :  { %vm650_vm8 = vcmp.gt.f32.partialorder %v630_v50, 0.0  ;;  %v663_v29 = vmul.f32 0.01, %v630_v50  ;;  %v577_v57 = vadd.f32 %v576_v54, %v521_v39 }
 0x144   :  { %vm641_vm9 = vcmp.gt.f32.partialorder %v603_v55, 0.0  ;;  %v654_v56 = vmul.f32 0.01, %v603_v55 }
 0x145   :  { %v676_v59 = vsel %vm650_vm8, %v630_v50, %v663_v29 }
 0x146   :  { %690 = vst.msk [vmem:[%s1543_s3 + $0x48] sm:$0xff] %vm680_vm2, %v676_v59  ;;  %v667_v22 = vsel %vm641_vm9, %v603_v55, %v654_v56  ;;  %v467_v62 = vpop.f32.mrf.mxu3 }
 0x147   :  { %681 = vst.msk [vmem:[%s1543_s3] sm:$0xff] %vm680_vm2, %v667_v22  ;;  %v468_v0 = vadd.f32 %v467_v62, %v1453_v30 }
 0x148   :  { %v632_v1 = vpop.f32.mrf.mxu2 }
 0x149   :  { %v633_v63 = vadd.f32 %v632_v1, %v577_v57  ;;  %v605_v2 = vpop.f32.mrf.mxu0  ;;  %v579_v5 = vpop.f32.mrf.mxu1  ;;  %v524_v9 = vadd.f32 %v1472_v58, %v468_v0  ;;  %v553_v58 = vadd.f32 %v552_v36, %v1457_v33 }
 0x14a   :  { %v606_v3 = vadd.f32 %v605_v2, %v550_v48 }
 0x14b   :  { %vm651_vm10 = vcmp.gt.f32.partialorder %v633_v63, 0.0  ;;  %v664_v40 = vmul.f32 0.01, %v633_v63  ;;  %v580_v24 = vadd.f32 %v579_v5, %v524_v9 }
 0x14c   :  { %vm642_vm11 = vcmp.gt.f32.partialorder %v606_v3, 0.0  ;;  %v655_v10 = vmul.f32 0.01, %v606_v3 }
 0x14d   :  { %v677_v11 = vsel %vm651_vm10, %v633_v63, %v664_v40 }
 0x14e   :  { %691 = vst.msk [vmem:[%s1543_s3 + $0x50] sm:$0xff] %vm680_vm2, %v677_v11  ;;  %v668_v30 = vsel %vm642_vm11, %v606_v3, %v655_v10  ;;  %v470_v6 = vpop.f32.mrf.mxu3 }
 0x14f   :  { %682 = vst.msk [vmem:[%s1543_s3 + $0x8] sm:$0xff] %vm680_vm2, %v668_v30  ;;  %v471_v12 = vadd.f32 %v470_v6, %v1460_v38 }
 0x150   :  { %v635_v52 = vpop.f32.mrf.mxu2 }
 0x151   :  { %v636_v15 = vadd.f32 %v635_v52, %v580_v24  ;;  %v608_v51 = vpop.f32.mrf.mxu0  ;;  %v527_v19 = vadd.f32 %v1479_v7, %v471_v12  ;;  %v582_v47 = vpop.f32.mrf.mxu1 }
 0x152   :  { %v609_v16 = vadd.f32 %v608_v51, %v553_v58 }
 0x153   :  { %vm652_vm12 = vcmp.gt.f32.partialorder %v636_v15, 0.0  ;;  %v665_v17 = vmul.f32 0.01, %v636_v15  ;;  %v583_v33 = vadd.f32 %v582_v47, %v527_v19 }
 0x154   :  { %vm643_vm13 = vcmp.gt.f32.partialorder %v609_v16, 0.0  ;;  %v656_v21 = vmul.f32 0.01, %v609_v16 }
 0x155   :  { %v678_v25 = vsel %vm652_vm12, %v636_v15, %v665_v17 }
 0x156   :  { %692 = vst.msk [vmem:[%s1543_s3 + $0x58] sm:$0xff] %vm680_vm2, %v678_v25  ;;  %v669_v38 = vsel %vm643_vm13, %v609_v16, %v656_v21 }
 0x157   :  { %683 = vst.msk [vmem:[%s1543_s3 + $0x10] sm:$0xff] %vm680_vm2, %v669_v38 }
 0x158   :  { %v638_v14 = vpop.f32.mrf.mxu2 }
 0x159   :  { %v639_v26 = vadd.f32 %v638_v14, %v583_v33 }
 0x15b   :  { %vm653_vm14 = vcmp.gt.f32.partialorder %v639_v26, 0.0  ;;  %v666_v7 = vmul.f32 0.01, %v639_v26 }
 0x15d   :  { %v679_v27 = vsel %vm653_vm14, %v639_v26, %v666_v7 }
 0x15e   :  { %694 = vst.msk [vmem:[%s1543_s3 + $0x60] sm:$0x3] %vm693_vm15, %v679_v27 }

// kernel: cae_forward.9
= control target key start
LH: loop header
LB: loop body
LE: loop exit
PB: predicated region body
PF: predicated region fallthrough
CT: control target
= control target key end

     0   :  { %vm105_vm0 = vcmask 523264   ;;  %s634_s1 = inlined_call_operand.vmem [shape: f32[576,128], index: 1, kind: input, shape index: {}]   ;;  %s635_s0 = inlined_call_operand.vmem [shape: f32[18,576], index: 0, kind: input, shape index: {}]   ;;  %s636_s2 = inlined_call_operand.vmem [shape: f32[1,128], index: 2, kind: input, shape index: {}]   ;;  %s637_s3 = inlined_call_operand.vmem [shape: f32[18,128], index: 3, kind: output, shape index: {}]  }
   0x1   :  { %v44_v0 = vld [vmem:[%s634_s1 + $0x78] sm:$0xff]  ;;  %v43_v3 = vld [vmem:[%s634_s1 + $0x70] sm:$0xff]  ;;  %v42_v7 = vld [vmem:[%s634_s1 + $0x68] sm:$0xff] }
   0x2   :  { %v60_v1 = vld [vmem:[%s634_s1 + $0xf8] sm:$0xff]  ;;  %115 = vmatpush.msra.mxu0 %v44_v0  ;;  %v59_v4 = vld [vmem:[%s634_s1 + $0xf0] sm:$0xff]  ;;  %v58_v8 = vld [vmem:[%s634_s1 + $0xe8] sm:$0xff] }
   0x3   :  { %v76_v2 = vld [vmem:[%s634_s1 + $0x178] sm:$0xff]  ;;  %141 = vmatpush.msra.mxu1 %v60_v1  ;;  %v75_v5 = vld [vmem:[%s634_s1 + $0x170] sm:$0xff]  ;;  %v74_v9 = vld [vmem:[%s634_s1 + $0x168] sm:$0xff] }
   0x4   :  { %167 = vmatpush.msra.mxu2 %v76_v2  ;;  %v92_v6 = vld [vmem:[%s634_s1 + $0x1f8] sm:$0xff]  ;;  %116 = vmatpush.msra.mxu0 %v43_v3  ;;  %v91_v10 = vld [vmem:[%s634_s1 + $0x1f0] sm:$0xff]  ;;  %v41_v11 = vld [vmem:[%s634_s1 + $0x60] sm:$0xff] }
   0x5   :  { %142 = vmatpush.msra.mxu1 %v59_v4  ;;  %193 = vmatpush.msra.mxu3 %v92_v6  ;;  %v57_v12 = vld [vmem:[%s634_s1 + $0xe0] sm:$0xff]  ;;  %v90_v14 = vld [vmem:[%s634_s1 + $0x1e8] sm:$0xff]  ;;  %v40_v15 = vld [vmem:[%s634_s1 + $0x58] sm:$0xff] }
   0x6   :  { %168 = vmatpush.msra.mxu2 %v75_v5  ;;  %117 = vmatpush.msra.mxu0 %v42_v7  ;;  %v73_v13 = vld [vmem:[%s634_s1 + $0x160] sm:$0xff]  ;;  %v56_v16 = vld [vmem:[%s634_s1 + $0xd8] sm:$0xff]  ;;  %v39_v19 = vld [vmem:[%s634_s1 + $0x50] sm:$0xff] }
   0x7   :  { %143 = vmatpush.msra.mxu1 %v58_v8  ;;  %194 = vmatpush.msra.mxu3 %v91_v10  ;;  %v72_v17 = vld [vmem:[%s634_s1 + $0x158] sm:$0xff]  ;;  %v89_v18 = vld [vmem:[%s634_s1 + $0x1e0] sm:$0xff]  ;;  %v55_v20 = vld [vmem:[%s634_s1 + $0xd0] sm:$0xff] }
   0x8   :  { %169 = vmatpush.msra.mxu2 %v74_v9  ;;  %118 = vmatpush.msra.mxu0 %v41_v11  ;;  %v71_v21 = vld [vmem:[%s634_s1 + $0x150] sm:$0xff]  ;;  %v88_v22 = vld [vmem:[%s634_s1 + $0x1d8] sm:$0xff]  ;;  %v38_v23 = vld [vmem:[%s634_s1 + $0x48] sm:$0xff] }
   0x9   :  { %144 = vmatpush.msra.mxu1 %v57_v12  ;;  %195 = vmatpush.msra.mxu3 %v90_v14  ;;  %v54_v24 = vld [vmem:[%s634_s1 + $0xc8] sm:$0xff]  ;;  %v87_v26 = vld [vmem:[%s634_s1 + $0x1d0] sm:$0xff]  ;;  %v37_v27 = vld [vmem:[%s634_s1 + $0x40] sm:$0xff] }
   0xa   :  { %170 = vmatpush.msra.mxu2 %v73_v13  ;;  %119 = vmatpush.msra.mxu0 %v40_v15  ;;  %v70_v25 = vld [vmem:[%s634_s1 + $0x148] sm:$0xff]  ;;  %v53_v28 = vld [vmem:[%s634_s1 + $0xc0] sm:$0xff]  ;;  %v36_v31 = vld [vmem:[%s634_s1 + $0x38] sm:$0xff] }
   0xb   :  { %145 = vmatpush.msra.mxu1 %v56_v16  ;;  %196 = vmatpush.msra.mxu3 %v89_v18  ;;  %v69_v29 = vld [vmem:[%s634_s1 + $0x140] sm:$0xff]  ;;  %v86_v30 = vld [vmem:[%s634_s1 + $0x1c8] sm:$0xff]  ;;  %v52_v32 = vld [vmem:[%s634_s1 + $0xb8] sm:$0xff] }
   0xc   :  { %171 = vmatpush.msra.mxu2 %v72_v17  ;;  %120 = vmatpush.msra.mxu0 %v39_v19  ;;  %v68_v33 = vld [vmem:[%s634_s1 + $0x138] sm:$0xff]  ;;  %v85_v34 = vld [vmem:[%s634_s1 + $0x1c0] sm:$0xff]  ;;  %v35_v35 = vld [vmem:[%s634_s1 + $0x30] sm:$0xff] }
   0xd   :  { %146 = vmatpush.msra.mxu1 %v55_v20  ;;  %197 = vmatpush.msra.mxu3 %v88_v22  ;;  %v51_v36 = vld [vmem:[%s634_s1 + $0xb0] sm:$0xff]  ;;  %v84_v38 = vld [vmem:[%s634_s1 + $0x1b8] sm:$0xff]  ;;  %v34_v39 = vld [vmem:[%s634_s1 + $0x28] sm:$0xff] }
   0xe   :  { %172 = vmatpush.msra.mxu2 %v71_v21  ;;  %121 = vmatpush.msra.mxu0 %v38_v23  ;;  %v67_v37 = vld [vmem:[%s634_s1 + $0x130] sm:$0xff]  ;;  %v50_v40 = vld [vmem:[%s634_s1 + $0xa8] sm:$0xff]  ;;  %v33_v43 = vld [vmem:[%s634_s1 + $0x20] sm:$0xff] }
   0xf   :  { %147 = vmatpush.msra.mxu1 %v54_v24  ;;  %198 = vmatpush.msra.mxu3 %v87_v26  ;;  %v66_v41 = vld [vmem:[%s634_s1 + $0x128] sm:$0xff]  ;;  %v83_v42 = vld [vmem:[%s634_s1 + $0x1b0] sm:$0xff]  ;;  %v49_v44 = vld [vmem:[%s634_s1 + $0xa0] sm:$0xff] }
  0x10   :  { %173 = vmatpush.msra.mxu2 %v70_v25  ;;  %122 = vmatpush.msra.mxu0 %v37_v27  ;;  %v65_v45 = vld [vmem:[%s634_s1 + $0x120] sm:$0xff]  ;;  %v82_v46 = vld [vmem:[%s634_s1 + $0x1a8] sm:$0xff]  ;;  %v32_v47 = vld [vmem:[%s634_s1 + $0x18] sm:$0xff] }
  0x11   :  { %148 = vmatpush.msra.mxu1 %v53_v28  ;;  %199 = vmatpush.msra.mxu3 %v86_v30  ;;  %v48_v48 = vld [vmem:[%s634_s1 + $0x98] sm:$0xff]  ;;  %v81_v50 = vld [vmem:[%s634_s1 + $0x1a0] sm:$0xff]  ;;  %v31_v51 = vld [vmem:[%s634_s1 + $0x10] sm:$0xff] }
  0x12   :  { %174 = vmatpush.msra.mxu2 %v69_v29  ;;  %123 = vmatpush.msra.mxu0 %v36_v31  ;;  %v64_v49 = vld [vmem:[%s634_s1 + $0x118] sm:$0xff]  ;;  %v47_v52 = vld [vmem:[%s634_s1 + $0x90] sm:$0xff]  ;;  %v30_v55 = vld [vmem:[%s634_s1 + $0x8] sm:$0xff] }
  0x13   :  { %149 = vmatpush.msra.mxu1 %v52_v32  ;;  %200 = vmatpush.msra.mxu3 %v85_v34  ;;  %v63_v53 = vld [vmem:[%s634_s1 + $0x110] sm:$0xff]  ;;  %v80_v54 = vld [vmem:[%s634_s1 + $0x198] sm:$0xff]  ;;  %v46_v56 = vld [vmem:[%s634_s1 + $0x88] sm:$0xff] }
  0x14   :  { %175 = vmatpush.msra.mxu2 %v68_v33  ;;  %124 = vmatpush.msra.mxu0 %v35_v35  ;;  %v62_v57 = vld [vmem:[%s634_s1 + $0x108] sm:$0xff]  ;;  %v79_v58 = vld [vmem:[%s634_s1 + $0x190] sm:$0xff]  ;;  %v29_v59 = vld [vmem:[%s634_s1] sm:$0xff] }
  0x15   :  { %150 = vmatpush.msra.mxu1 %v51_v36  ;;  %201 = vmatpush.msra.mxu3 %v84_v38  ;;  %v45_v60 = vld [vmem:[%s634_s1 + $0x80] sm:$0xff]  ;;  %v78_v62 = vld [vmem:[%s634_s1 + $0x188] sm:$0xff]  ;;  %v16_v1 = vld [vmem:[%s635_s0 + $0x10] sm:$0xff] }
  0x16   :  { %176 = vmatpush.msra.mxu2 %v67_v37  ;;  %125 = vmatpush.msra.mxu0 %v34_v39  ;;  %v61_v61 = vld [vmem:[%s634_s1 + $0x100] sm:$0xff]  ;;  %v15_v0 = vld [vmem:[%s635_s0 + $0x8] sm:$0xff]  ;;  %v100_v3 = vld [vmem:[%s634_s1 + $0x238] sm:$0xff] }
  0x17   :  { %151 = vmatpush.msra.mxu1 %v50_v40  ;;  %202 = vmatpush.msra.mxu3 %v83_v42  ;;  %v14_v63 = vld [vmem:[%s635_s0] sm:$0xff]  ;;  %v17_v4 = vld [vmem:[%s635_s0 + $0x18] sm:$0xff]  ;;  %v99_v5 = vld [vmem:[%s634_s1 + $0x230] sm:$0xff] }
  0x18   :  { %177 = vmatpush.msra.mxu2 %v66_v41  ;;  %126 = vmatpush.msra.mxu0 %v33_v43  ;;  %v77_v2 = vld [vmem:[%s634_s1 + $0x180] sm:$0xff]  ;;  %v98_v6 = vld [vmem:[%s634_s1 + $0x228] sm:$0xff]  ;;  %v20_v8 = vld [vmem:[%s635_s0 + $0x30] sm:$0xff] }
  0x19   :  { %152 = vmatpush.msra.mxu1 %v49_v44  ;;  %203 = vmatpush.msra.mxu3 %v82_v46  ;;  %v19_v7 = vld [vmem:[%s635_s0 + $0x28] sm:$0xff]  ;;  %v21_v9 = vld [vmem:[%s635_s0 + $0x38] sm:$0xff]  ;;  %v97_v10 = vld [vmem:[%s634_s1 + $0x220] sm:$0xff] }
  0x1a   :  { %178 = vmatpush.msra.mxu2 %v65_v45  ;;  %127 = vmatpush.msra.mxu0 %v32_v47  ;;  %v22_v11 = vld [vmem:[%s635_s0 + $0x40] sm:$0xff]  ;;  %v96_v12 = vld [vmem:[%s634_s1 + $0x218] sm:$0xff]  ;;  %v95_v13 = vld [vmem:[%s634_s1 + $0x210] sm:$0xff] }
  0x1b   :  { %153 = vmatpush.msra.mxu1 %v48_v48  ;;  %204 = vmatpush.msra.mxu3 %v81_v50  ;;  %v94_v14 = vld [vmem:[%s634_s1 + $0x208] sm:$0xff]  ;;  %v24_v15 = vld [vmem:[%s635_s0 + $0x50] sm:$0x3]  ;;  %v25_v16 = vld [vmem:[%s635_s0 + $0x58] sm:$0x3] }
  0x1c   :  { %179 = vmatpush.msra.mxu2 %v64_v49  ;;  %128 = vmatpush.msra.mxu0 %v31_v51  ;;  %v26_v17 = vld [vmem:[%s635_s0 + $0x60] sm:$0x3]  ;;  %v27_v18 = vld [vmem:[%s635_s0 + $0x68] sm:$0x3]  ;;  %v28_v22 = vld [vmem:[%s635_s0 + $0x70] sm:$0x3] }
  0x1d   :  { %154 = vmatpush.msra.mxu1 %v47_v52  ;;  %205 = vmatpush.msra.mxu3 %v80_v54  ;;  %v93_v19 = vld [vmem:[%s634_s1 + $0x200] sm:$0xff]  ;;  %v23_v21 = vld [vmem:[%s635_s0 + $0x48] sm:$0xff] }
  0x1e   :  { %180 = vmatpush.msra.mxu2 %v63_v53  ;;  %129 = vmatpush.msra.mxu0 %v30_v55  ;;  %v18_v20 = vld [vmem:[%s635_s0 + $0x20] sm:$0xff] }
  0x1f   :  { %155 = vmatpush.msra.mxu1 %v46_v56  ;;  %206 = vmatpush.msra.mxu3 %v79_v58  ;;  %v328_v25 = vld [vmem:[%s636_s2] ss:$0 sm:$0xff] }
  0x20   :  { %181 = vmatpush.msra.mxu2 %v62_v57  ;;  %130 = vmatpush.msra.mxu0 %v29_v59 }
  0x21   :  { %156 = vmatpush.msra.mxu1 %v45_v60  ;;  %207 = vmatpush.msra.mxu3 %v78_v62 }
  0x22   :  { %182 = vmatpush.msra.mxu2 %v61_v61  ;;  %131 = vmatmul.f32.vlgmr.msra.gmra.mxu0 %v14_v63 }
  0x23   :  { %157 = vmatmul.f32.vlgmr.msra.gmra.mxu1 %v15_v0  ;;  %183 = vmatmul.f32.vlgmr.msra.gmra.mxu2 %v16_v1 }
  0x24   :  { %208 = vmatpush.msra.mxu3 %v77_v2  ;;  %313 = vmatpush.msrb.mxu2 %v100_v3 }
  0x25   :  { %209 = vmatmul.f32.vlgmr.msra.gmra.mxu3 %v17_v4  ;;  %227 = vmatpush.msrb.mxu0 %v100_v3 }
  0x26   :  { %312 = vmatpush.msrb.mxu1 %v100_v3  ;;  %315 = vmatpush.msrb.mxu2 %v99_v5 }
  0x27   :  { %228 = vmatpush.msrb.mxu0 %v99_v5 }
  0x28   :  { %314 = vmatpush.msrb.mxu1 %v99_v5  ;;  %317 = vmatpush.msrb.mxu2 %v98_v6 }
  0x29   :  { %229 = vmatpush.msrb.mxu0 %v98_v6 }
  0x2a   :  { %316 = vmatpush.msrb.mxu1 %v98_v6  ;;  %134 = vmatmul.f32.gmra.mxu0 %v19_v7 }
  0x2b   :  { %160 = vmatmul.f32.gmra.mxu1 %v20_v8  ;;  %186 = vmatmul.f32.gmra.mxu2 %v21_v9 }
  0x2c   :  { %230 = vmatpush.msrb.mxu0 %v97_v10  ;;  %319 = vmatpush.msrb.mxu2 %v97_v10 }
  0x2d   :  { %212 = vmatmul.f32.gmra.mxu3 %v22_v11  ;;  %318 = vmatpush.msrb.mxu1 %v97_v10 }
  0x2e   :  { %231 = vmatpush.msrb.mxu0 %v96_v12  ;;  %321 = vmatpush.msrb.mxu2 %v96_v12 }
  0x2f   :  { %320 = vmatpush.msrb.mxu1 %v96_v12 }
  0x30   :  { %232 = vmatpush.msrb.mxu0 %v95_v13  ;;  %323 = vmatpush.msrb.mxu2 %v95_v13 }
  0x31   :  { %322 = vmatpush.msrb.mxu1 %v95_v13 }
  0x32   :  { %233 = vmatpush.msrb.mxu0 %v94_v14  ;;  %325 = vmatpush.msrb.mxu2 %v94_v14 }
  0x33   :  { %137 = vmatmul.f32.gmra.mxu0 %v24_v15  ;;  %163 = vmatmul.f32.gmra.mxu1 %v25_v16 }
  0x34   :  { %189 = vmatmul.f32.gmra.mxu2 %v26_v17  ;;  %324 = vmatpush.msrb.mxu1 %v94_v14 }
  0x35   :  { %215 = vmatmul.f32.gmra.mxu3 %v27_v18  ;;  %234 = vmatpush.msrb.mxu0 %v93_v19 }
  0x36   :  { %326 = vmatpush.msrb.mxu1 %v93_v19  ;;  %327 = vmatpush.msrb.mxu2 %v93_v19 }
  0x3b   :  { %309 = vmatmul.msk.f32.vlgmr.msrb.gmra.mxu0 %vm105_vm0, %v18_v20  ;;  %310 = vmatmul.msk.f32.vlgmr.msrb.gmra.mxu1 %vm105_vm0, %v23_v21 }
  0x3c   :  { %311 = vmatmul.msk.f32.vlgmr.msrb.gmra.mxu2 %vm105_vm0, %v28_v22 }
  0x9f   :  { %v132_v23 = vpop.f32.mrf.mxu0 }
  0xa0   :  { %v158_v24 = vpop.f32.mrf.mxu1  ;;  %v133_v30 = vadd.f32 %v328_v25, %v132_v23 }
  0xa2   :  { %v159_v32 = vadd.f32 %v158_v24, %v133_v30 }
  0xa6   :  { %v184_v26 = vpop.f32.mrf.mxu2 }
  0xa7   :  { %v135_v27 = vpop.f32.mrf.mxu0  ;;  %v185_v39 = vadd.f32 %v184_v26, %v159_v32 }
  0xa8   :  { %v161_v28 = vpop.f32.mrf.mxu1  ;;  %v210_v29 = vpop.f32.mrf.mxu3  ;;  %v136_v31 = vadd.f32 %v328_v25, %v135_v27 }
  0xa9   :  { %v211_v42 = vadd.f32 %v210_v29, %v185_v39 }
  0xaa   :  { %v162_v33 = vadd.f32 %v161_v28, %v136_v31 }
  0xae   :  { %v187_v34 = vpop.f32.mrf.mxu2 }
  0xaf   :  { %v188_v40 = vadd.f32 %v187_v34, %v162_v33 }
  0xb0   :  { %v138_v35 = vpop.f32.mrf.mxu0  ;;  %v164_v36 = vpop.f32.mrf.mxu1 }
  0xb1   :  { %v213_v37 = vpop.f32.mrf.mxu3  ;;  %v139_v38 = vadd.f32 %v328_v25, %v138_v35 }
  0xb2   :  { %v214_v43 = vadd.f32 %v213_v37, %v188_v40 }
  0xb3   :  { %v165_v41 = vadd.f32 %v164_v36, %v139_v38 }
  0xb7   :  { %v190_v44 = vpop.f32.mrf.mxu2 }
  0xb8   :  { %v236_v45 = vpop.f32.mrf.mxu0  ;;  %v239_v46 = vpop.f32.mrf.mxu1  ;;  %v191_v49 = vadd.f32 %v190_v44, %v165_v41 }
  0xb9   :  { %v237_v47 = vadd.f32 %v236_v45, %v211_v42  ;;  %v240_v48 = vadd.f32 %v239_v46, %v214_v43  ;;  %v216_v50 = vpop.f32.mrf.mxu3 }
  0xba   :  { %v217_v55 = vadd.f32 %v216_v50, %v191_v49 }
  0xbb   :  { %v245_v51 = vsub.f32 0.0, %v237_v47  ;;  %v246_v52 = vsub.f32 0.0, %v240_v48 }
  0xbd   :  { %v248_v53 = vmul.f32 1.442695, %v245_v51  ;;  %v250_v54 = vmul.f32 1.442695, %v246_v52 }
  0xbf   :  { %329 = vpow2.f32 %v248_v53  ;;  %v242_v56 = vpop.f32.mrf.mxu2 }
  0xc0   :  { %331 = vpow2.f32 %v250_v54  ;;  %v243_v57 = vadd.f32 %v242_v56, %v217_v55 }
  0xc2   :  { %v247_v58 = vsub.f32 0.0, %v243_v57 }
  0xc4   :  { %v252_v59 = vmul.f32 1.442695, %v247_v58 }
  0xc5   :  { %v330_v60 = vpop.eup %329 }
  0xc6   :  { %v332_v61 = vpop.eup %331  ;;  %v254_v62 = vadd.f32 1.0, %v330_v60  ;;  %333 = vpow2.f32 %v252_v59 }
  0xc7   :  { %v255_v63 = vadd.f32 1.0, %v332_v61 }
  0xc8   :  { %335 = vrcp.f32 %v254_v62  ;;  %v268_v7 = vand.u32 2147483648, %v254_v62  ;;  %v266_v10 = vand.u32 2147483647, %v254_v62  ;;  %vm262_vm3 = vweird.f32 %v254_v62 }
  0xc9   :  { %337 = vrcp.f32 %v255_v63  ;;  %v283_v11 = vand.u32 2147483648, %v255_v63  ;;  %v281_v13 = vand.u32 2147483647, %v255_v63  ;;  %vm277_vm5 = vweird.f32 %v255_v63 }
  0xca   :  { %v269_v16 = vor.u32 1.1754944e-38, %v268_v7  ;;  %vm267_vm6 = vcmp.eq.f32.partialorder %v266_v10, 8.507059e+37 }
  0xcb   :  { %v284_v20 = vor.u32 1.1754944e-38, %v283_v11  ;;  %vm282_vm8 = vcmp.eq.f32.partialorder %v281_v13, 8.507059e+37 }
  0xcc   :  { %v334_v0 = vpop.eup %333 }
  0xcd   :  { %v256_v1 = vadd.f32 1.0, %v334_v0 }
  0xce   :  { %v336_v2 = vpop.eup %335 }
  0xcf   :  { %v338_v3 = vpop.eup %337  ;;  %v258_v4 = vmul.f32 %v336_v2, %v254_v62  ;;  %339 = vrcp.f32 %v256_v1  ;;  %vm263_vm1 = vweird.f32 %v336_v2  ;;  %v298_v25 = vand.u32 2147483648, %v256_v1 }
  0xd0   :  { %v273_v5 = vmul.f32 %v338_v3, %v255_v63  ;;  %vm278_vm2 = vweird.f32 %v338_v3  ;;  %vm264_vm4 = vmor %vm262_vm3, %vm263_vm1  ;;  %v296_v27 = vand.u32 2147483647, %v256_v1  ;;  %vm292_vm10 = vweird.f32 %v256_v1 }
  0xd1   :  { %v259_v6 = vsub.f32 1.0, %v258_v4  ;;  %vm279_vm7 = vmor %vm277_vm5, %vm278_vm2  ;;  %v299_v29 = vor.u32 1.1754944e-38, %v298_v25 }
  0xd2   :  { %v274_v8 = vsub.f32 1.0, %v273_v5  ;;  %vm297_vm12 = vcmp.eq.f32.partialorder %v296_v27, 8.507059e+37 }
  0xd3   :  { %v260_v9 = vmul.f32 %v336_v2, %v259_v6 }
  0xd4   :  { %v275_v12 = vmul.f32 %v338_v3, %v274_v8 }
  0xd5   :  { %v340_v14 = vpop.eup %339  ;;  %v261_v15 = vadd.f32 %v336_v2, %v260_v9 }
  0xd6   :  { %v276_v17 = vadd.f32 %v338_v3, %v275_v12  ;;  %v288_v18 = vmul.f32 %v340_v14, %v256_v1  ;;  %vm293_vm9 = vweird.f32 %v340_v14 }
  0xd7   :  { %v265_v19 = vsel %vm264_vm4, %v336_v2, %v261_v15  ;;  %vm294_vm11 = vmor %vm292_vm10, %vm293_vm9 }
  0xd8   :  { %v270_v21 = vsel %vm267_vm6, %v269_v16, %v265_v19  ;;  %v280_v22 = vsel %vm279_vm7, %v338_v3, %v276_v17  ;;  %v289_v23 = vsub.f32 1.0, %v288_v18 }
  0xd9   :  { %302 = vst [vmem:[%s637_s3] sm:$0xff] %v270_v21  ;;  %v285_v24 = vsel %vm282_vm8, %v284_v20, %v280_v22 }
  0xda   :  { %303 = vst [vmem:[%s637_s3 + $0x8] sm:$0xff] %v285_v24  ;;  %v290_v26 = vmul.f32 %v340_v14, %v289_v23 }
  0xdc   :  { %v291_v28 = vadd.f32 %v340_v14, %v290_v26 }
  0xde   :  { %v295_v30 = vsel %vm294_vm11, %v340_v14, %v291_v28 }
  0xdf   :  { %v300_v31 = vsel %vm297_vm12, %v299_v29, %v295_v30 }
  0xe0   :  { %304 = vst [vmem:[%s637_s3 + $0x10] sm:$0x3] %v300_v31 }

// kernel: cae_forward.10
= control target key start
LH: loop header
LB: loop body
LE: loop exit
PB: predicated region body
PF: predicated region fallthrough
CT: control target
= control target key end

     0   :  { %s1333_s0 = inlined_call_operand.vmem [shape: f32[2,1152], index: 0, kind: input, shape index: {}]   ;;  %s1334_s1 = inlined_call_operand.vmem [shape: f32[1152,10], index: 1, kind: input, shape index: {}]   ;;  %s1335_s2 = inlined_call_operand.vmem [shape: f32[1,10], index: 2, kind: input, shape index: {}]   ;;  %s1336_s3 = inlined_call_operand.vmem [shape: f32[10,1152], index: 3, kind: input, shape index: {}]   ;;  %s1337_s4 = inlined_call_operand.vmem [shape: f32[1,1152], index: 4, kind: input, shape index: {}]   ;;  %s1338_s5 = inlined_call_operand.hbm [shape: f32[2,10], index: 5, kind: output, shape index: {0}]   ;;  %s1339_s6 = inlined_call_operand.vmem [shape: f32[2,1152], index: 6, kind: output, shape index: {1}]  }
   0x1   :  { %v41_v0 = vld [vmem:[%s1334_s1 + $0x78] sm:$0xff]  ;;  %v40_v1 = vld [vmem:[%s1334_s1 + $0x70] sm:$0xff]  ;;  %v39_v3 = vld [vmem:[%s1334_s1 + $0x68] sm:$0xff] }
   0x2   :  { %199 = vmatpush.msra.mxu0 %v41_v0  ;;  %v73_v2 = vld [vmem:[%s1334_s1 + $0x178] sm:$0xff]  ;;  %v72_v4 = vld [vmem:[%s1334_s1 + $0x170] sm:$0xff]  ;;  %v71_v7 = vld [vmem:[%s1334_s1 + $0x168] sm:$0xff] }
   0x3   :  { %239 = vmatpush.msra.mxu2 %v73_v2  ;;  %v89_v5 = vld [vmem:[%s1334_s1 + $0x1f8] sm:$0xff]  ;;  %v88_v8 = vld [vmem:[%s1334_s1 + $0x1f0] sm:$0xff]  ;;  %v38_v9 = vld [vmem:[%s1334_s1 + $0x60] sm:$0xff] }
   0x4   :  { %200 = vmatpush.msra.mxu0 %v40_v1  ;;  %259 = vmatpush.msra.mxu3 %v89_v5  ;;  %v57_v6 = vld [vmem:[%s1334_s1 + $0xf8] sm:$0xff]  ;;  %v56_v10 = vld [vmem:[%s1334_s1 + $0xf0] sm:$0xff]  ;;  %v70_v11 = vld [vmem:[%s1334_s1 + $0x160] sm:$0xff] }
   0x5   :  { %240 = vmatpush.msra.mxu2 %v72_v4  ;;  %219 = vmatpush.msra.mxu1 %v57_v6  ;;  %v87_v12 = vld [vmem:[%s1334_s1 + $0x1e8] sm:$0xff]  ;;  %v37_v14 = vld [vmem:[%s1334_s1 + $0x58] sm:$0xff]  ;;  %v86_v15 = vld [vmem:[%s1334_s1 + $0x1e0] sm:$0xff] }
   0x6   :  { %201 = vmatpush.msra.mxu0 %v39_v3  ;;  %260 = vmatpush.msra.mxu3 %v88_v8  ;;  %v55_v13 = vld [vmem:[%s1334_s1 + $0xe8] sm:$0xff]  ;;  %v69_v16 = vld [vmem:[%s1334_s1 + $0x158] sm:$0xff]  ;;  %v54_v17 = vld [vmem:[%s1334_s1 + $0xe0] sm:$0xff] }
   0x7   :  { %241 = vmatpush.msra.mxu2 %v71_v7  ;;  %220 = vmatpush.msra.mxu1 %v56_v10  ;;  %v36_v18 = vld [vmem:[%s1334_s1 + $0x50] sm:$0xff]  ;;  %v85_v19 = vld [vmem:[%s1334_s1 + $0x1d8] sm:$0xff]  ;;  %v35_v22 = vld [vmem:[%s1334_s1 + $0x48] sm:$0xff] }
   0x8   :  { %202 = vmatpush.msra.mxu0 %v38_v9  ;;  %261 = vmatpush.msra.mxu3 %v87_v12  ;;  %v68_v20 = vld [vmem:[%s1334_s1 + $0x150] sm:$0xff]  ;;  %v53_v21 = vld [vmem:[%s1334_s1 + $0xd8] sm:$0xff]  ;;  %v67_v24 = vld [vmem:[%s1334_s1 + $0x148] sm:$0xff] }
   0x9   :  { %242 = vmatpush.msra.mxu2 %v70_v11  ;;  %221 = vmatpush.msra.mxu1 %v55_v13  ;;  %v84_v23 = vld [vmem:[%s1334_s1 + $0x1d0] sm:$0xff]  ;;  %v34_v26 = vld [vmem:[%s1334_s1 + $0x40] sm:$0xff]  ;;  %v83_v27 = vld [vmem:[%s1334_s1 + $0x1c8] sm:$0xff] }
   0xa   :  { %203 = vmatpush.msra.mxu0 %v37_v14  ;;  %262 = vmatpush.msra.mxu3 %v86_v15  ;;  %v52_v25 = vld [vmem:[%s1334_s1 + $0xd0] sm:$0xff]  ;;  %v66_v28 = vld [vmem:[%s1334_s1 + $0x140] sm:$0xff]  ;;  %v51_v29 = vld [vmem:[%s1334_s1 + $0xc8] sm:$0xff] }
   0xb   :  { %243 = vmatpush.msra.mxu2 %v69_v16  ;;  %222 = vmatpush.msra.mxu1 %v54_v17  ;;  %v33_v30 = vld [vmem:[%s1334_s1 + $0x38] sm:$0xff]  ;;  %v82_v31 = vld [vmem:[%s1334_s1 + $0x1c0] sm:$0xff]  ;;  %v32_v34 = vld [vmem:[%s1334_s1 + $0x30] sm:$0xff] }
   0xc   :  { %204 = vmatpush.msra.mxu0 %v36_v18  ;;  %263 = vmatpush.msra.mxu3 %v85_v19  ;;  %v65_v32 = vld [vmem:[%s1334_s1 + $0x138] sm:$0xff]  ;;  %v50_v33 = vld [vmem:[%s1334_s1 + $0xc0] sm:$0xff]  ;;  %v64_v36 = vld [vmem:[%s1334_s1 + $0x130] sm:$0xff] }
   0xd   :  { %244 = vmatpush.msra.mxu2 %v68_v20  ;;  %223 = vmatpush.msra.mxu1 %v53_v21  ;;  %v81_v35 = vld [vmem:[%s1334_s1 + $0x1b8] sm:$0xff]  ;;  %v31_v38 = vld [vmem:[%s1334_s1 + $0x28] sm:$0xff]  ;;  %v80_v39 = vld [vmem:[%s1334_s1 + $0x1b0] sm:$0xff] }
   0xe   :  { %205 = vmatpush.msra.mxu0 %v35_v22  ;;  %264 = vmatpush.msra.mxu3 %v84_v23  ;;  %v49_v37 = vld [vmem:[%s1334_s1 + $0xb8] sm:$0xff]  ;;  %v63_v40 = vld [vmem:[%s1334_s1 + $0x128] sm:$0xff]  ;;  %v48_v41 = vld [vmem:[%s1334_s1 + $0xb0] sm:$0xff] }
   0xf   :  { %245 = vmatpush.msra.mxu2 %v67_v24  ;;  %224 = vmatpush.msra.mxu1 %v52_v25  ;;  %v30_v42 = vld [vmem:[%s1334_s1 + $0x20] sm:$0xff]  ;;  %v79_v43 = vld [vmem:[%s1334_s1 + $0x1a8] sm:$0xff]  ;;  %v29_v46 = vld [vmem:[%s1334_s1 + $0x18] sm:$0xff] }
  0x10   :  { %206 = vmatpush.msra.mxu0 %v34_v26  ;;  %265 = vmatpush.msra.mxu3 %v83_v27  ;;  %v62_v44 = vld [vmem:[%s1334_s1 + $0x120] sm:$0xff]  ;;  %v47_v45 = vld [vmem:[%s1334_s1 + $0xa8] sm:$0xff]  ;;  %v61_v48 = vld [vmem:[%s1334_s1 + $0x118] sm:$0xff] }
  0x11   :  { %246 = vmatpush.msra.mxu2 %v66_v28  ;;  %225 = vmatpush.msra.mxu1 %v51_v29  ;;  %v78_v47 = vld [vmem:[%s1334_s1 + $0x1a0] sm:$0xff]  ;;  %v28_v50 = vld [vmem:[%s1334_s1 + $0x10] sm:$0xff]  ;;  %v77_v51 = vld [vmem:[%s1334_s1 + $0x198] sm:$0xff] }
  0x12   :  { %207 = vmatpush.msra.mxu0 %v33_v30  ;;  %266 = vmatpush.msra.mxu3 %v82_v31  ;;  %v46_v49 = vld [vmem:[%s1334_s1 + $0xa0] sm:$0xff]  ;;  %v60_v52 = vld [vmem:[%s1334_s1 + $0x110] sm:$0xff]  ;;  %v45_v53 = vld [vmem:[%s1334_s1 + $0x98] sm:$0xff] }
  0x13   :  { %247 = vmatpush.msra.mxu2 %v65_v32  ;;  %226 = vmatpush.msra.mxu1 %v50_v33  ;;  %v27_v54 = vld [vmem:[%s1334_s1 + $0x8] sm:$0xff]  ;;  %v76_v55 = vld [vmem:[%s1334_s1 + $0x190] sm:$0xff]  ;;  %v26_v58 = vld [vmem:[%s1334_s1] sm:$0xff] }
  0x14   :  { %208 = vmatpush.msra.mxu0 %v32_v34  ;;  %267 = vmatpush.msra.mxu3 %v81_v35  ;;  %v59_v56 = vld [vmem:[%s1334_s1 + $0x108] sm:$0xff]  ;;  %v44_v57 = vld [vmem:[%s1334_s1 + $0x90] sm:$0xff]  ;;  %v105_v60 = vld [vmem:[%s1334_s1 + $0x278] sm:$0xff] }
  0x15   :  { %248 = vmatpush.msra.mxu2 %v64_v36  ;;  %227 = vmatpush.msra.mxu1 %v49_v37  ;;  %v75_v59 = vld [vmem:[%s1334_s1 + $0x188] sm:$0xff]  ;;  %v58_v61 = vld [vmem:[%s1334_s1 + $0x100] sm:$0xff]  ;;  %v137_v62 = vld [vmem:[%s1334_s1 + $0x378] sm:$0xff] }
  0x16   :  { %209 = vmatpush.msra.mxu0 %v31_v38  ;;  %268 = vmatpush.msra.mxu3 %v80_v39  ;;  %v43_v63 = vld [vmem:[%s1334_s1 + $0x88] sm:$0xff]  ;;  %v104_v0 = vld [vmem:[%s1334_s1 + $0x270] sm:$0xff]  ;;  %v74_v1 = vld [vmem:[%s1334_s1 + $0x180] sm:$0xff] }
  0x17   :  { %249 = vmatpush.msra.mxu2 %v63_v40  ;;  %228 = vmatpush.msra.mxu1 %v48_v41  ;;  %v136_v2 = vld [vmem:[%s1334_s1 + $0x370] sm:$0xff]  ;;  %v153_v3 = vld [vmem:[%s1334_s1 + $0x3f8] sm:$0xff]  ;;  %v103_v4 = vld [vmem:[%s1334_s1 + $0x268] sm:$0xff] }
  0x18   :  { %210 = vmatpush.msra.mxu0 %v30_v42  ;;  %269 = vmatpush.msra.mxu3 %v79_v43  ;;  %v42_v5 = vld [vmem:[%s1334_s1 + $0x80] sm:$0xff]  ;;  %v121_v6 = vld [vmem:[%s1334_s1 + $0x2f8] sm:$0xff]  ;;  %v135_v7 = vld [vmem:[%s1334_s1 + $0x368] sm:$0xff] }
  0x19   :  { %250 = vmatpush.msra.mxu2 %v62_v44  ;;  %229 = vmatpush.msra.mxu1 %v47_v45  ;;  %v102_v8 = vld [vmem:[%s1334_s1 + $0x260] sm:$0xff]  ;;  %v152_v9 = vld [vmem:[%s1334_s1 + $0x3f0] sm:$0xff]  ;;  %v101_v12 = vld [vmem:[%s1334_s1 + $0x258] sm:$0xff] }
  0x1a   :  { %211 = vmatpush.msra.mxu0 %v29_v46  ;;  %270 = vmatpush.msra.mxu3 %v78_v47  ;;  %v120_v10 = vld [vmem:[%s1334_s1 + $0x2f0] sm:$0xff]  ;;  %v134_v11 = vld [vmem:[%s1334_s1 + $0x360] sm:$0xff]  ;;  %v151_v13 = vld [vmem:[%s1334_s1 + $0x3e8] sm:$0xff] }
  0x1b   :  { %251 = vmatpush.msra.mxu2 %v61_v48  ;;  %230 = vmatpush.msra.mxu1 %v46_v49  ;;  %v23_v14 = vld [vmem:[%s1333_s0] sm:$0xff]  ;;  %v119_v15 = vld [vmem:[%s1334_s1 + $0x2e8] sm:$0xff]  ;;  %v133_v16 = vld [vmem:[%s1334_s1 + $0x358] sm:$0xff] }
  0x1c   :  { %212 = vmatpush.msra.mxu0 %v28_v50  ;;  %271 = vmatpush.msra.mxu3 %v77_v51  ;;  %177 = vst [vmem:[#allocation1] ss:$4 sm:$0xff] %v23_v14  ;;  %v100_v17 = vld [vmem:[%s1334_s1 + $0x250] sm:$0xff]  ;;  %v150_v18 = vld [vmem:[%s1334_s1 + $0x3e0] sm:$0xff]  ;;  %v99_v19 = vld [vmem:[%s1334_s1 + $0x248] sm:$0xff] }
  0x1d   :  { %252 = vmatpush.msra.mxu2 %v60_v52  ;;  %231 = vmatpush.msra.mxu1 %v45_v53  ;;  %v118_v20 = vld [vmem:[%s1334_s1 + $0x2e0] sm:$0xff]  ;;  %v132_v21 = vld [vmem:[%s1334_s1 + $0x350] sm:$0xff]  ;;  %v149_v23 = vld [vmem:[%s1334_s1 + $0x3d8] sm:$0xff] }
  0x1e   :  { %213 = vmatpush.msra.mxu0 %v27_v54  ;;  %272 = vmatpush.msra.mxu3 %v76_v55  ;;  %v98_v22 = vld [vmem:[%s1334_s1 + $0x240] sm:$0xff]  ;;  %v117_v24 = vld [vmem:[%s1334_s1 + $0x2d8] sm:$0xff]  ;;  %v131_v25 = vld [vmem:[%s1334_s1 + $0x348] sm:$0xff] }
  0x1f   :  { %253 = vmatpush.msra.mxu2 %v59_v56  ;;  %232 = vmatpush.msra.mxu1 %v44_v57  ;;  %v148_v26 = vld [vmem:[%s1334_s1 + $0x3d0] sm:$0xff]  ;;  %v97_v28 = vld [vmem:[%s1334_s1 + $0x238] sm:$0xff]  ;;  %v130_v29 = vld [vmem:[%s1334_s1 + $0x340] sm:$0xff] }
  0x20   :  { %214 = vmatpush.msra.mxu0 %v26_v58  ;;  %273 = vmatpush.msra.mxu3 %v75_v59  ;;  %v116_v27 = vld [vmem:[%s1334_s1 + $0x2d0] sm:$0xff]  ;;  %v147_v30 = vld [vmem:[%s1334_s1 + $0x3c8] sm:$0xff]  ;;  %v129_v33 = vld [vmem:[%s1334_s1 + $0x338] sm:$0xff] }
  0x21   :  { %254 = vmatpush.msra.mxu2 %v58_v61  ;;  %233 = vmatpush.msra.mxu1 %v43_v63  ;;  %v24_v31 = vld [vmem:[%s1333_s0 + $0x8] sm:$0xff]  ;;  %v25_v34 = vld [vmem:[%s1333_s0 + $0x10] sm:$0x3]  ;;  %v146_v40 = vld [vmem:[%s1334_s1 + $0x3c0] sm:$0xff] }
  0x22   :  { %279 = vmatpush.msrb.mxu0 %v105_v60  ;;  %274 = vmatpush.msra.mxu3 %v74_v1  ;;  %v115_v32 = vld [vmem:[%s1334_s1 + $0x2c8] sm:$0xff]  ;;  %179 = vst [vmem:[#allocation1 + $0x20] ss:$4 sm:$0xff] %v24_v31  ;;  %v96_v39 = vld [vmem:[%s1334_s1 + $0x230] sm:$0xff]  ;;  %v114_v42 = vld [vmem:[%s1334_s1 + $0x2c0] sm:$0xff] }
  0x23   :  { %319 = vmatpush.msrb.mxu2 %v137_v62  ;;  %234 = vmatpush.msra.mxu1 %v42_v5  ;;  %v182_v35 = vld.sshfl [vmem:[#allocation1 + $0x10] sm:$0xff pattern:$0x73625140]  ;;  %v180_v36 = vld.sshfl [vmem:[#allocation1] sm:$0xff pattern:$0x73625140] }
  0x24   :  { %280 = vmatpush.msrb.mxu0 %v104_v0  ;;  %339 = vmatpush.msrb.mxu3 %v153_v3  ;;  %v183_v37 = vld.sshfl [vmem:[#allocation1 + $0x18] sm:$0xff pattern:$0x73625140]  ;;  %v1087_v38 = vld.sshfl [vmem:[#allocation1 + $0x8] sm:$0xff pattern:$0x73625140] }
  0x25   :  { %320 = vmatpush.msrb.mxu2 %v136_v2  ;;  %299 = vmatpush.msrb.mxu1 %v121_v6  ;;  %188 = vst [vmem:[#allocation1] ss:$4 sm:$0xff] %v25_v34  ;;  %v95_v41 = vld [vmem:[%s1334_s1 + $0x228] sm:$0xff]  ;;  %v128_v43 = vld [vmem:[%s1334_s1 + $0x330] sm:$0xff]  ;;  %v145_v44 = vld [vmem:[%s1334_s1 + $0x3b8] sm:$0xff] }
  0x26   :  { %281 = vmatpush.msrb.mxu0 %v103_v4  ;;  %340 = vmatpush.msrb.mxu3 %v152_v9  ;;  %v113_v45 = vld [vmem:[%s1334_s1 + $0x2b8] sm:$0xff]  ;;  %v127_v46 = vld [vmem:[%s1334_s1 + $0x328] sm:$0xff] }
  0x27   :  { %321 = vmatpush.msrb.mxu2 %v135_v7  ;;  %300 = vmatpush.msrb.mxu1 %v120_v10 }
  0x28   :  { %282 = vmatpush.msrb.mxu0 %v102_v8  ;;  %341 = vmatpush.msrb.mxu3 %v151_v13 }
  0x29   :  { %322 = vmatpush.msrb.mxu2 %v134_v11  ;;  %301 = vmatpush.msrb.mxu1 %v119_v15 }
  0x2a   :  { %283 = vmatpush.msrb.mxu0 %v101_v12  ;;  %342 = vmatpush.msrb.mxu3 %v150_v18 }
  0x2b   :  { %323 = vmatpush.msrb.mxu2 %v133_v16  ;;  %302 = vmatpush.msrb.mxu1 %v118_v20 }
  0x2c   :  { %284 = vmatpush.msrb.mxu0 %v100_v17  ;;  %343 = vmatpush.msrb.mxu3 %v149_v23 }
  0x2d   :  { %324 = vmatpush.msrb.mxu2 %v132_v21  ;;  %303 = vmatpush.msrb.mxu1 %v117_v24 }
  0x2e   :  { %285 = vmatpush.msrb.mxu0 %v99_v19  ;;  %344 = vmatpush.msrb.mxu3 %v148_v26 }
  0x2f   :  { %325 = vmatpush.msrb.mxu2 %v131_v25  ;;  %304 = vmatpush.msrb.mxu1 %v116_v27 }
  0x30   :  { %286 = vmatpush.msrb.mxu0 %v98_v22  ;;  %345 = vmatpush.msrb.mxu3 %v147_v30 }
  0x31   :  { %326 = vmatpush.msrb.mxu2 %v130_v29  ;;  %305 = vmatpush.msrb.mxu1 %v115_v32 }
  0x32   :  { %287 = vmatpush.msrb.mxu0 %v97_v28  ;;  %346 = vmatpush.msrb.mxu3 %v146_v40 }
  0x33   :  { %327 = vmatpush.msrb.mxu2 %v129_v33 }
  0x34   :  { %288 = vmatpush.msrb.mxu0 %v96_v39 }
  0x35   :  { %12 = vsyncpa [#allocation3], 0  ;;  %v94_v47 = vld [vmem:[%s1334_s1 + $0x220] sm:$0xff]  ;;  %306 = vmatpush.msrb.mxu1 %v114_v42  ;;  %328 = vmatpush.msrb.mxu2 %v128_v43  ;;  %v144_v48 = vld [vmem:[%s1334_s1 + $0x3b0] sm:$0xff]  ;;  %vm425_vm0 = vcmask 1041408   ;;  %vm421_vm1 = vcmask 80896  }
  0x36   :  { %289 = vmatpush.msrb.mxu0 %v95_v41  ;;  %347 = vmatpush.msrb.mxu3 %v145_v44  ;;  %v112_v49 = vld [vmem:[%s1334_s1 + $0x2b0] sm:$0xff]  ;;  %v126_v50 = vld [vmem:[%s1334_s1 + $0x320] sm:$0xff]  ;;  %v93_v51 = vld [vmem:[%s1334_s1 + $0x218] sm:$0xff]  ;;  %vm379_vm2 = vcmask 74752   ;;  %vm675_vm7 = vcmask 1045508   ;;  %vm677_vm8 = vcmask 1043456  }
  0x37   :  { %307 = vmatpush.msrb.mxu1 %v113_v45  ;;  %329 = vmatpush.msrb.mxu2 %v127_v46  ;;  %v143_v52 = vld [vmem:[%s1334_s1 + $0x3a8] sm:$0xff]  ;;  %v92_v54 = vld [vmem:[%s1334_s1 + $0x210] sm:$0xff]  ;;  %v125_v55 = vld [vmem:[%s1334_s1 + $0x318] sm:$0xff] }
  0x38   :  { %290 = vmatpush.msrb.mxu0 %v94_v47  ;;  %348 = vmatpush.msrb.mxu3 %v144_v48  ;;  %v111_v53 = vld [vmem:[%s1334_s1 + $0x2a8] sm:$0xff]  ;;  %v142_v56 = vld [vmem:[%s1334_s1 + $0x3a0] sm:$0xff]  ;;  %v124_v59 = vld [vmem:[%s1334_s1 + $0x310] sm:$0xff] }
  0x39   :  { %308 = vmatpush.msrb.mxu1 %v112_v49  ;;  %330 = vmatpush.msrb.mxu2 %v126_v50  ;;  %v91_v57 = vld [vmem:[%s1334_s1 + $0x208] sm:$0xff]  ;;  %v110_v58 = vld [vmem:[%s1334_s1 + $0x2a0] sm:$0xff]  ;;  %v141_v61 = vld [vmem:[%s1334_s1 + $0x398] sm:$0xff] }
  0x3a   :  { %291 = vmatpush.msrb.mxu0 %v93_v51  ;;  %349 = vmatpush.msrb.mxu3 %v143_v52  ;;  %v90_v60 = vld [vmem:[%s1334_s1 + $0x200] sm:$0xff]  ;;  %v169_v62 = vld [vmem:[%s1334_s1 + $0x478] sm:$0xff]  ;;  %v123_v0 = vld [vmem:[%s1334_s1 + $0x308] sm:$0xff] }
  0x3b   :  { %255 = vmatmul.f32.vlgmr.msra.gmra.mxu2 %v182_v35  ;;  %309 = vmatpush.msrb.mxu1 %v111_v53  ;;  %v109_v63 = vld [vmem:[%s1334_s1 + $0x298] sm:$0xff]  ;;  %v168_v1 = vld [vmem:[%s1334_s1 + $0x470] sm:$0xff]  ;;  %v122_v4 = vld [vmem:[%s1334_s1 + $0x300] sm:$0xff] }
  0x3c   :  { %292 = vmatpush.msrb.mxu0 %v92_v54  ;;  %331 = vmatpush.msrb.mxu2 %v125_v55  ;;  %v140_v2 = vld [vmem:[%s1334_s1 + $0x390] sm:$0xff]  ;;  %v167_v5 = vld [vmem:[%s1334_s1 + $0x468] sm:$0xff]  ;;  %v166_v9 = vld [vmem:[%s1334_s1 + $0x460] sm:$0xff] }
  0x3d   :  { %350 = vmatpush.msrb.mxu3 %v142_v56  ;;  %215 = vmatmul.f32.vlgmr.msra.gmra.mxu0 %v180_v36  ;;  %v108_v3 = vld [vmem:[%s1334_s1 + $0x290] sm:$0xff]  ;;  %v139_v6 = vld [vmem:[%s1334_s1 + $0x388] sm:$0xff]  ;;  %v138_v10 = vld [vmem:[%s1334_s1 + $0x380] sm:$0xff] }
  0x3e   :  { %293 = vmatpush.msrb.mxu0 %v91_v57  ;;  %275 = vmatmul.f32.vlgmr.msra.gmra.mxu3 %v183_v37  ;;  %v186_v7 = vld.sshfl [vmem:[#allocation1 + $0x30] sm:$0xff pattern:$0x73625140]  ;;  %v107_v8 = vld [vmem:[%s1334_s1 + $0x288] sm:$0xff]  ;;  %v165_v13 = vld [vmem:[%s1334_s1 + $0x458] sm:$0xff] }
  0x3f   :  { %310 = vmatpush.msrb.mxu1 %v110_v58  ;;  %332 = vmatpush.msrb.mxu2 %v124_v59  ;;  %v184_v11 = vld.sshfl [vmem:[#allocation1 + $0x20] sm:$0xff pattern:$0x73625140]  ;;  %v187_v12 = vld.sshfl [vmem:[#allocation1 + $0x38] sm:$0xff pattern:$0x73625140] }
  0x40   :  { %294 = vmatpush.msrb.mxu0 %v90_v60  ;;  %351 = vmatpush.msrb.mxu3 %v141_v61  ;;  %v106_v14 = vld [vmem:[%s1334_s1 + $0x280] sm:$0xff]  ;;  %v185_v15 = vld.sshfl [vmem:[#allocation1 + $0x28] sm:$0xff pattern:$0x73625140]  ;;  %v164_v16 = vld [vmem:[%s1334_s1 + $0x450] sm:$0xff] }
  0x41   :  { %235 = vmatmul.f32.vlgmr.msra.gmra.mxu1 %v1087_v38  ;;  %333 = vmatpush.msrb.mxu2 %v123_v0  ;;  %v163_v17 = vld [vmem:[%s1334_s1 + $0x448] sm:$0xff]  ;;  %v162_v18 = vld [vmem:[%s1334_s1 + $0x440] sm:$0xff]  ;;  %v161_v19 = vld [vmem:[%s1334_s1 + $0x438] sm:$0xff] }
  0x42   :  { %359 = vmatpush.msra.mxu0 %v169_v62  ;;  %311 = vmatpush.msrb.mxu1 %v109_v63  ;;  %v160_v20 = vld [vmem:[%s1334_s1 + $0x430] sm:$0xff]  ;;  %v159_v21 = vld [vmem:[%s1334_s1 + $0x428] sm:$0xff]  ;;  %v158_v22 = vld [vmem:[%s1334_s1 + $0x420] sm:$0xff] }
  0x43   :  { %352 = vmatpush.msrb.mxu3 %v140_v2  ;;  %334 = vmatpush.msrb.mxu2 %v122_v4  ;;  %v157_v23 = vld [vmem:[%s1334_s1 + $0x418] sm:$0xff]  ;;  %v156_v24 = vld [vmem:[%s1334_s1 + $0x410] sm:$0xff]  ;;  %v155_v25 = vld [vmem:[%s1334_s1 + $0x408] sm:$0xff] }
  0x44   :  { %360 = vmatpush.msra.mxu0 %v168_v1  ;;  %312 = vmatpush.msrb.mxu1 %v108_v3  ;;  %v154_v26 = vld [vmem:[%s1334_s1 + $0x400] sm:$0xff]  ;;  %v391_v28 = vld [vmem:[%s1336_s3 + $0x50] sm:$0x3]  ;;  %v382_v29 = vld [vmem:[%s1336_s3 + $0x8] sm:$0xff] }
  0x45   :  { %353 = vmatpush.msrb.mxu3 %v139_v6  ;;  %335 = vmatmul.f32.vlgmr.msrb.gmra.mxu2 %v186_v7  ;;  %v189_v27 = vld.sshfl [vmem:[#allocation1] sm:$0xff pattern:$0x73625140]  ;;  %v392_v30 = vld [vmem:[%s1336_s3 + $0x58] sm:$0x3]  ;;  %v383_v35 = vld [vmem:[%s1336_s3 + $0x10] sm:$0xff] }
  0x46   :  { %361 = vmatpush.msra.mxu0 %v167_v5  ;;  %313 = vmatpush.msrb.mxu1 %v107_v8  ;;  %v726_v31 = vld [vmem:[%s1335_s2] ss:$0 sm:$0xff]  ;;  %v390_v32 = vld [vmem:[%s1336_s3 + $0x48] sm:$0x3]  ;;  %v395_v40 = vld [vmem:[%s1336_s3 + $0x70] sm:$0x3] }
  0x47   :  { %354 = vmatpush.msrb.mxu3 %v138_v10  ;;  %295 = vmatmul.f32.vlgmr.msrb.gmra.mxu0 %v184_v11  ;;  %v381_v34 = vld [vmem:[%s1336_s3] sm:$0xff]  ;;  %v394_v38 = vld [vmem:[%s1336_s3 + $0x68] sm:$0x3]  ;;  %v384_v42 = vld [vmem:[%s1336_s3 + $0x18] sm:$0xff]  ;;  %s694_s2 = sshll.u32 %s1338_s5, 4  ;;  %s695_s2 = int_to_ptr.hbm [resolvable:$true] %s694_s2 }
  0x48   :  { %362 = vmatpush.msra.mxu0 %v166_v9  ;;  %355 = vmatmul.f32.vlgmr.msrb.gmra.mxu3 %v187_v12  ;;  %v385_v39 = vld [vmem:[%s1336_s3 + $0x20] sm:$0xff]  ;;  %v386_v43 = vld [vmem:[%s1336_s3 + $0x28] sm:$0xff]  ;;  %v396_v61 = vld [vmem:[%s1336_s3 + $0x78] sm:$0x3] }
  0x49   :  { %314 = vmatpush.msrb.mxu1 %v106_v14  ;;  %709 = vmatpush.msk.msra.mxu2 %vm425_vm0, %v391_v28  ;;  %v393_v41 = vld [vmem:[%s1336_s3 + $0x60] sm:$0x3]  ;;  %v398_v60 = vld [vmem:[%s1336_s3 + $0x88] sm:$0x3]  ;;  %v388_v62 = vld [vmem:[%s1336_s3 + $0x38] sm:$0xff] }
  0x4a   :  { %363 = vmatpush.msra.mxu0 %v165_v13  ;;  %315 = vmatmul.f32.vlgmr.msrb.gmra.mxu1 %v185_v15  ;;  %v397_v59 = vld [vmem:[%s1336_s3 + $0x80] sm:$0x3]  ;;  %v387_v63 = vld [vmem:[%s1336_s3 + $0x30] sm:$0xff] }
  0x4b   :  { %711 = vmatpush.msk.msra.mxu3 %vm425_vm0, %v392_v30  ;;  %488 = vmatpush.msra.mxu2 %v382_v29  ;;  %v389_v0 = vld [vmem:[%s1336_s3 + $0x40] sm:$0xff]  ;;  %s754_s3 = smov [#allocation2]  }
  0x4c   :  { %364 = vmatpush.msra.mxu0 %v164_v16  ;;  %707 = vmatpush.msk.msra.mxu1 %vm425_vm0, %v390_v32  ;;  %s692_s8 = sshll.u32 %s754_s3, 4  ;;  %v399_v1 = vld [vmem:[%s1337_s4] sm:$0xff]  ;;  %s693_s8 = int_to_ptr.vmem [resolvable:$true] %s692_s8 }
  0x4d   :  { %508 = vmatpush.msra.mxu3 %v383_v35  ;;  %715 = vmatpush.msk.msrb.mxu2 %vm425_vm0, %v394_v38  ;;  %v403_v3 = vperm.slane %v399_v1, 0  ;;  %v404_v4 = vperm.slane %v399_v1, 1  ;;  %v405_v5 = vperm.slane %v399_v1, 2  ;;  %v406_v6 = vperm.slane %v399_v1, 3  ;;  %v727_v38 = vld [vmem:[%s1337_s4 + $0x8] ss:$0 sm:$0xff] }
  0x4e   :  { %365 = vmatpush.msra.mxu0 %v163_v17  ;;  %468 = vmatpush.msra.mxu1 %v381_v34  ;;  %v407_v34 = vperm.slane %v399_v1, 4 }
  0x4f   :  { %717 = vmatpush.msk.msrb.mxu3 %vm425_vm0, %v395_v40  ;;  %548 = vmatpush.msrb.mxu2 %v385_v39 }
  0x50   :  { %366 = vmatpush.msra.mxu0 %v162_v18  ;;  %713 = vmatpush.msk.msrb.mxu1 %vm425_vm0, %v393_v41 }
  0x51   :  { %568 = vmatpush.msrb.mxu3 %v386_v43 }
  0x52   :  { %367 = vmatpush.msra.mxu0 %v161_v19  ;;  %528 = vmatpush.msrb.mxu1 %v384_v42 }
  0x54   :  { %368 = vmatpush.msra.mxu0 %v160_v20 }
  0x56   :  { %369 = vmatpush.msra.mxu0 %v159_v21  ;;  %v408_v21 = vperm.slane %v399_v1, 5 }
  0x58   :  { %370 = vmatpush.msra.mxu0 %v158_v22 }
  0x5a   :  { %371 = vmatpush.msra.mxu0 %v157_v23  ;;  %v409_v23 = vperm.slane %v399_v1, 6 }
  0x5c   :  { %372 = vmatpush.msra.mxu0 %v156_v24 }
  0x5e   :  { %373 = vmatpush.msra.mxu0 %v155_v25 }
  0x60   :  { %374 = vmatpush.msra.mxu0 %v154_v26 }
  0x61   :  { %375 = vmatmul.f32.vlgmr.msra.gmra.mxu0 %v189_v27 }
  0xba   :  { %v216_v33 = vpop.f32.mrf.mxu0 }
  0xbb   :  { %v217_v36 = vadd.f32 %v726_v31, %v216_v33 }
  0xbe   :  { %v236_v37 = vpop.f32.mrf.mxu1  ;;  %v256_v45 = vpop.f32.mrf.mxu2 }
  0xbf   :  { %v237_v44 = vadd.f32 %v236_v37, %v217_v36  ;;  %v410_v37 = vperm.slane %v399_v1, 7 }
  0xc1   :  { %v257_v46 = vadd.f32 %v256_v45, %v237_v44  ;;  %v276_v47 = vpop.f32.mrf.mxu3 }
  0xc3   :  { %v277_v48 = vadd.f32 %v276_v47, %v257_v46 }
  0xc4   :  { %v296_v49 = vpop.f32.mrf.mxu0 }
  0xc5   :  { %v297_v50 = vadd.f32 %v296_v49, %v277_v48 }
  0xc7   :  { %v316_v51 = vpop.f32.mrf.mxu1 }
  0xc8   :  { %v317_v52 = vadd.f32 %v316_v51, %v297_v50  ;;  %v336_v53 = vpop.f32.mrf.mxu2 }
  0xca   :  { %v337_v54 = vadd.f32 %v336_v53, %v317_v52 }
  0xcb   :  { %v356_v55 = vpop.f32.mrf.mxu3 }
  0xcc   :  { %v357_v56 = vadd.f32 %v356_v55, %v337_v54 }
  0xde   :  { %v376_v57 = vpop.f32.mrf.mxu0 }
  0xdf   :  { %v377_v58 = vadd.f32 %v376_v57, %v357_v56 }
  0xe1   :  { %708 = vmatmul.msk.f32.vlgmr.msra.gmra.mxu1 %vm421_vm1, %v377_v58  ;;  %710 = vmatmul.msk.f32.vlgmr.msra.gmra.mxu2 %vm421_vm1, %v377_v58  ;;  %380 = vst.msk [vmem:[#allocation2] sm:$0x3] %vm379_vm2, %v377_v58 }
  0xe2   :  { %712 = vmatmul.msk.f32.vlgmr.msra.gmra.mxu3 %vm421_vm1, %v377_v58  ;;  %721 = vmatpush.msk.msra.mxu2 %vm425_vm0, %v397_v59  ;;  %697 = dma.vmem_to_hbm [thread:$0]  %s693_s8, 32, %s695_s2, [#allocation3]  }
  0xe3   :  { %723 = vmatpush.msk.msra.mxu3 %vm425_vm0, %v398_v60  ;;  %719 = vmatpush.msk.msra.mxu1 %vm425_vm0, %v396_v61 }
  0xe4   :  { %608 = vmatpush.msra.mxu2 %v388_v62 }
  0xe5   :  { %588 = vmatpush.msra.mxu1 %v387_v63  ;;  %628 = vmatpush.msra.mxu3 %v389_v0 }
  0xe9   :  { %714 = vmatmul.msk.f32.vlgmr.msrb.gmra.mxu1 %vm421_vm1, %v377_v58  ;;  %716 = vmatmul.msk.f32.vlgmr.msrb.gmra.mxu2 %vm421_vm1, %v377_v58 }
  0xea   :  { %718 = vmatmul.msk.f32.vlgmr.msrb.gmra.mxu3 %vm421_vm1, %v377_v58 }
  0xf1   :  { %720 = vmatmul.msk.f32.vlgmr.msra.gmra.mxu1 %vm421_vm1, %v377_v58  ;;  %722 = vmatmul.msk.f32.vlgmr.msra.gmra.mxu2 %vm421_vm1, %v377_v58 }
  0xf2   :  { %724 = vmatmul.msk.f32.vlgmr.msra.gmra.mxu3 %vm421_vm1, %v377_v58 }
 0x15e   :  { %v470_v2 = vpop.f32.mrf.mxu1 }
 0x15f   :  { %v471_v8 = vadd.f32 %v470_v2, %v403_v3 }
 0x161   :  { %v642_v16 = vmul.f32 0.01, %v471_v8  ;;  %vm633_vm6 = vcmp.gt.f32.partialorder %v471_v8, 0.0 }
 0x163   :  { %v651_v27 = vsel %vm633_vm6, %v471_v8, %v642_v16 }
 0x164   :  { %v490_v7 = vpop.f32.mrf.mxu2 }
 0x165   :  { %v491_v9 = vadd.f32 %v490_v7, %v404_v4  ;;  %v510_v10 = vpop.f32.mrf.mxu3 }
 0x166   :  { %v511_v11 = vadd.f32 %v510_v10, %v405_v5  ;;  %v530_v12 = vpop.f32.mrf.mxu1 }
 0x167   :  { %vm634_vm3 = vcmp.gt.f32.partialorder %v491_v9, 0.0  ;;  %v643_v13 = vmul.f32 0.01, %v491_v9  ;;  %v531_v14 = vadd.f32 %v530_v12, %v406_v6 }
 0x168   :  { %vm635_vm4 = vcmp.gt.f32.partialorder %v511_v11, 0.0  ;;  %v644_v15 = vmul.f32 0.01, %v511_v11 }
 0x169   :  { %v652_v17 = vsel %vm634_vm3, %v491_v9, %v643_v13  ;;  %vm636_vm5 = vcmp.gt.f32.partialorder %v531_v14, 0.0  ;;  %v645_v18 = vmul.f32 0.01, %v531_v14 }
 0x16a   :  { %v668_v19 = vrot.slane %v652_v17, 6  ;;  %v653_v20 = vsel %vm635_vm4, %v511_v11, %v644_v15 }
 0x16b   :  { %v654_v22 = vsel %vm636_vm5, %v531_v14, %v645_v18  ;;  %v669_v24 = vrot.slane %v653_v20, 4 }
 0x16c   :  { %v670_v25 = vrot.slane %v654_v22, 2  ;;  %v550_v26 = vpop.f32.mrf.mxu2  ;;  %v674_v29 = vsel %vm425_vm0, %v651_v27, %v668_v19 }
 0x16d   :  { %v570_v28 = vpop.f32.mrf.mxu3  ;;  %v551_v39 = vadd.f32 %v550_v26, %v407_v34 }
 0x16e   :  { %v676_v30 = vsel %vm675_vm7, %v669_v24, %v670_v25  ;;  %v571_v31 = vadd.f32 %v570_v28, %v408_v21  ;;  %v590_v32 = vpop.f32.mrf.mxu1 }
 0x16f   :  { %v678_v33 = vsel %vm677_vm8, %v674_v29, %v676_v30  ;;  %v591_v35 = vadd.f32 %v590_v32, %v409_v23  ;;  %v646_v46 = vmul.f32 0.01, %v551_v39  ;;  %vm637_vm12 = vcmp.gt.f32.partialorder %v551_v39, 0.0 }
 0x170   :  { %684 = vst [vmem:[%s1339_s6] sm:$0xff] %v678_v33  ;;  %v647_v36 = vmul.f32 0.01, %v571_v31  ;;  %vm638_vm9 = vcmp.gt.f32.partialorder %v571_v31, 0.0 }
 0x171   :  { %v648_v40 = vmul.f32 0.01, %v591_v35  ;;  %vm639_vm10 = vcmp.gt.f32.partialorder %v591_v35, 0.0  ;;  %v655_v55 = vsel %vm637_vm12, %v551_v39, %v646_v46 }
 0x172   :  { %v656_v42 = vsel %vm638_vm9, %v571_v31, %v647_v36 }
 0x173   :  { %v657_v47 = vsel %vm639_vm10, %v591_v35, %v648_v40  ;;  %v671_v49 = vrot.slane %v656_v42, 6 }
 0x174   :  { %v610_v41 = vpop.f32.mrf.mxu2  ;;  %v672_v52 = vrot.slane %v657_v47, 4 }
 0x175   :  { %v611_v43 = vadd.f32 %v610_v41, %v410_v37  ;;  %v630_v44 = vpop.f32.mrf.mxu3  ;;  %v679_v56 = vsel %vm425_vm0, %v655_v55, %v671_v49 }
 0x176   :  { %v631_v45 = vadd.f32 %v727_v38, %v630_v44 }
 0x177   :  { %vm640_vm11 = vcmp.gt.f32.partialorder %v611_v43, 0.0  ;;  %v649_v48 = vmul.f32 0.01, %v611_v43 }
 0x178   :  { %vm641_vm13 = vcmp.gt.f32.partialorder %v631_v45, 0.0  ;;  %v650_v50 = vmul.f32 0.01, %v631_v45 }
 0x179   :  { %v658_v51 = vsel %vm640_vm11, %v611_v43, %v649_v48 }
 0x17a   :  { %v673_v53 = vrot.slane %v658_v51, 2  ;;  %v659_v54 = vsel %vm641_vm13, %v631_v45, %v650_v50 }
 0x17b   :  { %686 = vst [vmem:[%s1339_s6 + $0x10] sm:$0x3] %v659_v54 }
 0x17c   :  { %v680_v57 = vsel %vm675_vm7, %v672_v52, %v673_v53 }
 0x17d   :  { %v681_v58 = vsel %vm677_vm8, %v679_v56, %v680_v57 }
 0x17e   :  { %685 = vst [vmem:[%s1339_s6 + $0x8] sm:$0xff] %v681_v58 }
 0x17f   :  { %752 = dma.done.wait [#allocation3], 32  }
 0x180   :  { %753 = vsyncadd [#allocation3], 4294967264 }
 0x181   :  { %706 = vsyncpa [#allocation3], 1 }

// kernel: cae_forward.11
= control target key start
LH: loop header
LB: loop body
LE: loop exit
PB: predicated region body
PF: predicated region fallthrough
CT: control target
= control target key end

     0   :  { %s963_s1 = inlined_call_operand.vmem [shape: f32[512,256], index: 1, kind: input, shape index: {}]   ;;  %s964_s0 = inlined_call_operand.vmem [shape: f32[32,512], index: 0, kind: input, shape index: {}]   ;;  %s965_s2 = inlined_call_operand.vmem [shape: f32[1,256], index: 2, kind: input, shape index: {}]   ;;  %s966_s3 = inlined_call_operand.vmem [shape: f32[32,256], index: 3, kind: output, shape index: {}]  }
   0x1   :  { %v124_v0 = vld [vmem:[%s963_s1 + $0x2f0] sm:$0xff]  ;;  %v122_v2 = vld [vmem:[%s963_s1 + $0x2e0] sm:$0xff] }
   0x2   :  { %v60_v1 = vld [vmem:[%s963_s1 + $0xf0] sm:$0xff]  ;;  %222 = vmatpush.msra.mxu2 %v124_v0  ;;  %v58_v4 = vld [vmem:[%s963_s1 + $0xe0] sm:$0xff]  ;;  %v125_v0 = vld [vmem:[%s963_s1 + $0x2f8] sm:$0xff] }
   0x3   :  { %164 = vmatpush.msra.mxu0 %v60_v1  ;;  %v156_v3 = vld [vmem:[%s963_s1 + $0x3f0] sm:$0xff]  ;;  %v154_v7 = vld [vmem:[%s963_s1 + $0x3e0] sm:$0xff] }
   0x4   :  { %v92_v5 = vld [vmem:[%s963_s1 + $0x1f0] sm:$0xff]  ;;  %251 = vmatpush.msra.mxu3 %v156_v3  ;;  %223 = vmatpush.msra.mxu2 %v122_v2  ;;  %v90_v9 = vld [vmem:[%s963_s1 + $0x1e0] sm:$0xff]  ;;  %v657_v2 = vld [vmem:[%s964_s0 + $0x18] sm:$0xff] }
   0x5   :  { %193 = vmatpush.msra.mxu1 %v92_v5  ;;  %v120_v6 = vld [vmem:[%s963_s1 + $0x2d0] sm:$0xff]  ;;  %165 = vmatpush.msra.mxu0 %v58_v4  ;;  %v118_v11 = vld [vmem:[%s963_s1 + $0x2c0] sm:$0xff]  ;;  %v61_v3 = vld [vmem:[%s963_s1 + $0xf8] sm:$0xff] }
   0x6   :  { %v56_v8 = vld [vmem:[%s963_s1 + $0xd0] sm:$0xff]  ;;  %252 = vmatpush.msra.mxu3 %v154_v7  ;;  %v54_v12 = vld [vmem:[%s963_s1 + $0xc0] sm:$0xff]  ;;  %224 = vmatpush.msra.mxu2 %v120_v6  ;;  %v123_v4 = vld [vmem:[%s963_s1 + $0x2e8] sm:$0xff] }
   0x7   :  { %v152_v10 = vld [vmem:[%s963_s1 + $0x3d0] sm:$0xff]  ;;  %194 = vmatpush.msra.mxu1 %v90_v9  ;;  %166 = vmatpush.msra.mxu0 %v56_v8  ;;  %v150_v14 = vld [vmem:[%s963_s1 + $0x3c0] sm:$0xff]  ;;  %v157_v5 = vld [vmem:[%s963_s1 + $0x3f8] sm:$0xff] }
   0x8   :  { %v88_v13 = vld [vmem:[%s963_s1 + $0x1d0] sm:$0xff]  ;;  %v86_v15 = vld [vmem:[%s963_s1 + $0x1c0] sm:$0xff]  ;;  %253 = vmatpush.msra.mxu3 %v152_v10  ;;  %225 = vmatpush.msra.mxu2 %v118_v11  ;;  %v59_v7 = vld [vmem:[%s963_s1 + $0xe8] sm:$0xff] }
   0x9   :  { %195 = vmatpush.msra.mxu1 %v88_v13  ;;  %v116_v16 = vld [vmem:[%s963_s1 + $0x2b0] sm:$0xff]  ;;  %167 = vmatpush.msra.mxu0 %v54_v12  ;;  %v114_v20 = vld [vmem:[%s963_s1 + $0x2a0] sm:$0xff]  ;;  %v680_v8 = vld [vmem:[%s964_s0 + $0x8] sm:$0xff] }
   0xa   :  { %v52_v17 = vld [vmem:[%s963_s1 + $0xb0] sm:$0xff]  ;;  %254 = vmatpush.msra.mxu3 %v150_v14  ;;  %v50_v21 = vld [vmem:[%s963_s1 + $0xa0] sm:$0xff]  ;;  %226 = vmatpush.msra.mxu2 %v116_v16  ;;  %v121_v9 = vld [vmem:[%s963_s1 + $0x2d8] sm:$0xff] }
   0xb   :  { %v148_v18 = vld [vmem:[%s963_s1 + $0x3b0] sm:$0xff]  ;;  %196 = vmatpush.msra.mxu1 %v86_v15  ;;  %168 = vmatpush.msra.mxu0 %v52_v17  ;;  %v146_v22 = vld [vmem:[%s963_s1 + $0x3a0] sm:$0xff]  ;;  %v93_v10 = vld [vmem:[%s963_s1 + $0x1f8] sm:$0xff] }
   0xc   :  { %v84_v19 = vld [vmem:[%s963_s1 + $0x1b0] sm:$0xff]  ;;  %v82_v23 = vld [vmem:[%s963_s1 + $0x1a0] sm:$0xff]  ;;  %255 = vmatpush.msra.mxu3 %v148_v18  ;;  %227 = vmatpush.msra.mxu2 %v114_v20  ;;  %v155_v11 = vld [vmem:[%s963_s1 + $0x3e8] sm:$0xff] }
   0xd   :  { %197 = vmatpush.msra.mxu1 %v84_v19  ;;  %v112_v24 = vld [vmem:[%s963_s1 + $0x290] sm:$0xff]  ;;  %169 = vmatpush.msra.mxu0 %v50_v21  ;;  %v110_v28 = vld [vmem:[%s963_s1 + $0x280] sm:$0xff]  ;;  %v57_v12 = vld [vmem:[%s963_s1 + $0xd8] sm:$0xff] }
   0xe   :  { %v48_v25 = vld [vmem:[%s963_s1 + $0x90] sm:$0xff]  ;;  %256 = vmatpush.msra.mxu3 %v146_v22  ;;  %v46_v29 = vld [vmem:[%s963_s1 + $0x80] sm:$0xff]  ;;  %228 = vmatpush.msra.mxu2 %v112_v24  ;;  %v119_v13 = vld [vmem:[%s963_s1 + $0x2c8] sm:$0xff] }
   0xf   :  { %v144_v26 = vld [vmem:[%s963_s1 + $0x390] sm:$0xff]  ;;  %198 = vmatpush.msra.mxu1 %v82_v23  ;;  %170 = vmatpush.msra.mxu0 %v48_v25  ;;  %v142_v30 = vld [vmem:[%s963_s1 + $0x380] sm:$0xff]  ;;  %v91_v14 = vld [vmem:[%s963_s1 + $0x1e8] sm:$0xff] }
  0x10   :  { %v80_v27 = vld [vmem:[%s963_s1 + $0x190] sm:$0xff]  ;;  %v78_v31 = vld [vmem:[%s963_s1 + $0x180] sm:$0xff]  ;;  %257 = vmatpush.msra.mxu3 %v144_v26  ;;  %229 = vmatpush.msra.mxu2 %v110_v28  ;;  %v153_v15 = vld [vmem:[%s963_s1 + $0x3d8] sm:$0xff] }
  0x11   :  { %199 = vmatpush.msra.mxu1 %v80_v27  ;;  %v108_v32 = vld [vmem:[%s963_s1 + $0x270] sm:$0xff]  ;;  %171 = vmatpush.msra.mxu0 %v46_v29  ;;  %v106_v36 = vld [vmem:[%s963_s1 + $0x260] sm:$0xff]  ;;  %v55_v17 = vld [vmem:[%s963_s1 + $0xc8] sm:$0xff] }
  0x12   :  { %v44_v33 = vld [vmem:[%s963_s1 + $0x70] sm:$0xff]  ;;  %258 = vmatpush.msra.mxu3 %v142_v30  ;;  %v42_v37 = vld [vmem:[%s963_s1 + $0x60] sm:$0xff]  ;;  %230 = vmatpush.msra.mxu2 %v108_v32  ;;  %v89_v18 = vld [vmem:[%s963_s1 + $0x1d8] sm:$0xff] }
  0x13   :  { %v140_v34 = vld [vmem:[%s963_s1 + $0x370] sm:$0xff]  ;;  %200 = vmatpush.msra.mxu1 %v78_v31  ;;  %172 = vmatpush.msra.mxu0 %v44_v33  ;;  %v138_v38 = vld [vmem:[%s963_s1 + $0x360] sm:$0xff]  ;;  %v117_v19 = vld [vmem:[%s963_s1 + $0x2b8] sm:$0xff] }
  0x14   :  { %v76_v35 = vld [vmem:[%s963_s1 + $0x170] sm:$0xff]  ;;  %v74_v39 = vld [vmem:[%s963_s1 + $0x160] sm:$0xff]  ;;  %259 = vmatpush.msra.mxu3 %v140_v34  ;;  %231 = vmatpush.msra.mxu2 %v106_v36  ;;  %v151_v20 = vld [vmem:[%s963_s1 + $0x3c8] sm:$0xff] }
  0x15   :  { %201 = vmatpush.msra.mxu1 %v76_v35  ;;  %v104_v40 = vld [vmem:[%s963_s1 + $0x250] sm:$0xff]  ;;  %173 = vmatpush.msra.mxu0 %v42_v37  ;;  %v102_v44 = vld [vmem:[%s963_s1 + $0x240] sm:$0xff]  ;;  %v730_v22 = vld [vmem:[%s964_s0 + $0x38] sm:$0xff] }
  0x16   :  { %v40_v41 = vld [vmem:[%s963_s1 + $0x50] sm:$0xff]  ;;  %260 = vmatpush.msra.mxu3 %v138_v38  ;;  %v38_v45 = vld [vmem:[%s963_s1 + $0x40] sm:$0xff]  ;;  %232 = vmatpush.msra.mxu2 %v104_v40  ;;  %v53_v23 = vld [vmem:[%s963_s1 + $0xb8] sm:$0xff] }
  0x17   :  { %v136_v42 = vld [vmem:[%s963_s1 + $0x350] sm:$0xff]  ;;  %202 = vmatpush.msra.mxu1 %v74_v39  ;;  %174 = vmatpush.msra.mxu0 %v40_v41  ;;  %v134_v46 = vld [vmem:[%s963_s1 + $0x340] sm:$0xff]  ;;  %v87_v24 = vld [vmem:[%s963_s1 + $0x1c8] sm:$0xff] }
  0x18   :  { %v72_v43 = vld [vmem:[%s963_s1 + $0x150] sm:$0xff]  ;;  %v70_v47 = vld [vmem:[%s963_s1 + $0x140] sm:$0xff]  ;;  %261 = vmatpush.msra.mxu3 %v136_v42  ;;  %233 = vmatpush.msra.mxu2 %v102_v44  ;;  %v115_v25 = vld [vmem:[%s963_s1 + $0x2a8] sm:$0xff] }
  0x19   :  { %203 = vmatpush.msra.mxu1 %v72_v43  ;;  %v100_v48 = vld [vmem:[%s963_s1 + $0x230] sm:$0xff]  ;;  %175 = vmatpush.msra.mxu0 %v38_v45  ;;  %v98_v52 = vld [vmem:[%s963_s1 + $0x220] sm:$0xff]  ;;  %v149_v26 = vld [vmem:[%s963_s1 + $0x3b8] sm:$0xff] }
  0x1a   :  { %v36_v49 = vld [vmem:[%s963_s1 + $0x30] sm:$0xff]  ;;  %262 = vmatpush.msra.mxu3 %v134_v46  ;;  %v34_v53 = vld [vmem:[%s963_s1 + $0x20] sm:$0xff]  ;;  %234 = vmatpush.msra.mxu2 %v100_v48  ;;  %v748_v27 = vld [vmem:[%s964_s0 + $0x28] sm:$0xff] }
  0x1b   :  { %v132_v50 = vld [vmem:[%s963_s1 + $0x330] sm:$0xff]  ;;  %204 = vmatpush.msra.mxu1 %v70_v47  ;;  %176 = vmatpush.msra.mxu0 %v36_v49  ;;  %v130_v54 = vld [vmem:[%s963_s1 + $0x320] sm:$0xff]  ;;  %v51_v28 = vld [vmem:[%s963_s1 + $0xa8] sm:$0xff] }
  0x1c   :  { %v68_v51 = vld [vmem:[%s963_s1 + $0x130] sm:$0xff]  ;;  %v66_v55 = vld [vmem:[%s963_s1 + $0x120] sm:$0xff]  ;;  %263 = vmatpush.msra.mxu3 %v132_v50  ;;  %235 = vmatpush.msra.mxu2 %v98_v52  ;;  %v85_v29 = vld [vmem:[%s963_s1 + $0x1b8] sm:$0xff] }
  0x1d   :  { %205 = vmatpush.msra.mxu1 %v68_v51  ;;  %v96_v56 = vld [vmem:[%s963_s1 + $0x210] sm:$0xff]  ;;  %177 = vmatpush.msra.mxu0 %v34_v53  ;;  %v94_v60 = vld [vmem:[%s963_s1 + $0x200] sm:$0xff]  ;;  %v113_v30 = vld [vmem:[%s963_s1 + $0x298] sm:$0xff] }
  0x1e   :  { %v32_v57 = vld [vmem:[%s963_s1 + $0x10] sm:$0xff]  ;;  %264 = vmatpush.msra.mxu3 %v130_v54  ;;  %v30_v61 = vld [vmem:[%s963_s1] sm:$0xff]  ;;  %236 = vmatpush.msra.mxu2 %v96_v56  ;;  %v147_v31 = vld [vmem:[%s963_s1 + $0x3a8] sm:$0xff] }
  0x1f   :  { %v128_v58 = vld [vmem:[%s963_s1 + $0x310] sm:$0xff]  ;;  %206 = vmatpush.msra.mxu1 %v66_v55  ;;  %178 = vmatpush.msra.mxu0 %v32_v57  ;;  %v126_v63 = vld [vmem:[%s963_s1 + $0x300] sm:$0xff]  ;;  %v49_v32 = vld [vmem:[%s963_s1 + $0x98] sm:$0xff] }
  0x20   :  { %v64_v59 = vld [vmem:[%s963_s1 + $0x110] sm:$0xff]  ;;  %265 = vmatpush.msra.mxu3 %v128_v58  ;;  %v652_v1 = vld [vmem:[%s964_s0] sm:$0xff]  ;;  %237 = vmatpush.msra.mxu2 %v94_v60  ;;  %v83_v33 = vld [vmem:[%s963_s1 + $0x1a8] sm:$0xff] }
  0x21   :  { %v641_v62 = vld [vmem:[%s964_s0 + $0x10] sm:$0xff]  ;;  %207 = vmatpush.msra.mxu1 %v64_v59  ;;  %179 = vmatpush.msra.mxu0 %v30_v61  ;;  %v62_v6 = vld [vmem:[%s963_s1 + $0x100] sm:$0xff]  ;;  %v111_v34 = vld [vmem:[%s963_s1 + $0x288] sm:$0xff] }
  0x22   :  { %238 = vmatmul.f32.vlgmr.msra.gmra.mxu2 %v641_v62  ;;  %266 = vmatpush.msra.mxu3 %v126_v63  ;;  %v707_v16 = vld [vmem:[%s964_s0 + $0x30] sm:$0xff]  ;;  %v724_v21 = vld [vmem:[%s964_s0 + $0x20] sm:$0xff]  ;;  %v145_v35 = vld [vmem:[%s963_s1 + $0x398] sm:$0xff] }
  0x23   :  { %338 = vmatpush.msrb.mxu2 %v125_v0  ;;  %180 = vmatmul.f32.vlgmr.msra.gmra.mxu0 %v652_v1  ;;  %v779_v36 = vld [vmem:[%s964_s0 + $0x50] sm:$0xff]  ;;  %v47_v37 = vld [vmem:[%s963_s1 + $0x88] sm:$0xff]  ;;  %v81_v38 = vld [vmem:[%s963_s1 + $0x198] sm:$0xff] }
  0x24   :  { %267 = vmatmul.f32.vlgmr.msra.gmra.mxu3 %v657_v2  ;;  %280 = vmatpush.msrb.mxu0 %v61_v3  ;;  %v109_v39 = vld [vmem:[%s963_s1 + $0x278] sm:$0xff]  ;;  %v143_v40 = vld [vmem:[%s963_s1 + $0x388] sm:$0xff]  ;;  %v796_v41 = vld [vmem:[%s964_s0 + $0x40] sm:$0xff] }
  0x25   :  { %339 = vmatpush.msrb.mxu2 %v123_v4  ;;  %367 = vmatpush.msrb.mxu3 %v157_v5  ;;  %v802_v42 = vld [vmem:[%s964_s0 + $0x58] sm:$0xff]  ;;  %v79_v44 = vld [vmem:[%s963_s1 + $0x188] sm:$0xff]  ;;  %v851_v56 = vld [vmem:[%s964_s0 + $0x70] sm:$0xff] }
  0x26   :  { %208 = vmatpush.msra.mxu1 %v62_v6  ;;  %281 = vmatpush.msrb.mxu0 %v59_v7  ;;  %v45_v43 = vld [vmem:[%s963_s1 + $0x78] sm:$0xff]  ;;  %v107_v45 = vld [vmem:[%s963_s1 + $0x268] sm:$0xff]  ;;  %v26_v61 = vld [vmem:[%s964_s0 + $0x60] sm:$0xff] }
  0x27   :  { %209 = vmatmul.f32.vlgmr.msra.gmra.mxu1 %v680_v8  ;;  %340 = vmatpush.msrb.mxu2 %v121_v9  ;;  %v141_v46 = vld [vmem:[%s963_s1 + $0x378] sm:$0xff]  ;;  %v820_v47 = vld [vmem:[%s964_s0 + $0x48] sm:$0xff] }
  0x28   :  { %309 = vmatpush.msrb.mxu1 %v93_v10  ;;  %368 = vmatpush.msrb.mxu3 %v155_v11  ;;  %v43_v48 = vld [vmem:[%s963_s1 + $0x68] sm:$0xff]  ;;  %v77_v49 = vld [vmem:[%s963_s1 + $0x178] sm:$0xff] }
  0x29   :  { %282 = vmatpush.msrb.mxu0 %v57_v12  ;;  %341 = vmatpush.msrb.mxu2 %v119_v13  ;;  %v105_v50 = vld [vmem:[%s963_s1 + $0x258] sm:$0xff]  ;;  %v139_v51 = vld [vmem:[%s963_s1 + $0x368] sm:$0xff] }
  0x2a   :  { %310 = vmatpush.msrb.mxu1 %v91_v14  ;;  %369 = vmatpush.msrb.mxu3 %v153_v15  ;;  %v41_v52 = vld [vmem:[%s963_s1 + $0x58] sm:$0xff]  ;;  %v75_v53 = vld [vmem:[%s963_s1 + $0x168] sm:$0xff] }
  0x2b   :  { %241 = vmatmul.f32.gmra.mxu2 %v707_v16  ;;  %283 = vmatpush.msrb.mxu0 %v55_v17  ;;  %v103_v54 = vld [vmem:[%s963_s1 + $0x248] sm:$0xff]  ;;  %v137_v55 = vld [vmem:[%s963_s1 + $0x358] sm:$0xff] }
  0x2c   :  { %311 = vmatpush.msrb.mxu1 %v89_v18  ;;  %342 = vmatpush.msrb.mxu2 %v117_v19  ;;  %v39_v57 = vld [vmem:[%s963_s1 + $0x48] sm:$0xff]  ;;  %v73_v58 = vld [vmem:[%s963_s1 + $0x158] sm:$0xff] }
  0x2d   :  { %370 = vmatpush.msrb.mxu3 %v151_v20  ;;  %183 = vmatmul.f32.gmra.mxu0 %v724_v21  ;;  %v101_v59 = vld [vmem:[%s963_s1 + $0x238] sm:$0xff]  ;;  %v135_v60 = vld [vmem:[%s963_s1 + $0x348] sm:$0xff] }
  0x2e   :  { %270 = vmatmul.f32.gmra.mxu3 %v730_v22  ;;  %284 = vmatpush.msrb.mxu0 %v53_v23  ;;  %v29_v63 = vld [vmem:[%s964_s0 + $0x78] sm:$0xff]  ;;  %v71_v3 = vld [vmem:[%s963_s1 + $0x148] sm:$0xff] }
  0x2f   :  { %312 = vmatpush.msrb.mxu1 %v87_v24  ;;  %343 = vmatpush.msrb.mxu2 %v115_v25  ;;  %v37_v0 = vld [vmem:[%s963_s1 + $0x38] sm:$0xff]  ;;  %v99_v4 = vld [vmem:[%s963_s1 + $0x228] sm:$0xff] }
  0x30   :  { %371 = vmatpush.msrb.mxu3 %v149_v26  ;;  %212 = vmatmul.f32.gmra.mxu1 %v748_v27  ;;  %v133_v5 = vld [vmem:[%s963_s1 + $0x338] sm:$0xff]  ;;  %v27_v6 = vld [vmem:[%s964_s0 + $0x68] sm:$0xff] }
  0x31   :  { %285 = vmatpush.msrb.mxu0 %v51_v28  ;;  %313 = vmatpush.msrb.mxu1 %v85_v29  ;;  %v35_v7 = vld [vmem:[%s963_s1 + $0x28] sm:$0xff]  ;;  %v69_v9 = vld [vmem:[%s963_s1 + $0x138] sm:$0xff] }
  0x32   :  { %344 = vmatpush.msrb.mxu2 %v113_v30  ;;  %372 = vmatpush.msrb.mxu3 %v147_v31  ;;  %v97_v10 = vld [vmem:[%s963_s1 + $0x218] sm:$0xff]  ;;  %v131_v11 = vld [vmem:[%s963_s1 + $0x328] sm:$0xff] }
  0x33   :  { %286 = vmatpush.msrb.mxu0 %v49_v32  ;;  %314 = vmatpush.msrb.mxu1 %v83_v33  ;;  %v33_v12 = vld [vmem:[%s963_s1 + $0x18] sm:$0xff]  ;;  %v67_v13 = vld [vmem:[%s963_s1 + $0x128] sm:$0xff] }
  0x34   :  { %345 = vmatpush.msrb.mxu2 %v111_v34  ;;  %373 = vmatpush.msrb.mxu3 %v145_v35  ;;  %v95_v14 = vld [vmem:[%s963_s1 + $0x208] sm:$0xff]  ;;  %v129_v15 = vld [vmem:[%s963_s1 + $0x318] sm:$0xff] }
  0x35   :  { %244 = vmatmul.f32.gmra.mxu2 %v779_v36  ;;  %287 = vmatpush.msrb.mxu0 %v47_v37  ;;  %v31_v17 = vld [vmem:[%s963_s1 + $0x8] sm:$0xff]  ;;  %v65_v18 = vld [vmem:[%s963_s1 + $0x118] sm:$0xff] }
  0x36   :  { %315 = vmatpush.msrb.mxu1 %v81_v38  ;;  %346 = vmatpush.msrb.mxu2 %v109_v39  ;;  %v127_v19 = vld [vmem:[%s963_s1 + $0x308] sm:$0xff] }
  0x37   :  { %374 = vmatpush.msrb.mxu3 %v143_v40  ;;  %186 = vmatmul.f32.gmra.mxu0 %v796_v41  ;;  %v63_v20 = vld [vmem:[%s963_s1 + $0x108] sm:$0xff] }
  0x38   :  { %273 = vmatmul.f32.gmra.mxu3 %v802_v42  ;;  %288 = vmatpush.msrb.mxu0 %v45_v43 }
  0x39   :  { %316 = vmatpush.msrb.mxu1 %v79_v44  ;;  %347 = vmatpush.msrb.mxu2 %v107_v45 }
  0x3a   :  { %375 = vmatpush.msrb.mxu3 %v141_v46  ;;  %215 = vmatmul.f32.gmra.mxu1 %v820_v47 }
  0x3b   :  { %289 = vmatpush.msrb.mxu0 %v43_v48  ;;  %317 = vmatpush.msrb.mxu1 %v77_v49 }
  0x3c   :  { %348 = vmatpush.msrb.mxu2 %v105_v50  ;;  %376 = vmatpush.msrb.mxu3 %v139_v51 }
  0x3d   :  { %290 = vmatpush.msrb.mxu0 %v41_v52  ;;  %318 = vmatpush.msrb.mxu1 %v75_v53 }
  0x3e   :  { %349 = vmatpush.msrb.mxu2 %v103_v54  ;;  %377 = vmatpush.msrb.mxu3 %v137_v55 }
  0x3f   :  { %247 = vmatmul.f32.gmra.mxu2 %v851_v56  ;;  %291 = vmatpush.msrb.mxu0 %v39_v57 }
  0x40   :  { %319 = vmatpush.msrb.mxu1 %v73_v58  ;;  %350 = vmatpush.msrb.mxu2 %v101_v59 }
  0x41   :  { %378 = vmatpush.msrb.mxu3 %v135_v60  ;;  %189 = vmatmul.f32.gmra.mxu0 %v26_v61 }
  0x42   :  { %276 = vmatmul.f32.gmra.mxu3 %v29_v63  ;;  %292 = vmatpush.msrb.mxu0 %v37_v0 }
  0x43   :  { %320 = vmatpush.msrb.mxu1 %v71_v3  ;;  %351 = vmatpush.msrb.mxu2 %v99_v4 }
  0x44   :  { %379 = vmatpush.msrb.mxu3 %v133_v5  ;;  %218 = vmatmul.f32.gmra.mxu1 %v27_v6 }
  0x45   :  { %293 = vmatpush.msrb.mxu0 %v35_v7  ;;  %321 = vmatpush.msrb.mxu1 %v69_v9 }
  0x46   :  { %352 = vmatpush.msrb.mxu2 %v97_v10  ;;  %380 = vmatpush.msrb.mxu3 %v131_v11 }
  0x47   :  { %294 = vmatpush.msrb.mxu0 %v33_v12  ;;  %322 = vmatpush.msrb.mxu1 %v67_v13 }
  0x48   :  { %353 = vmatpush.msrb.mxu2 %v95_v14  ;;  %381 = vmatpush.msrb.mxu3 %v129_v15 }
  0x49   :  { %295 = vmatpush.msrb.mxu0 %v31_v17  ;;  %323 = vmatpush.msrb.mxu1 %v65_v18 }
  0x4a   :  { %354 = vmatmul.f32.vlgmr.msrb.gmra.mxu2 %v641_v62  ;;  %382 = vmatpush.msrb.mxu3 %v127_v19  ;;  %v158_v62 = vld [vmem:[%s965_s2] sm:$0x3] }
  0x4b   :  { %296 = vmatmul.f32.vlgmr.msrb.gmra.mxu0 %v652_v1  ;;  %324 = vmatpush.msrb.mxu1 %v63_v20  ;;  %v160_v1 = vperm.slane %v158_v62, 0  ;;  %v161_v55 = vperm.slane %v158_v62, 1 }
  0x4c   :  { %383 = vmatmul.f32.vlgmr.msrb.gmra.mxu3 %v657_v2  ;;  %325 = vmatmul.f32.vlgmr.msrb.gmra.mxu1 %v680_v8 }
  0x52   :  { %357 = vmatmul.f32.gmra.mxu2 %v707_v16 }
  0x53   :  { %299 = vmatmul.f32.gmra.mxu0 %v724_v21 }
  0x54   :  { %386 = vmatmul.f32.gmra.mxu3 %v730_v22  ;;  %328 = vmatmul.f32.gmra.mxu1 %v748_v27 }
  0x5a   :  { %360 = vmatmul.f32.gmra.mxu2 %v779_v36 }
  0x5b   :  { %302 = vmatmul.f32.gmra.mxu0 %v796_v41 }
  0x5c   :  { %389 = vmatmul.f32.gmra.mxu3 %v802_v42  ;;  %331 = vmatmul.f32.gmra.mxu1 %v820_v47 }
  0x62   :  { %363 = vmatmul.f32.gmra.mxu2 %v851_v56 }
  0x63   :  { %305 = vmatmul.f32.gmra.mxu0 %v26_v61 }
  0x64   :  { %392 = vmatmul.f32.gmra.mxu3 %v29_v63  ;;  %334 = vmatmul.f32.gmra.mxu1 %v27_v6 }
  0xa0   :  { %v181_v2 = vpop.f32.mrf.mxu0 }
  0xa1   :  { %v182_v8 = vadd.f32 %v181_v2, %v160_v1 }
  0xa4   :  { %v210_v16 = vpop.f32.mrf.mxu1 }
  0xa5   :  { %v211_v21 = vadd.f32 %v210_v16, %v182_v8  ;;  %v239_v22 = vpop.f32.mrf.mxu2 }
  0xa7   :  { %v240_v23 = vadd.f32 %v239_v22, %v211_v21  ;;  %v268_v24 = vpop.f32.mrf.mxu3 }
  0xa9   :  { %v269_v25 = vadd.f32 %v268_v24, %v240_v23 }
  0xaa   :  { %v184_v26 = vpop.f32.mrf.mxu0 }
  0xab   :  { %vm396_vm0 = vcmp.gt.f32.partialorder %v269_v25, 0.0  ;;  %v404_v27 = vmul.f32 0.01, %v269_v25  ;;  %v185_v28 = vadd.f32 %v184_v26, %v160_v1 }
  0xad   :  { %v412_v29 = vsel %vm396_vm0, %v269_v25, %v404_v27  ;;  %v213_v30 = vpop.f32.mrf.mxu1 }
  0xae   :  { %420 = vst [vmem:[%s966_s3] sm:$0xff] %v412_v29  ;;  %v214_v31 = vadd.f32 %v213_v30, %v185_v28  ;;  %v242_v32 = vpop.f32.mrf.mxu2 }
  0xb0   :  { %v243_v33 = vadd.f32 %v242_v32, %v214_v31 }
  0xb1   :  { %v271_v34 = vpop.f32.mrf.mxu3 }
  0xb2   :  { %v272_v35 = vadd.f32 %v271_v34, %v243_v33 }
  0xb4   :  { %vm398_vm1 = vcmp.gt.f32.partialorder %v272_v35, 0.0  ;;  %v406_v36 = vmul.f32 0.01, %v272_v35  ;;  %v187_v37 = vpop.f32.mrf.mxu0 }
  0xb5   :  { %v188_v38 = vadd.f32 %v187_v37, %v160_v1 }
  0xb6   :  { %v414_v39 = vsel %vm398_vm1, %v272_v35, %v406_v36 }
  0xb7   :  { %422 = vst [vmem:[%s966_s3 + $0x10] sm:$0xff] %v414_v39  ;;  %v216_v40 = vpop.f32.mrf.mxu1 }
  0xb8   :  { %v217_v41 = vadd.f32 %v216_v40, %v188_v38  ;;  %v245_v42 = vpop.f32.mrf.mxu2 }
  0xba   :  { %v246_v43 = vadd.f32 %v245_v42, %v217_v41 }
  0xbb   :  { %v274_v44 = vpop.f32.mrf.mxu3 }
  0xbc   :  { %v275_v45 = vadd.f32 %v274_v44, %v246_v43 }
  0xbe   :  { %vm400_vm2 = vcmp.gt.f32.partialorder %v275_v45, 0.0  ;;  %v408_v46 = vmul.f32 0.01, %v275_v45  ;;  %v190_v47 = vpop.f32.mrf.mxu0 }
  0xbf   :  { %v191_v48 = vadd.f32 %v190_v47, %v160_v1 }
  0xc0   :  { %v416_v49 = vsel %vm400_vm2, %v275_v45, %v408_v46 }
  0xc1   :  { %424 = vst [vmem:[%s966_s3 + $0x20] sm:$0xff] %v416_v49  ;;  %v219_v50 = vpop.f32.mrf.mxu1 }
  0xc2   :  { %v220_v51 = vadd.f32 %v219_v50, %v191_v48  ;;  %v248_v52 = vpop.f32.mrf.mxu2 }
  0xc4   :  { %v249_v53 = vadd.f32 %v248_v52, %v220_v51 }
  0xc5   :  { %v277_v54 = vpop.f32.mrf.mxu3 }
  0xc6   :  { %v278_v56 = vadd.f32 %v277_v54, %v249_v53 }
  0xc8   :  { %vm402_vm3 = vcmp.gt.f32.partialorder %v278_v56, 0.0  ;;  %v410_v57 = vmul.f32 0.01, %v278_v56  ;;  %v297_v58 = vpop.f32.mrf.mxu0 }
  0xc9   :  { %v298_v59 = vadd.f32 %v297_v58, %v161_v55  ;;  %v326_v60 = vpop.f32.mrf.mxu1 }
  0xca   :  { %v418_v61 = vsel %vm402_vm3, %v278_v56, %v410_v57 }
  0xcb   :  { %426 = vst [vmem:[%s966_s3 + $0x30] sm:$0xff] %v418_v61  ;;  %v327_v63 = vadd.f32 %v326_v60, %v298_v59 }
  0xcd   :  { %v355_v0 = vpop.f32.mrf.mxu2 }
  0xce   :  { %v356_v3 = vadd.f32 %v355_v0, %v327_v63 }
  0xcf   :  { %v384_v4 = vpop.f32.mrf.mxu3 }
  0xd0   :  { %v385_v5 = vadd.f32 %v384_v4, %v356_v3  ;;  %v300_v6 = vpop.f32.mrf.mxu0 }
  0xd1   :  { %v301_v7 = vadd.f32 %v300_v6, %v161_v55  ;;  %v329_v9 = vpop.f32.mrf.mxu1 }
  0xd2   :  { %vm397_vm4 = vcmp.gt.f32.partialorder %v385_v5, 0.0  ;;  %v405_v10 = vmul.f32 0.01, %v385_v5 }
  0xd3   :  { %v330_v11 = vadd.f32 %v329_v9, %v301_v7 }
  0xd4   :  { %v413_v12 = vsel %vm397_vm4, %v385_v5, %v405_v10 }
  0xd5   :  { %421 = vst [vmem:[%s966_s3 + $0x8] sm:$0xff] %v413_v12  ;;  %v358_v13 = vpop.f32.mrf.mxu2 }
  0xd6   :  { %v359_v14 = vadd.f32 %v358_v13, %v330_v11 }
  0xd7   :  { %v387_v15 = vpop.f32.mrf.mxu3 }
  0xd8   :  { %v388_v17 = vadd.f32 %v387_v15, %v359_v14  ;;  %v303_v18 = vpop.f32.mrf.mxu0 }
  0xd9   :  { %v304_v19 = vadd.f32 %v303_v18, %v161_v55  ;;  %v332_v20 = vpop.f32.mrf.mxu1 }
  0xda   :  { %vm399_vm5 = vcmp.gt.f32.partialorder %v388_v17, 0.0  ;;  %v407_v62 = vmul.f32 0.01, %v388_v17 }
  0xdb   :  { %v333_v1 = vadd.f32 %v332_v20, %v304_v19 }
  0xdc   :  { %v415_v2 = vsel %vm399_vm5, %v388_v17, %v407_v62 }
  0xdd   :  { %423 = vst [vmem:[%s966_s3 + $0x18] sm:$0xff] %v415_v2  ;;  %v361_v8 = vpop.f32.mrf.mxu2 }
  0xde   :  { %v362_v16 = vadd.f32 %v361_v8, %v333_v1 }
  0xdf   :  { %v390_v21 = vpop.f32.mrf.mxu3 }
  0xe0   :  { %v391_v22 = vadd.f32 %v390_v21, %v362_v16  ;;  %v306_v23 = vpop.f32.mrf.mxu0 }
  0xe1   :  { %v307_v24 = vadd.f32 %v306_v23, %v161_v55  ;;  %v335_v25 = vpop.f32.mrf.mxu1 }
  0xe2   :  { %vm401_vm6 = vcmp.gt.f32.partialorder %v391_v22, 0.0  ;;  %v409_v26 = vmul.f32 0.01, %v391_v22 }
  0xe3   :  { %v336_v27 = vadd.f32 %v335_v25, %v307_v24 }
  0xe4   :  { %v417_v28 = vsel %vm401_vm6, %v391_v22, %v409_v26 }
  0xe5   :  { %425 = vst [vmem:[%s966_s3 + $0x28] sm:$0xff] %v417_v28  ;;  %v364_v29 = vpop.f32.mrf.mxu2 }
  0xe6   :  { %v365_v30 = vadd.f32 %v364_v29, %v336_v27 }
  0xe7   :  { %v393_v31 = vpop.f32.mrf.mxu3 }
  0xe8   :  { %v394_v32 = vadd.f32 %v393_v31, %v365_v30 }
  0xea   :  { %vm403_vm7 = vcmp.gt.f32.partialorder %v394_v32, 0.0  ;;  %v411_v33 = vmul.f32 0.01, %v394_v32 }
  0xec   :  { %v419_v34 = vsel %vm403_vm7, %v394_v32, %v411_v33 }
  0xed   :  { %427 = vst [vmem:[%s966_s3 + $0x38] sm:$0xff] %v419_v34 }

// kernel: cae_forward.12
= control target key start
LH: loop header
LB: loop body
LE: loop exit
PB: predicated region body
PF: predicated region fallthrough
CT: control target
= control target key end

     0   :  { %vm155_vm0 = vcmask 523264   ;;  %s1121_s1 = inlined_call_operand.vmem [shape: f32[576,128], index: 1, kind: input, shape index: {}]   ;;  %s1122_s0 = inlined_call_operand.vmem [shape: f32[98,576], index: 0, kind: input, shape index: {}]   ;;  %s1123_s2 = inlined_call_operand.vmem [shape: f32[1,128], index: 2, kind: input, shape index: {}]   ;;  %s1124_s3 = inlined_call_operand.vmem [shape: f32[98,128], index: 3, kind: output, shape index: {}]  }
   0x1   :  { %v94_v0 = vld [vmem:[%s1121_s1 + $0x78] sm:$0xff]  ;;  %v93_v1 = vld [vmem:[%s1121_s1 + $0x70] sm:$0xff]  ;;  %v92_v2 = vld [vmem:[%s1121_s1 + $0x68] sm:$0xff] }
   0x2   :  { %544 = vmatpush.msra.mxu1 %v94_v0  ;;  %545 = vmatpush.msra.mxu2 %v94_v0  ;;  %v91_v3 = vld [vmem:[%s1121_s1 + $0x60] sm:$0xff]  ;;  %v90_v4 = vld [vmem:[%s1121_s1 + $0x58] sm:$0xff]  ;;  %v89_v5 = vld [vmem:[%s1121_s1 + $0x50] sm:$0xff] }
   0x3   :  { %546 = vmatpush.msra.mxu3 %v94_v0  ;;  %195 = vmatpush.msra.mxu0 %v94_v0  ;;  %v88_v6 = vld [vmem:[%s1121_s1 + $0x48] sm:$0xff]  ;;  %v87_v7 = vld [vmem:[%s1121_s1 + $0x40] sm:$0xff]  ;;  %v86_v8 = vld [vmem:[%s1121_s1 + $0x38] sm:$0xff] }
   0x4   :  { %547 = vmatpush.msra.mxu1 %v93_v1  ;;  %548 = vmatpush.msra.mxu2 %v93_v1  ;;  %v85_v9 = vld [vmem:[%s1121_s1 + $0x30] sm:$0xff]  ;;  %v84_v10 = vld [vmem:[%s1121_s1 + $0x28] sm:$0xff]  ;;  %v83_v11 = vld [vmem:[%s1121_s1 + $0x20] sm:$0xff] }
   0x5   :  { %549 = vmatpush.msra.mxu3 %v93_v1  ;;  %196 = vmatpush.msra.mxu0 %v93_v1  ;;  %v82_v12 = vld [vmem:[%s1121_s1 + $0x18] sm:$0xff]  ;;  %v81_v13 = vld [vmem:[%s1121_s1 + $0x10] sm:$0xff]  ;;  %v80_v14 = vld [vmem:[%s1121_s1 + $0x8] sm:$0xff] }
   0x6   :  { %550 = vmatpush.msra.mxu1 %v92_v2  ;;  %551 = vmatpush.msra.mxu2 %v92_v2  ;;  %v79_v15 = vld [vmem:[%s1121_s1] sm:$0xff]  ;;  %v126_v18 = vld [vmem:[%s1121_s1 + $0x178] sm:$0xff]  ;;  %v125_v20 = vld [vmem:[%s1121_s1 + $0x170] sm:$0xff] }
   0x7   :  { %552 = vmatpush.msra.mxu3 %v92_v2  ;;  %197 = vmatpush.msra.mxu0 %v92_v2  ;;  %v34_v16 = vld [vmem:[%s1122_s0 + $0xa0] sm:$0xff]  ;;  %v110_v19 = vld [vmem:[%s1121_s1 + $0xf8] sm:$0xff]  ;;  %v109_v21 = vld [vmem:[%s1121_s1 + $0xf0] sm:$0xff] }
   0x8   :  { %553 = vmatpush.msra.mxu1 %v91_v3  ;;  %554 = vmatpush.msra.mxu2 %v91_v3  ;;  %v54_v17 = vld [vmem:[%s1122_s0 + $0x140] sm:$0xff]  ;;  %v142_v22 = vld [vmem:[%s1121_s1 + $0x1f8] sm:$0xff]  ;;  %v124_v24 = vld [vmem:[%s1121_s1 + $0x168] sm:$0xff] }
   0x9   :  { %555 = vmatpush.msra.mxu3 %v91_v3  ;;  %198 = vmatpush.msra.mxu0 %v91_v3  ;;  %v14_v23 = vld [vmem:[%s1122_s0] sm:$0xff]  ;;  %v108_v25 = vld [vmem:[%s1121_s1 + $0xe8] sm:$0xff]  ;;  %v141_v26 = vld [vmem:[%s1121_s1 + $0x1f0] sm:$0xff] }
   0xa   :  { %556 = vmatpush.msra.mxu1 %v90_v4  ;;  %557 = vmatpush.msra.mxu2 %v90_v4  ;;  %v150_v27 = vld [vmem:[%s1121_s1 + $0x238] sm:$0xff]  ;;  %v123_v28 = vld [vmem:[%s1121_s1 + $0x160] sm:$0xff]  ;;  %v140_v30 = vld [vmem:[%s1121_s1 + $0x1e8] sm:$0xff] }
   0xb   :  { %558 = vmatpush.msra.mxu3 %v90_v4  ;;  %199 = vmatpush.msra.mxu0 %v90_v4  ;;  %v107_v29 = vld [vmem:[%s1121_s1 + $0xe0] sm:$0xff]  ;;  %v39_v31 = vld [vmem:[%s1122_s0 + $0xc8] sm:$0xff]  ;;  %v106_v33 = vld [vmem:[%s1121_s1 + $0xd8] sm:$0xff] }
   0xc   :  { %559 = vmatpush.msra.mxu1 %v89_v5  ;;  %560 = vmatpush.msra.mxu2 %v89_v5  ;;  %v59_v32 = vld [vmem:[%s1122_s0 + $0x168] sm:$0xff]  ;;  %v122_v34 = vld [vmem:[%s1121_s1 + $0x158] sm:$0xff]  ;;  %v139_v35 = vld [vmem:[%s1121_s1 + $0x1e0] sm:$0xff] }
   0xd   :  { %561 = vmatpush.msra.mxu3 %v89_v5  ;;  %200 = vmatpush.msra.mxu0 %v89_v5  ;;  %v105_v36 = vld [vmem:[%s1121_s1 + $0xd0] sm:$0xff]  ;;  %v138_v39 = vld [vmem:[%s1121_s1 + $0x1d8] sm:$0xff]  ;;  %v104_v40 = vld [vmem:[%s1121_s1 + $0xc8] sm:$0xff] }
   0xe   :  { %562 = vmatpush.msra.mxu1 %v88_v6  ;;  %563 = vmatpush.msra.mxu2 %v88_v6  ;;  %v149_v37 = vld [vmem:[%s1121_s1 + $0x230] sm:$0xff]  ;;  %v19_v41 = vld [vmem:[%s1122_s0 + $0x28] sm:$0xff]  ;;  %v103_v44 = vld [vmem:[%s1121_s1 + $0xc0] sm:$0xff] }
   0xf   :  { %564 = vmatpush.msra.mxu3 %v88_v6  ;;  %201 = vmatpush.msra.mxu0 %v88_v6  ;;  %v121_v38 = vld [vmem:[%s1121_s1 + $0x150] sm:$0xff]  ;;  %v120_v42 = vld [vmem:[%s1121_s1 + $0x148] sm:$0xff]  ;;  %v119_v46 = vld [vmem:[%s1121_s1 + $0x140] sm:$0xff] }
  0x10   :  { %565 = vmatpush.msra.mxu1 %v87_v7  ;;  %566 = vmatpush.msra.mxu2 %v87_v7  ;;  %v137_v43 = vld [vmem:[%s1121_s1 + $0x1d0] sm:$0xff]  ;;  %v148_v45 = vld [vmem:[%s1121_s1 + $0x228] sm:$0xff]  ;;  %v118_v50 = vld [vmem:[%s1121_s1 + $0x138] sm:$0xff] }
  0x11   :  { %567 = vmatpush.msra.mxu3 %v87_v7  ;;  %202 = vmatpush.msra.mxu0 %v87_v7  ;;  %v136_v47 = vld [vmem:[%s1121_s1 + $0x1c8] sm:$0xff]  ;;  %v44_v48 = vld [vmem:[%s1122_s0 + $0xf0] sm:$0xff]  ;;  %v102_v51 = vld [vmem:[%s1121_s1 + $0xb8] sm:$0xff] }
  0x12   :  { %568 = vmatpush.msra.mxu1 %v86_v8  ;;  %569 = vmatpush.msra.mxu2 %v86_v8  ;;  %v64_v49 = vld [vmem:[%s1122_s0 + $0x190] sm:$0xff]  ;;  %v135_v52 = vld [vmem:[%s1121_s1 + $0x1c0] sm:$0xff]  ;;  %v134_v56 = vld [vmem:[%s1121_s1 + $0x1b8] sm:$0xff] }
  0x13   :  { %570 = vmatpush.msra.mxu3 %v86_v8  ;;  %203 = vmatpush.msra.mxu0 %v86_v8  ;;  %v147_v53 = vld [vmem:[%s1121_s1 + $0x220] sm:$0xff]  ;;  %v117_v54 = vld [vmem:[%s1121_s1 + $0x130] sm:$0xff]  ;;  %v116_v58 = vld [vmem:[%s1121_s1 + $0x128] sm:$0xff] }
  0x14   :  { %571 = vmatpush.msra.mxu1 %v85_v9  ;;  %572 = vmatpush.msra.mxu2 %v85_v9  ;;  %v101_v55 = vld [vmem:[%s1121_s1 + $0xb0] sm:$0xff]  ;;  %v100_v59 = vld [vmem:[%s1121_s1 + $0xa8] sm:$0xff]  ;;  %v146_v61 = vld [vmem:[%s1121_s1 + $0x218] sm:$0xff] }
  0x15   :  { %573 = vmatpush.msra.mxu3 %v85_v9  ;;  %204 = vmatpush.msra.mxu0 %v85_v9  ;;  %v24_v57 = vld [vmem:[%s1122_s0 + $0x50] sm:$0xff]  ;;  %v115_v62 = vld [vmem:[%s1121_s1 + $0x120] sm:$0xff]  ;;  %v132_v0 = vld [vmem:[%s1121_s1 + $0x1a8] sm:$0xff] }
  0x16   :  { %574 = vmatpush.msra.mxu1 %v84_v10  ;;  %575 = vmatpush.msra.mxu2 %v84_v10  ;;  %v133_v60 = vld [vmem:[%s1121_s1 + $0x1b0] sm:$0xff]  ;;  %v99_v63 = vld [vmem:[%s1121_s1 + $0xa0] sm:$0xff]  ;;  %v49_v1 = vld [vmem:[%s1122_s0 + $0x118] sm:$0xff] }
  0x17   :  { %576 = vmatpush.msra.mxu3 %v84_v10  ;;  %205 = vmatpush.msra.mxu0 %v84_v10  ;;  %v69_v2 = vld [vmem:[%s1122_s0 + $0x1b8] sm:$0xff]  ;;  %v131_v5 = vld [vmem:[%s1121_s1 + $0x1a0] sm:$0xff]  ;;  %v97_v7 = vld [vmem:[%s1121_s1 + $0x90] sm:$0xff] }
  0x18   :  { %577 = vmatpush.msra.mxu1 %v83_v11  ;;  %578 = vmatpush.msra.mxu2 %v83_v11  ;;  %v98_v3 = vld [vmem:[%s1121_s1 + $0x98] sm:$0xff]  ;;  %v74_v6 = vld [vmem:[%s1122_s0 + $0x1e0] sm:$0x3]  ;;  %v113_v8 = vld [vmem:[%s1121_s1 + $0x110] sm:$0xff] }
  0x19   :  { %579 = vmatpush.msra.mxu3 %v83_v11  ;;  %206 = vmatpush.msra.mxu0 %v83_v11  ;;  %v114_v4 = vld [vmem:[%s1121_s1 + $0x118] sm:$0xff]  ;;  %v96_v10 = vld [vmem:[%s1121_s1 + $0x88] sm:$0xff]  ;;  %v145_v11 = vld [vmem:[%s1121_s1 + $0x210] sm:$0xff] }
  0x1a   :  { %580 = vmatpush.msra.mxu1 %v82_v12  ;;  %581 = vmatpush.msra.mxu2 %v82_v12  ;;  %v130_v9 = vld [vmem:[%s1121_s1 + $0x198] sm:$0xff] }
  0x1b   :  { %582 = vmatpush.msra.mxu3 %v82_v12  ;;  %207 = vmatpush.msra.mxu0 %v82_v12  ;;  %v112_v12 = vld [vmem:[%s1121_s1 + $0x108] sm:$0xff] }
  0x1c   :  { %583 = vmatpush.msra.mxu1 %v81_v13  ;;  %584 = vmatpush.msra.mxu2 %v81_v13 }
  0x1d   :  { %585 = vmatpush.msra.mxu3 %v81_v13  ;;  %208 = vmatpush.msra.mxu0 %v81_v13  ;;  %v129_v13 = vld [vmem:[%s1121_s1 + $0x190] sm:$0xff] }
  0x1e   :  { %586 = vmatpush.msra.mxu1 %v80_v14  ;;  %587 = vmatpush.msra.mxu2 %v80_v14 }
  0x1f   :  { %588 = vmatpush.msra.mxu3 %v80_v14  ;;  %209 = vmatpush.msra.mxu0 %v80_v14  ;;  %v95_v14 = vld [vmem:[%s1121_s1 + $0x80] sm:$0xff] }
  0x20   :  { %589 = vmatpush.msra.mxu1 %v79_v15  ;;  %590 = vmatpush.msra.mxu2 %v79_v15 }
  0x21   :  { %223 = vmatmul.f32.vlgmr.msra.gmra.mxu1 %v34_v16  ;;  %235 = vmatmul.f32.vlgmr.msra.gmra.mxu2 %v54_v17  ;;  %v111_v16 = vld [vmem:[%s1121_s1 + $0x100] sm:$0xff]  ;;  %v128_v17 = vld [vmem:[%s1121_s1 + $0x188] sm:$0xff] }
  0x22   :  { %307 = vmatpush.msrb.mxu2 %v126_v18  ;;  %251 = vmatpush.msrb.mxu1 %v110_v19  ;;  %v15_v18 = vld [vmem:[%s1122_s0 + $0x8] sm:$0xff]  ;;  %v16_v19 = vld [vmem:[%s1122_s0 + $0x10] sm:$0xff] }
  0x23   :  { %591 = vmatpush.msra.mxu3 %v79_v15  ;;  %210 = vmatpush.msra.mxu0 %v79_v15  ;;  %v29_v15 = vld [vmem:[%s1122_s0 + $0x78] sm:$0xff] }
  0x24   :  { %308 = vmatpush.msrb.mxu2 %v125_v20  ;;  %252 = vmatpush.msrb.mxu1 %v109_v21  ;;  %v127_v20 = vld [vmem:[%s1121_s1 + $0x180] sm:$0xff]  ;;  %v144_v21 = vld [vmem:[%s1121_s1 + $0x208] sm:$0xff] }
  0x25   :  { %363 = vmatpush.msrb.mxu3 %v142_v22  ;;  %211 = vmatmul.f32.vlgmr.msra.gmra.mxu0 %v14_v23  ;;  %v17_v22 = vld [vmem:[%s1122_s0 + $0x18] sm:$0xff]  ;;  %v143_v23 = vld [vmem:[%s1121_s1 + $0x200] sm:$0xff] }
  0x26   :  { %309 = vmatpush.msrb.mxu2 %v124_v24  ;;  %253 = vmatpush.msrb.mxu1 %v108_v25  ;;  %v18_v24 = vld [vmem:[%s1122_s0 + $0x20] sm:$0xff]  ;;  %v20_v25 = vld [vmem:[%s1122_s0 + $0x30] sm:$0xff] }
  0x27   :  { %364 = vmatpush.msrb.mxu3 %v141_v26  ;;  %427 = vmatpush.msrb.mxu0 %v150_v27  ;;  %v21_v26 = vld [vmem:[%s1122_s0 + $0x38] sm:$0xff]  ;;  %v22_v27 = vld [vmem:[%s1122_s0 + $0x40] sm:$0xff] }
  0x28   :  { %310 = vmatpush.msrb.mxu2 %v123_v28  ;;  %254 = vmatpush.msrb.mxu1 %v107_v29  ;;  %v23_v28 = vld [vmem:[%s1122_s0 + $0x48] sm:$0xff]  ;;  %v25_v29 = vld [vmem:[%s1122_s0 + $0x58] sm:$0xff] }
  0x29   :  { %365 = vmatpush.msrb.mxu3 %v140_v30  ;;  %226 = vmatmul.f32.gmra.mxu1 %v39_v31  ;;  %v26_v30 = vld [vmem:[%s1122_s0 + $0x60] sm:$0xff]  ;;  %v27_v31 = vld [vmem:[%s1122_s0 + $0x68] sm:$0xff] }
  0x2a   :  { %238 = vmatmul.f32.gmra.mxu2 %v59_v32  ;;  %255 = vmatpush.msrb.mxu1 %v106_v33  ;;  %v28_v32 = vld [vmem:[%s1122_s0 + $0x70] sm:$0xff]  ;;  %v30_v33 = vld [vmem:[%s1122_s0 + $0x80] sm:$0xff] }
  0x2b   :  { %311 = vmatpush.msrb.mxu2 %v122_v34  ;;  %366 = vmatpush.msrb.mxu3 %v139_v35  ;;  %v31_v34 = vld [vmem:[%s1122_s0 + $0x88] sm:$0xff]  ;;  %v32_v35 = vld [vmem:[%s1122_s0 + $0x90] sm:$0xff] }
  0x2c   :  { %256 = vmatpush.msrb.mxu1 %v105_v36  ;;  %428 = vmatpush.msrb.mxu0 %v149_v37  ;;  %v33_v36 = vld [vmem:[%s1122_s0 + $0x98] sm:$0xff]  ;;  %v35_v37 = vld [vmem:[%s1122_s0 + $0xa8] sm:$0xff] }
  0x2d   :  { %312 = vmatpush.msrb.mxu2 %v121_v38  ;;  %367 = vmatpush.msrb.mxu3 %v138_v39  ;;  %v36_v38 = vld [vmem:[%s1122_s0 + $0xb0] sm:$0xff]  ;;  %v37_v39 = vld [vmem:[%s1122_s0 + $0xb8] sm:$0xff] }
  0x2e   :  { %257 = vmatpush.msrb.mxu1 %v104_v40  ;;  %214 = vmatmul.f32.gmra.mxu0 %v19_v41  ;;  %v38_v40 = vld [vmem:[%s1122_s0 + $0xc0] sm:$0xff]  ;;  %v40_v41 = vld [vmem:[%s1122_s0 + $0xd0] sm:$0xff] }
  0x2f   :  { %313 = vmatpush.msrb.mxu2 %v120_v42  ;;  %368 = vmatpush.msrb.mxu3 %v137_v43  ;;  %v41_v42 = vld [vmem:[%s1122_s0 + $0xd8] sm:$0xff]  ;;  %v42_v43 = vld [vmem:[%s1122_s0 + $0xe0] sm:$0xff] }
  0x30   :  { %258 = vmatpush.msrb.mxu1 %v103_v44  ;;  %429 = vmatpush.msrb.mxu0 %v148_v45  ;;  %v43_v44 = vld [vmem:[%s1122_s0 + $0xe8] sm:$0xff]  ;;  %v45_v45 = vld [vmem:[%s1122_s0 + $0xf8] sm:$0xff] }
  0x31   :  { %314 = vmatpush.msrb.mxu2 %v119_v46  ;;  %369 = vmatpush.msrb.mxu3 %v136_v47  ;;  %v46_v46 = vld [vmem:[%s1122_s0 + $0x100] sm:$0xff]  ;;  %v47_v47 = vld [vmem:[%s1122_s0 + $0x108] sm:$0xff] }
  0x32   :  { %229 = vmatmul.f32.gmra.mxu1 %v44_v48  ;;  %241 = vmatmul.f32.gmra.mxu2 %v64_v49  ;;  %v48_v48 = vld [vmem:[%s1122_s0 + $0x110] sm:$0xff]  ;;  %v50_v49 = vld [vmem:[%s1122_s0 + $0x120] sm:$0xff] }
  0x33   :  { %315 = vmatpush.msrb.mxu2 %v118_v50  ;;  %259 = vmatpush.msrb.mxu1 %v102_v51  ;;  %v51_v50 = vld [vmem:[%s1122_s0 + $0x128] sm:$0xff]  ;;  %v52_v51 = vld [vmem:[%s1122_s0 + $0x130] sm:$0xff] }
  0x34   :  { %370 = vmatpush.msrb.mxu3 %v135_v52  ;;  %430 = vmatpush.msrb.mxu0 %v147_v53  ;;  %v53_v52 = vld [vmem:[%s1122_s0 + $0x138] sm:$0xff]  ;;  %v55_v53 = vld [vmem:[%s1122_s0 + $0x148] sm:$0xff] }
  0x35   :  { %316 = vmatpush.msrb.mxu2 %v117_v54  ;;  %260 = vmatpush.msrb.mxu1 %v101_v55  ;;  %v56_v54 = vld [vmem:[%s1122_s0 + $0x150] sm:$0xff]  ;;  %v57_v55 = vld [vmem:[%s1122_s0 + $0x158] sm:$0xff] }
  0x36   :  { %371 = vmatpush.msrb.mxu3 %v134_v56  ;;  %217 = vmatmul.f32.gmra.mxu0 %v24_v57  ;;  %v58_v56 = vld [vmem:[%s1122_s0 + $0x160] sm:$0xff]  ;;  %v60_v57 = vld [vmem:[%s1122_s0 + $0x170] sm:$0xff] }
  0x37   :  { %317 = vmatpush.msrb.mxu2 %v116_v58  ;;  %261 = vmatpush.msrb.mxu1 %v100_v59  ;;  %v61_v58 = vld [vmem:[%s1122_s0 + $0x178] sm:$0xff]  ;;  %v62_v59 = vld [vmem:[%s1122_s0 + $0x180] sm:$0xff] }
  0x38   :  { %372 = vmatpush.msrb.mxu3 %v133_v60  ;;  %431 = vmatpush.msrb.mxu0 %v146_v61  ;;  %v63_v60 = vld [vmem:[%s1122_s0 + $0x188] sm:$0xff]  ;;  %v65_v61 = vld [vmem:[%s1122_s0 + $0x198] sm:$0xff] }
  0x39   :  { %318 = vmatpush.msrb.mxu2 %v115_v62  ;;  %262 = vmatpush.msrb.mxu1 %v99_v63  ;;  %v66_v62 = vld [vmem:[%s1122_s0 + $0x1a0] sm:$0xff]  ;;  %v67_v63 = vld [vmem:[%s1122_s0 + $0x1a8] sm:$0xff] }
  0x3a   :  { %373 = vmatpush.msrb.mxu3 %v132_v0  ;;  %232 = vmatmul.f32.gmra.mxu1 %v49_v1  ;;  %v68_v0 = vld [vmem:[%s1122_s0 + $0x1b0] sm:$0xff]  ;;  %v70_v1 = vld [vmem:[%s1122_s0 + $0x1c0] sm:$0xff] }
  0x3b   :  { %244 = vmatmul.f32.gmra.mxu2 %v69_v2  ;;  %263 = vmatpush.msrb.mxu1 %v98_v3  ;;  %v71_v2 = vld [vmem:[%s1122_s0 + $0x1c8] sm:$0xff]  ;;  %v72_v3 = vld [vmem:[%s1122_s0 + $0x1d0] sm:$0xff] }
  0x3c   :  { %319 = vmatpush.msrb.mxu2 %v114_v4  ;;  %374 = vmatpush.msrb.mxu3 %v131_v5  ;;  %v73_v5 = vld [vmem:[%s1122_s0 + $0x1d8] sm:$0xff] }
  0x3d   :  { %247 = vmatmul.f32.vlgmr.msra.gmra.mxu3 %v74_v6  ;;  %264 = vmatpush.msrb.mxu1 %v97_v7  ;;  %v75_v6 = vld [vmem:[%s1122_s0 + $0x1e8] sm:$0x3]  ;;  %v76_v7 = vld [vmem:[%s1122_s0 + $0x1f0] sm:$0x3] }
  0x3e   :  { %320 = vmatpush.msrb.mxu2 %v113_v8  ;;  %375 = vmatpush.msrb.mxu3 %v130_v9  ;;  %v77_v8 = vld [vmem:[%s1122_s0 + $0x1f8] sm:$0x3] }
  0x3f   :  { %265 = vmatpush.msrb.mxu1 %v96_v10  ;;  %432 = vmatpush.msrb.mxu0 %v145_v11  ;;  %v1038_v10 = vld [vmem:[%s1123_s2] ss:$0 sm:$0xff] }
  0x40   :  { %321 = vmatpush.msrb.mxu2 %v112_v12  ;;  %376 = vmatpush.msrb.mxu3 %v129_v13 }
  0x41   :  { %266 = vmatpush.msrb.mxu1 %v95_v14  ;;  %220 = vmatmul.f32.gmra.mxu0 %v29_v15  ;;  %v78_v14 = vld [vmem:[%s1122_s0 + $0x200] sm:$0x3] }
  0x42   :  { %322 = vmatpush.msrb.mxu2 %v111_v16  ;;  %377 = vmatpush.msrb.mxu3 %v128_v17 }
  0x43   :  { %267 = vmatmul.f32.vlgmr.msrb.gmra.mxu1 %v15_v18  ;;  %323 = vmatmul.f32.vlgmr.msrb.gmra.mxu2 %v16_v19 }
  0x44   :  { %378 = vmatpush.msrb.mxu3 %v127_v20  ;;  %433 = vmatpush.msrb.mxu0 %v144_v21 }
  0x45   :  { %379 = vmatmul.f32.vlgmr.msrb.gmra.mxu3 %v17_v22 }
  0x46   :  { %434 = vmatpush.msrb.mxu0 %v143_v23 }
  0x49   :  { %531 = vmatmul.msk.f32.vlgmr.msrb.gmra.mxu0 %vm155_vm0, %v18_v24 }
  0x4b   :  { %270 = vmatmul.f32.gmra.mxu1 %v20_v25  ;;  %326 = vmatmul.f32.gmra.mxu2 %v21_v26 }
  0x4d   :  { %382 = vmatmul.f32.gmra.mxu3 %v22_v27 }
  0x51   :  { %532 = vmatmul.msk.f32.gmra.mxu0 %vm155_vm0, %v23_v28 }
  0x53   :  { %273 = vmatmul.f32.gmra.mxu1 %v25_v29  ;;  %329 = vmatmul.f32.gmra.mxu2 %v26_v30 }
  0x55   :  { %385 = vmatmul.f32.gmra.mxu3 %v27_v31 }
  0x59   :  { %533 = vmatmul.msk.f32.gmra.mxu0 %vm155_vm0, %v28_v32 }
  0x5b   :  { %276 = vmatmul.f32.gmra.mxu1 %v30_v33  ;;  %332 = vmatmul.f32.gmra.mxu2 %v31_v34 }
  0x5d   :  { %388 = vmatmul.f32.gmra.mxu3 %v32_v35 }
  0x61   :  { %534 = vmatmul.msk.f32.gmra.mxu0 %vm155_vm0, %v33_v36 }
  0x63   :  { %279 = vmatmul.f32.gmra.mxu1 %v35_v37  ;;  %335 = vmatmul.f32.gmra.mxu2 %v36_v38 }
  0x65   :  { %391 = vmatmul.f32.gmra.mxu3 %v37_v39 }
  0x69   :  { %535 = vmatmul.msk.f32.gmra.mxu0 %vm155_vm0, %v38_v40 }
  0x6b   :  { %282 = vmatmul.f32.gmra.mxu1 %v40_v41  ;;  %338 = vmatmul.f32.gmra.mxu2 %v41_v42 }
  0x6d   :  { %394 = vmatmul.f32.gmra.mxu3 %v42_v43 }
  0x71   :  { %536 = vmatmul.msk.f32.gmra.mxu0 %vm155_vm0, %v43_v44 }
  0x73   :  { %285 = vmatmul.f32.gmra.mxu1 %v45_v45  ;;  %341 = vmatmul.f32.gmra.mxu2 %v46_v46 }
  0x75   :  { %397 = vmatmul.f32.gmra.mxu3 %v47_v47 }
  0x79   :  { %537 = vmatmul.msk.f32.gmra.mxu0 %vm155_vm0, %v48_v48 }
  0x7b   :  { %288 = vmatmul.f32.gmra.mxu1 %v50_v49  ;;  %344 = vmatmul.f32.gmra.mxu2 %v51_v50 }
  0x7d   :  { %400 = vmatmul.f32.gmra.mxu3 %v52_v51 }
  0x81   :  { %538 = vmatmul.msk.f32.gmra.mxu0 %vm155_vm0, %v53_v52 }
  0x83   :  { %291 = vmatmul.f32.gmra.mxu1 %v55_v53  ;;  %347 = vmatmul.f32.gmra.mxu2 %v56_v54 }
  0x85   :  { %403 = vmatmul.f32.gmra.mxu3 %v57_v55 }
  0x89   :  { %539 = vmatmul.msk.f32.gmra.mxu0 %vm155_vm0, %v58_v56 }
  0x8b   :  { %294 = vmatmul.f32.gmra.mxu1 %v60_v57  ;;  %350 = vmatmul.f32.gmra.mxu2 %v61_v58 }
  0x8d   :  { %406 = vmatmul.f32.gmra.mxu3 %v62_v59 }
  0x91   :  { %540 = vmatmul.msk.f32.gmra.mxu0 %vm155_vm0, %v63_v60 }
  0x93   :  { %297 = vmatmul.f32.gmra.mxu1 %v65_v61  ;;  %353 = vmatmul.f32.gmra.mxu2 %v66_v62 }
  0x95   :  { %409 = vmatmul.f32.gmra.mxu3 %v67_v63 }
  0x99   :  { %541 = vmatmul.msk.f32.gmra.mxu0 %vm155_vm0, %v68_v0 }
  0x9b   :  { %300 = vmatmul.f32.gmra.mxu1 %v70_v1  ;;  %356 = vmatmul.f32.gmra.mxu2 %v71_v2 }
  0x9d   :  { %412 = vmatmul.f32.gmra.mxu3 %v72_v3 }
  0x9e   :  { %v1020_v4 = vpop.f32.mrf.mxu1 }
  0xa1   :  { %542 = vmatmul.msk.f32.gmra.mxu0 %vm155_vm0, %v73_v5 }
  0xa2   :  { %v212_v9 = vpop.f32.mrf.mxu0 }
  0xa3   :  { %303 = vmatmul.f32.gmra.mxu1 %v75_v6  ;;  %359 = vmatmul.f32.gmra.mxu2 %v76_v7  ;;  %v213_v29 = vadd.f32 %v1038_v10, %v212_v9  ;;  %v225_v7 = vadd.f32 %v1038_v10, %v1020_v4 }
  0xa4   :  { %v236_v11 = vpop.f32.mrf.mxu2 }
  0xa5   :  { %415 = vmatmul.f32.gmra.mxu3 %v77_v8  ;;  %v1041_v12 = vadd.f32 %v1038_v10, %v236_v11 }
  0xa6   :  { %v1043_v13 = vpop.f32.mrf.mxu1 }
  0xa9   :  { %543 = vmatmul.msk.f32.gmra.mxu0 %vm155_vm0, %v78_v14 }
  0xab   :  { %v215_v15 = vpop.f32.mrf.mxu0 }
  0xac   :  { %v216_v37 = vadd.f32 %v1038_v10, %v215_v15 }
  0xad   :  { %v239_v16 = vpop.f32.mrf.mxu2 }
  0xae   :  { %v1050_v17 = vadd.f32 %v1038_v10, %v239_v16 }
  0xaf   :  { %v1052_v18 = vpop.f32.mrf.mxu1 }
  0xb3   :  { %v218_v19 = vpop.f32.mrf.mxu0 }
  0xb4   :  { %v219_v48 = vadd.f32 %v1038_v10, %v218_v19 }
  0xb5   :  { %v242_v20 = vpop.f32.mrf.mxu2 }
  0xb6   :  { %v1055_v21 = vadd.f32 %v1038_v10, %v242_v20 }
  0xb7   :  { %v1057_v22 = vpop.f32.mrf.mxu1 }
  0xbe   :  { %v245_v23 = vpop.f32.mrf.mxu2  ;;  %v221_v24 = vpop.f32.mrf.mxu0 }
  0xbf   :  { %v1060_v25 = vadd.f32 %v1038_v10, %v245_v23  ;;  %v222_v59 = vadd.f32 %v1038_v10, %v221_v24 }
  0xc0   :  { %v248_v26 = vpop.f32.mrf.mxu3  ;;  %v268_v27 = vpop.f32.mrf.mxu1 }
  0xc1   :  { %v1063_v28 = vadd.f32 %v1038_v10, %v248_v26  ;;  %v269_v30 = vadd.f32 %v268_v27, %v213_v29  ;;  %v228_v26 = vadd.f32 %v1038_v10, %v1043_v13 }
  0xc6   :  { %v324_v31 = vpop.f32.mrf.mxu2  ;;  %v436_v32 = vpop.f32.mrf.mxu0 }
  0xc7   :  { %v325_v33 = vadd.f32 %v324_v31, %v269_v30 }
  0xc8   :  { %v271_v34 = vpop.f32.mrf.mxu1  ;;  %v380_v35 = vpop.f32.mrf.mxu3 }
  0xc9   :  { %v381_v36 = vadd.f32 %v380_v35, %v325_v33  ;;  %v272_v39 = vadd.f32 %v271_v34, %v216_v37  ;;  %v231_v37 = vadd.f32 %v1038_v10, %v1052_v18 }
  0xcb   :  { %v437_v38 = vadd.f32 %v436_v32, %v381_v36 }
  0xcd   :  { %vm475_vm1 = vcmp.gt.f32.partialorder %v437_v38, 0.0  ;;  %v488_v40 = vmul.f32 0.01, %v437_v38 }
  0xce   :  { %v327_v41 = vpop.f32.mrf.mxu2  ;;  %v439_v42 = vpop.f32.mrf.mxu0 }
  0xcf   :  { %v501_v43 = vsel %vm475_vm1, %v437_v38, %v488_v40  ;;  %v328_v44 = vadd.f32 %v327_v41, %v272_v39 }
  0xd0   :  { %514 = vst [vmem:[%s1124_s3] sm:$0xff] %v501_v43  ;;  %v274_v45 = vpop.f32.mrf.mxu1  ;;  %v383_v46 = vpop.f32.mrf.mxu3 }
  0xd1   :  { %v384_v47 = vadd.f32 %v383_v46, %v328_v44  ;;  %v275_v50 = vadd.f32 %v274_v45, %v219_v48 }
  0xd3   :  { %v440_v49 = vadd.f32 %v439_v42, %v384_v47  ;;  %v234_v47 = vadd.f32 %v1038_v10, %v1057_v22 }
  0xd5   :  { %vm476_vm2 = vcmp.gt.f32.partialorder %v440_v49, 0.0  ;;  %v489_v51 = vmul.f32 0.01, %v440_v49 }
  0xd6   :  { %v330_v52 = vpop.f32.mrf.mxu2  ;;  %v442_v53 = vpop.f32.mrf.mxu0 }
  0xd7   :  { %v502_v54 = vsel %vm476_vm2, %v440_v49, %v489_v51  ;;  %v331_v55 = vadd.f32 %v330_v52, %v275_v50 }
  0xd8   :  { %515 = vst [vmem:[%s1124_s3 + $0x8] sm:$0xff] %v502_v54  ;;  %v277_v56 = vpop.f32.mrf.mxu1  ;;  %v386_v57 = vpop.f32.mrf.mxu3 }
  0xd9   :  { %v387_v58 = vadd.f32 %v386_v57, %v331_v55  ;;  %v278_v61 = vadd.f32 %v277_v56, %v222_v59 }
  0xdb   :  { %v443_v60 = vadd.f32 %v442_v53, %v387_v58 }
  0xdd   :  { %vm477_vm3 = vcmp.gt.f32.partialorder %v443_v60, 0.0  ;;  %v490_v62 = vmul.f32 0.01, %v443_v60 }
  0xde   :  { %v333_v63 = vpop.f32.mrf.mxu2  ;;  %v445_v0 = vpop.f32.mrf.mxu0 }
  0xdf   :  { %v503_v1 = vsel %vm477_vm3, %v443_v60, %v490_v62  ;;  %v334_v2 = vadd.f32 %v333_v63, %v278_v61 }
  0xe0   :  { %516 = vst [vmem:[%s1124_s3 + $0x10] sm:$0xff] %v503_v1  ;;  %v280_v3 = vpop.f32.mrf.mxu1  ;;  %v389_v5 = vpop.f32.mrf.mxu3 }
  0xe1   :  { %v390_v6 = vadd.f32 %v389_v5, %v334_v2  ;;  %v281_v9 = vadd.f32 %v280_v3, %v225_v7 }
  0xe3   :  { %v446_v8 = vadd.f32 %v445_v0, %v390_v6 }
  0xe5   :  { %vm478_vm4 = vcmp.gt.f32.partialorder %v446_v8, 0.0  ;;  %v491_v11 = vmul.f32 0.01, %v446_v8 }
  0xe6   :  { %v336_v14 = vpop.f32.mrf.mxu2  ;;  %v448_v15 = vpop.f32.mrf.mxu0 }
  0xe7   :  { %v504_v16 = vsel %vm478_vm4, %v446_v8, %v491_v11  ;;  %v337_v19 = vadd.f32 %v336_v14, %v281_v9 }
  0xe8   :  { %517 = vst [vmem:[%s1124_s3 + $0x18] sm:$0xff] %v504_v16  ;;  %v283_v20 = vpop.f32.mrf.mxu1  ;;  %v392_v23 = vpop.f32.mrf.mxu3 }
  0xe9   :  { %v393_v24 = vadd.f32 %v392_v23, %v337_v19  ;;  %v284_v4 = vadd.f32 %v283_v20, %v228_v26 }
  0xeb   :  { %v449_v27 = vadd.f32 %v448_v15, %v393_v24 }
  0xed   :  { %vm479_vm5 = vcmp.gt.f32.partialorder %v449_v27, 0.0  ;;  %v492_v29 = vmul.f32 0.01, %v449_v27 }
  0xee   :  { %v339_v30 = vpop.f32.mrf.mxu2  ;;  %v451_v31 = vpop.f32.mrf.mxu0 }
  0xef   :  { %v505_v32 = vsel %vm479_vm5, %v449_v27, %v492_v29  ;;  %v340_v33 = vadd.f32 %v339_v30, %v284_v4 }
  0xf0   :  { %518 = vst [vmem:[%s1124_s3 + $0x20] sm:$0xff] %v505_v32  ;;  %v286_v34 = vpop.f32.mrf.mxu1  ;;  %v395_v35 = vpop.f32.mrf.mxu3 }
  0xf1   :  { %v396_v36 = vadd.f32 %v395_v35, %v340_v33  ;;  %v287_v13 = vadd.f32 %v286_v34, %v231_v37 }
  0xf3   :  { %v452_v38 = vadd.f32 %v451_v31, %v396_v36 }
  0xf5   :  { %vm480_vm6 = vcmp.gt.f32.partialorder %v452_v38, 0.0  ;;  %v493_v39 = vmul.f32 0.01, %v452_v38 }
  0xf6   :  { %v342_v40 = vpop.f32.mrf.mxu2  ;;  %v454_v41 = vpop.f32.mrf.mxu0 }
  0xf7   :  { %v506_v42 = vsel %vm480_vm6, %v452_v38, %v493_v39  ;;  %v343_v43 = vadd.f32 %v342_v40, %v287_v13 }
  0xf8   :  { %519 = vst [vmem:[%s1124_s3 + $0x28] sm:$0xff] %v506_v42  ;;  %v289_v44 = vpop.f32.mrf.mxu1  ;;  %v398_v45 = vpop.f32.mrf.mxu3 }
  0xf9   :  { %v399_v46 = vadd.f32 %v398_v45, %v343_v43  ;;  %v290_v18 = vadd.f32 %v289_v44, %v234_v47 }
  0xfb   :  { %v455_v48 = vadd.f32 %v454_v41, %v399_v46 }
  0xfd   :  { %vm481_vm7 = vcmp.gt.f32.partialorder %v455_v48, 0.0  ;;  %v494_v49 = vmul.f32 0.01, %v455_v48 }
  0xfe   :  { %v345_v50 = vpop.f32.mrf.mxu2  ;;  %v457_v51 = vpop.f32.mrf.mxu0 }
  0xff   :  { %v507_v52 = vsel %vm481_vm7, %v455_v48, %v494_v49  ;;  %v346_v53 = vadd.f32 %v345_v50, %v290_v18 }
 0x100   :  { %520 = vst [vmem:[%s1124_s3 + $0x30] sm:$0xff] %v507_v52  ;;  %v292_v54 = vpop.f32.mrf.mxu1  ;;  %v401_v55 = vpop.f32.mrf.mxu3 }
 0x101   :  { %v402_v56 = vadd.f32 %v401_v55, %v346_v53  ;;  %v293_v58 = vadd.f32 %v292_v54, %v1041_v12 }
 0x103   :  { %v458_v57 = vadd.f32 %v457_v51, %v402_v56 }
 0x105   :  { %vm482_vm8 = vcmp.gt.f32.partialorder %v458_v57, 0.0  ;;  %v495_v10 = vmul.f32 0.01, %v458_v57 }
 0x106   :  { %v348_v22 = vpop.f32.mrf.mxu2  ;;  %v460_v59 = vpop.f32.mrf.mxu0 }
 0x107   :  { %v508_v60 = vsel %vm482_vm8, %v458_v57, %v495_v10  ;;  %v349_v61 = vadd.f32 %v348_v22, %v293_v58 }
 0x108   :  { %521 = vst [vmem:[%s1124_s3 + $0x38] sm:$0xff] %v508_v60  ;;  %v295_v62 = vpop.f32.mrf.mxu1  ;;  %v404_v63 = vpop.f32.mrf.mxu3 }
 0x109   :  { %v405_v0 = vadd.f32 %v404_v63, %v349_v61  ;;  %v296_v2 = vadd.f32 %v295_v62, %v1050_v17 }
 0x10b   :  { %v461_v1 = vadd.f32 %v460_v59, %v405_v0 }
 0x10d   :  { %vm483_vm9 = vcmp.gt.f32.partialorder %v461_v1, 0.0  ;;  %v496_v3 = vmul.f32 0.01, %v461_v1 }
 0x10e   :  { %v351_v5 = vpop.f32.mrf.mxu2  ;;  %v463_v12 = vpop.f32.mrf.mxu0 }
 0x10f   :  { %v509_v6 = vsel %vm483_vm9, %v461_v1, %v496_v3  ;;  %v352_v7 = vadd.f32 %v351_v5, %v296_v2 }
 0x110   :  { %522 = vst [vmem:[%s1124_s3 + $0x40] sm:$0xff] %v509_v6  ;;  %v298_v8 = vpop.f32.mrf.mxu1  ;;  %v407_v9 = vpop.f32.mrf.mxu3 }
 0x111   :  { %v408_v11 = vadd.f32 %v407_v9, %v352_v7  ;;  %v299_v15 = vadd.f32 %v298_v8, %v1055_v21 }
 0x113   :  { %v464_v14 = vadd.f32 %v463_v12, %v408_v11 }
 0x115   :  { %vm484_vm10 = vcmp.gt.f32.partialorder %v464_v14, 0.0  ;;  %v497_v16 = vmul.f32 0.01, %v464_v14 }
 0x116   :  { %v354_v19 = vpop.f32.mrf.mxu2  ;;  %v466_v17 = vpop.f32.mrf.mxu0 }
 0x117   :  { %v510_v20 = vsel %vm484_vm10, %v464_v14, %v497_v16  ;;  %v355_v23 = vadd.f32 %v354_v19, %v299_v15 }
 0x118   :  { %523 = vst [vmem:[%s1124_s3 + $0x48] sm:$0xff] %v510_v20  ;;  %v301_v24 = vpop.f32.mrf.mxu1  ;;  %v410_v26 = vpop.f32.mrf.mxu3 }
 0x119   :  { %v411_v27 = vadd.f32 %v410_v26, %v355_v23  ;;  %v302_v29 = vadd.f32 %v301_v24, %v1060_v25 }
 0x11b   :  { %v467_v4 = vadd.f32 %v466_v17, %v411_v27 }
 0x11d   :  { %vm485_vm11 = vcmp.gt.f32.partialorder %v467_v4, 0.0  ;;  %v498_v30 = vmul.f32 0.01, %v467_v4 }
 0x11e   :  { %v357_v31 = vpop.f32.mrf.mxu2  ;;  %v469_v21 = vpop.f32.mrf.mxu0 }
 0x11f   :  { %v511_v32 = vsel %vm485_vm11, %v467_v4, %v498_v30  ;;  %v358_v33 = vadd.f32 %v357_v31, %v302_v29 }
 0x120   :  { %524 = vst [vmem:[%s1124_s3 + $0x50] sm:$0xff] %v511_v32  ;;  %v413_v34 = vpop.f32.mrf.mxu3  ;;  %v304_v36 = vpop.f32.mrf.mxu1 }
 0x121   :  { %v414_v35 = vadd.f32 %v413_v34, %v358_v33  ;;  %v305_v38 = vadd.f32 %v304_v36, %v1063_v28 }
 0x123   :  { %v470_v37 = vadd.f32 %v469_v21, %v414_v35 }
 0x125   :  { %vm486_vm12 = vcmp.gt.f32.partialorder %v470_v37, 0.0  ;;  %v499_v13 = vmul.f32 0.01, %v470_v37 }
 0x126   :  { %v360_v39 = vpop.f32.mrf.mxu2  ;;  %v472_v42 = vpop.f32.mrf.mxu0 }
 0x127   :  { %v512_v25 = vsel %vm486_vm12, %v470_v37, %v499_v13  ;;  %v361_v40 = vadd.f32 %v360_v39, %v305_v38 }
 0x128   :  { %525 = vst [vmem:[%s1124_s3 + $0x58] sm:$0xff] %v512_v25  ;;  %v416_v41 = vpop.f32.mrf.mxu3 }
 0x129   :  { %v417_v43 = vadd.f32 %v416_v41, %v361_v40 }
 0x12b   :  { %v473_v44 = vadd.f32 %v472_v42, %v417_v43 }
 0x12d   :  { %vm487_vm13 = vcmp.gt.f32.partialorder %v473_v44, 0.0  ;;  %v500_v45 = vmul.f32 0.01, %v473_v44 }
 0x12f   :  { %v513_v46 = vsel %vm487_vm13, %v473_v44, %v500_v45 }
 0x130   :  { %526 = vst [vmem:[%s1124_s3 + $0x60] sm:$0x3] %v513_v46 }

// kernel: cae_forward.13
= control target key start
LH: loop header
LB: loop body
LE: loop exit
PB: predicated region body
PF: predicated region fallthrough
CT: control target
= control target key end

     0   :  { %vm179_vm0 = vcmask 261120   ;;  %vm579_vm1 = vcmask 1043456   ;;  %vm585_vm2 = vcmask 64516   ;;  %s1206_s1 = inlined_call_operand.vmem [shape: f32[392,288], index: 1, kind: input, shape index: {}]   ;;  %s1207_s0 = inlined_call_operand.vmem [shape: f32[4,288], index: 0, kind: input, shape index: {}]   ;;  %s1208_s2 = inlined_call_operand.vmem [shape: f32[4,1], index: 2, kind: input, shape index: {}]   ;;  %s1209_s3 = inlined_call_operand.vmem [shape: f32[4,392], index: 3, kind: output, shape index: {}]  }
   0x1   :  { %v61_v0 = vld [vmem:[%s1206_s1 + $0x168] sm:$0xff]  ;;  %v62_v1 = vld [vmem:[%s1206_s1 + $0x170] sm:$0xff]  ;;  %v59_v3 = vld [vmem:[%s1206_s1 + $0x158] sm:$0xff] }
   0x2   :  { %329 = vmatpush.xpose.msra.mxu0 %v61_v0  ;;  %349 = vmatpush.xpose.msra.mxu1 %v62_v1  ;;  %v58_v2 = vld [vmem:[%s1206_s1 + $0x150] sm:$0xff]  ;;  %v55_v4 = vld [vmem:[%s1206_s1 + $0x138] sm:$0xff]  ;;  %v56_v5 = vld [vmem:[%s1206_s1 + $0x140] sm:$0xff] }
   0x3   :  { %v63_v6 = vld [vmem:[%s1206_s1 + $0x178] sm:$0xff]  ;;  %v52_v7 = vld [vmem:[%s1206_s1 + $0x120] sm:$0xff]  ;;  %v53_v8 = vld [vmem:[%s1206_s1 + $0x128] sm:$0xff] }
   0x4   :  { %592 = vmatpush.xpose.msk.msra.mxu2 %vm179_vm0, %v63_v6  ;;  %v109_v9 = vld [vmem:[%s1206_s1 + $0x2e8] sm:$0xff]  ;;  %v60_v10 = vld [vmem:[%s1206_s1 + $0x160] sm:$0xff]  ;;  %v50_v12 = vld [vmem:[%s1206_s1 + $0x110] sm:$0xff] }
   0x5   :  { %v49_v11 = vld [vmem:[%s1206_s1 + $0x108] sm:$0xff]  ;;  %389 = vmatpush.xpose.msra.mxu3 %v109_v9  ;;  %v106_v13 = vld [vmem:[%s1206_s1 + $0x2d0] sm:$0xff]  ;;  %v47_v16 = vld [vmem:[%s1206_s1 + $0xf8] sm:$0xff] }
   0x6   :  { %330 = vmatpush.xpose.msra.mxu0 %v58_v2  ;;  %350 = vmatpush.xpose.msra.mxu1 %v59_v3  ;;  %v57_v14 = vld [vmem:[%s1206_s1 + $0x148] sm:$0xff]  ;;  %v46_v15 = vld [vmem:[%s1206_s1 + $0xf0] sm:$0xff]  ;;  %v103_v17 = vld [vmem:[%s1206_s1 + $0x2b8] sm:$0xff] }
   0x7   :  { %v54_v18 = vld [vmem:[%s1206_s1 + $0x130] sm:$0xff]  ;;  %v43_v19 = vld [vmem:[%s1206_s1 + $0xd8] sm:$0xff]  ;;  %v44_v20 = vld [vmem:[%s1206_s1 + $0xe0] sm:$0xff] }
   0x8   :  { %593 = vmatpush.xpose.msk.msra.mxu2 %vm179_vm0, %v60_v10  ;;  %v100_v21 = vld [vmem:[%s1206_s1 + $0x2a0] sm:$0xff]  ;;  %v51_v22 = vld [vmem:[%s1206_s1 + $0x118] sm:$0xff]  ;;  %v41_v24 = vld [vmem:[%s1206_s1 + $0xc8] sm:$0xff] }
   0x9   :  { %390 = vmatpush.xpose.msra.mxu3 %v106_v13  ;;  %v40_v23 = vld [vmem:[%s1206_s1 + $0xc0] sm:$0xff]  ;;  %v97_v25 = vld [vmem:[%s1206_s1 + $0x288] sm:$0xff]  ;;  %v38_v27 = vld [vmem:[%s1206_s1 + $0xb0] sm:$0xff] }
   0xa   :  { %331 = vmatpush.xpose.msra.mxu0 %v55_v4  ;;  %351 = vmatpush.xpose.msra.mxu1 %v56_v5  ;;  %v37_v26 = vld [vmem:[%s1206_s1 + $0xa8] sm:$0xff]  ;;  %v48_v28 = vld [vmem:[%s1206_s1 + $0x100] sm:$0xff]  ;;  %v94_v29 = vld [vmem:[%s1206_s1 + $0x270] sm:$0xff] }
   0xb   :  { %v34_v30 = vld [vmem:[%s1206_s1 + $0x90] sm:$0xff]  ;;  %v35_v31 = vld [vmem:[%s1206_s1 + $0x98] sm:$0xff]  ;;  %v45_v32 = vld [vmem:[%s1206_s1 + $0xe8] sm:$0xff] }
   0xc   :  { %594 = vmatpush.xpose.msk.msra.mxu2 %vm179_vm0, %v57_v14  ;;  %v91_v33 = vld [vmem:[%s1206_s1 + $0x258] sm:$0xff]  ;;  %v32_v35 = vld [vmem:[%s1206_s1 + $0x80] sm:$0xff]  ;;  %v42_v36 = vld [vmem:[%s1206_s1 + $0xd0] sm:$0xff] }
   0xd   :  { %391 = vmatpush.xpose.msra.mxu3 %v103_v17  ;;  %v31_v34 = vld [vmem:[%s1206_s1 + $0x78] sm:$0xff]  ;;  %v88_v37 = vld [vmem:[%s1206_s1 + $0x240] sm:$0xff]  ;;  %v29_v39 = vld [vmem:[%s1206_s1 + $0x68] sm:$0xff] }
   0xe   :  { %332 = vmatpush.xpose.msra.mxu0 %v52_v7  ;;  %352 = vmatpush.xpose.msra.mxu1 %v53_v8  ;;  %v28_v38 = vld [vmem:[%s1206_s1 + $0x60] sm:$0xff]  ;;  %v39_v40 = vld [vmem:[%s1206_s1 + $0xb8] sm:$0xff]  ;;  %v85_v41 = vld [vmem:[%s1206_s1 + $0x228] sm:$0xff] }
   0xf   :  { %v25_v42 = vld [vmem:[%s1206_s1 + $0x48] sm:$0xff]  ;;  %v26_v43 = vld [vmem:[%s1206_s1 + $0x50] sm:$0xff]  ;;  %v36_v44 = vld [vmem:[%s1206_s1 + $0xa0] sm:$0xff] }
  0x10   :  { %595 = vmatpush.xpose.msk.msra.mxu2 %vm179_vm0, %v54_v18  ;;  %v82_v45 = vld [vmem:[%s1206_s1 + $0x210] sm:$0xff]  ;;  %v23_v47 = vld [vmem:[%s1206_s1 + $0x38] sm:$0xff]  ;;  %v33_v48 = vld [vmem:[%s1206_s1 + $0x88] sm:$0xff] }
  0x11   :  { %392 = vmatpush.xpose.msra.mxu3 %v100_v21  ;;  %v22_v46 = vld [vmem:[%s1206_s1 + $0x30] sm:$0xff]  ;;  %v79_v49 = vld [vmem:[%s1206_s1 + $0x1f8] sm:$0xff]  ;;  %v20_v51 = vld [vmem:[%s1206_s1 + $0x20] sm:$0xff] }
  0x12   :  { %333 = vmatpush.xpose.msra.mxu0 %v49_v11  ;;  %353 = vmatpush.xpose.msra.mxu1 %v50_v12  ;;  %v19_v50 = vld [vmem:[%s1206_s1 + $0x18] sm:$0xff]  ;;  %v30_v52 = vld [vmem:[%s1206_s1 + $0x70] sm:$0xff]  ;;  %v76_v53 = vld [vmem:[%s1206_s1 + $0x1e0] sm:$0xff] }
  0x13   :  { %v16_v54 = vld [vmem:[%s1206_s1] sm:$0xff]  ;;  %v17_v55 = vld [vmem:[%s1206_s1 + $0x8] sm:$0xff]  ;;  %v27_v56 = vld [vmem:[%s1206_s1 + $0x58] sm:$0xff] }
  0x14   :  { %596 = vmatpush.xpose.msk.msra.mxu2 %vm179_vm0, %v51_v22  ;;  %v110_v57 = vld [vmem:[%s1206_s1 + $0x2f0] sm:$0xff]  ;;  %v111_v58 = vld [vmem:[%s1206_s1 + $0x2f8] sm:$0xff]  ;;  %v73_v59 = vld [vmem:[%s1206_s1 + $0x1c8] sm:$0xff] }
  0x15   :  { %393 = vmatpush.xpose.msra.mxu3 %v97_v25  ;;  %v24_v60 = vld [vmem:[%s1206_s1 + $0x40] sm:$0xff]  ;;  %v107_v61 = vld [vmem:[%s1206_s1 + $0x2d8] sm:$0xff]  ;;  %v70_v63 = vld [vmem:[%s1206_s1 + $0x1b0] sm:$0xff] }
  0x16   :  { %334 = vmatpush.xpose.msra.mxu0 %v46_v15  ;;  %354 = vmatpush.xpose.msra.mxu1 %v47_v16  ;;  %v108_v62 = vld [vmem:[%s1206_s1 + $0x2e0] sm:$0xff]  ;;  %v21_v0 = vld [vmem:[%s1206_s1 + $0x28] sm:$0xff]  ;;  %v67_v3 = vld [vmem:[%s1206_s1 + $0x198] sm:$0xff] }
  0x17   :  { %v104_v1 = vld [vmem:[%s1206_s1 + $0x2c0] sm:$0xff]  ;;  %v105_v2 = vld [vmem:[%s1206_s1 + $0x2c8] sm:$0xff]  ;;  %v18_v4 = vld [vmem:[%s1206_s1 + $0x10] sm:$0xff] }
  0x18   :  { %597 = vmatpush.xpose.msk.msra.mxu2 %vm179_vm0, %v48_v28  ;;  %v157_v5 = vld [vmem:[%s1206_s1 + $0x468] sm:$0xff]  ;;  %v102_v7 = vld [vmem:[%s1206_s1 + $0x2b0] sm:$0xff]  ;;  %v64_v8 = vld [vmem:[%s1206_s1 + $0x180] sm:$0xff] }
  0x19   :  { %394 = vmatpush.xpose.msra.mxu3 %v94_v29  ;;  %v101_v6 = vld [vmem:[%s1206_s1 + $0x2a8] sm:$0xff]  ;;  %v158_v9 = vld [vmem:[%s1206_s1 + $0x470] sm:$0xff]  ;;  %v99_v12 = vld [vmem:[%s1206_s1 + $0x298] sm:$0xff] }
  0x1a   :  { %335 = vmatpush.xpose.msra.mxu0 %v43_v19  ;;  %355 = vmatpush.xpose.msra.mxu1 %v44_v20  ;;  %v154_v10 = vld [vmem:[%s1206_s1 + $0x450] sm:$0xff]  ;;  %v14_v13 = vld [vmem:[%s1207_s0] sm:$0xff]  ;;  %v155_v14 = vld [vmem:[%s1206_s1 + $0x458] sm:$0xff] }
  0x1b   :  { %v98_v11 = vld [vmem:[%s1206_s1 + $0x290] sm:$0xff]  ;;  %171 = vst [vmem:[#allocation1] ss:$2 sm:$0xff] %v14_v13  ;;  %v151_v15 = vld [vmem:[%s1206_s1 + $0x438] sm:$0xff]  ;;  %v96_v17 = vld [vmem:[%s1206_s1 + $0x280] sm:$0xff] }
  0x1c   :  { %598 = vmatpush.xpose.msk.msra.mxu2 %vm179_vm0, %v45_v32  ;;  %v95_v16 = vld [vmem:[%s1206_s1 + $0x278] sm:$0xff]  ;;  %v15_v18 = vld [vmem:[%s1207_s0 + $0x8] sm:$0xf]  ;;  %v152_v19 = vld [vmem:[%s1206_s1 + $0x440] sm:$0xff] }
  0x1d   :  { %395 = vmatpush.xpose.msra.mxu3 %v91_v33  ;;  %173 = vst [vmem:[#allocation1 + $0x10] ss:$2 sm:$0xff] %v15_v18  ;;  %v148_v20 = vld [vmem:[%s1206_s1 + $0x420] sm:$0xff]  ;;  %v93_v22 = vld [vmem:[%s1206_s1 + $0x268] sm:$0xff]  ;;  %v87_v32 = vld [vmem:[%s1206_s1 + $0x238] sm:$0xff] }
  0x1e   :  { %336 = vmatpush.xpose.msra.mxu0 %v40_v23  ;;  %356 = vmatpush.xpose.msra.mxu1 %v41_v24  ;;  %v92_v21 = vld [vmem:[%s1206_s1 + $0x260] sm:$0xff]  ;;  %v149_v25 = vld [vmem:[%s1206_s1 + $0x428] sm:$0xff]  ;;  %v142_v33 = vld [vmem:[%s1206_s1 + $0x3f0] sm:$0xff] }
  0x1f   :  { %v145_v28 = vld [vmem:[%s1206_s1 + $0x408] sm:$0xff]  ;;  %v147_v13 = vld [vmem:[%s1206_s1 + $0x418] sm:$0xff]  ;;  %vm586_vm3 = vmor %vm585_vm2, %vm579_vm1 }
  0x20   :  { %599 = vmatpush.xpose.msk.msra.mxu2 %vm179_vm0, %v42_v36  ;;  %v84_v36 = vld [vmem:[%s1206_s1 + $0x220] sm:$0xff]  ;;  %v135_v18 = vld [vmem:[%s1206_s1 + $0x3b8] sm:$0xff] }
  0x21   :  { %396 = vmatpush.xpose.msra.mxu3 %v88_v37  ;;  %v139_v37 = vld [vmem:[%s1206_s1 + $0x3d8] sm:$0xff] }
  0x22   :  { %337 = vmatpush.xpose.msra.mxu0 %v37_v26  ;;  %357 = vmatpush.xpose.msra.mxu1 %v38_v27  ;;  %v959_v23 = vld.sshfl [vmem:[#allocation1] sm:$0xff pattern:$0x75316420]  ;;  %v964_v24 = vld.sshfl [vmem:[#allocation1 + $0x8] sm:$0xff pattern:$0x75316420] }
  0x23   :  { %v89_v26 = vld [vmem:[%s1206_s1 + $0x248] sm:$0xff]  ;;  %v90_v27 = vld [vmem:[%s1206_s1 + $0x250] sm:$0xff] }
  0x24   :  { %600 = vmatpush.xpose.msk.msra.mxu2 %vm179_vm0, %v39_v40  ;;  %v979_v29 = vld.sshfl [vmem:[#allocation1 + $0x10] sm:$0xff pattern:$0x75316420]  ;;  %v81_v40 = vld [vmem:[%s1206_s1 + $0x208] sm:$0xff] }
  0x25   :  { %397 = vmatpush.xpose.msra.mxu3 %v85_v41  ;;  %v136_v41 = vld [vmem:[%s1206_s1 + $0x3c0] sm:$0xff] }
  0x26   :  { %338 = vmatpush.xpose.msra.mxu0 %v34_v30  ;;  %358 = vmatpush.xpose.msra.mxu1 %v35_v31  ;;  %v146_v30 = vld [vmem:[%s1206_s1 + $0x410] sm:$0xff] }
  0x27   :  { %v86_v31 = vld [vmem:[%s1206_s1 + $0x230] sm:$0xff] }
  0x28   :  { %601 = vmatpush.xpose.msk.msra.mxu2 %vm179_vm0, %v36_v44  ;;  %v137_v44 = vld [vmem:[%s1206_s1 + $0x3c8] sm:$0xff] }
  0x29   :  { %398 = vmatpush.xpose.msra.mxu3 %v82_v45  ;;  %v77_v45 = vld [vmem:[%s1206_s1 + $0x1e8] sm:$0xff] }
  0x2a   :  { %339 = vmatpush.xpose.msra.mxu0 %v31_v34  ;;  %359 = vmatpush.xpose.msra.mxu1 %v32_v35  ;;  %v143_v34 = vld [vmem:[%s1206_s1 + $0x3f8] sm:$0xff] }
  0x2b   :  { %v83_v35 = vld [vmem:[%s1206_s1 + $0x218] sm:$0xff] }
  0x2c   :  { %602 = vmatpush.xpose.msk.msra.mxu2 %vm179_vm0, %v33_v48  ;;  %v134_v48 = vld [vmem:[%s1206_s1 + $0x3b0] sm:$0xff] }
  0x2d   :  { %399 = vmatpush.xpose.msra.mxu3 %v79_v49  ;;  %v74_v49 = vld [vmem:[%s1206_s1 + $0x1d0] sm:$0xff] }
  0x2e   :  { %340 = vmatpush.xpose.msra.mxu0 %v28_v38  ;;  %360 = vmatpush.xpose.msra.mxu1 %v29_v39  ;;  %v140_v38 = vld [vmem:[%s1206_s1 + $0x3e0] sm:$0xff] }
  0x2f   :  { %v80_v39 = vld [vmem:[%s1206_s1 + $0x200] sm:$0xff] }
  0x30   :  { %603 = vmatpush.xpose.msk.msra.mxu2 %vm179_vm0, %v30_v52  ;;  %v131_v52 = vld [vmem:[%s1206_s1 + $0x398] sm:$0xff] }
  0x31   :  { %400 = vmatpush.xpose.msra.mxu3 %v76_v53  ;;  %v71_v53 = vld [vmem:[%s1206_s1 + $0x1b8] sm:$0xff] }
  0x32   :  { %341 = vmatpush.xpose.msra.mxu0 %v25_v42  ;;  %361 = vmatpush.xpose.msra.mxu1 %v26_v43  ;;  %v163_v42 = vld [vmem:[%s1208_s2] sm:$0xf]  ;;  %v655_v43 = vmov 0  }
  0x33   :  { %646 = vset.pattern.permute.xlu0 %v655_v43 }
  0x34   :  { %604 = vmatpush.xpose.msk.msra.mxu2 %vm179_vm0, %v27_v56  ;;  %166 = vperm.xlu0 %646, %v163_v42   ;;  %v128_v56 = vld [vmem:[%s1206_s1 + $0x380] sm:$0xff] }
  0x35   :  { %401 = vmatpush.xpose.msra.mxu3 %v73_v59  ;;  %v124_v59 = vld [vmem:[%s1206_s1 + $0x360] sm:$0xff] }
  0x36   :  { %342 = vmatpush.xpose.msra.mxu0 %v22_v46  ;;  %362 = vmatpush.xpose.msra.mxu1 %v23_v47  ;;  %v78_v46 = vld [vmem:[%s1206_s1 + $0x1f0] sm:$0xff]  ;;  %v133_v47 = vld [vmem:[%s1206_s1 + $0x3a8] sm:$0xff] }
  0x38   :  { %605 = vmatpush.xpose.msk.msra.mxu2 %vm179_vm0, %v24_v60  ;;  %v125_v60 = vld [vmem:[%s1206_s1 + $0x368] sm:$0xff] }
  0x39   :  { %402 = vmatpush.xpose.msra.mxu3 %v70_v63  ;;  %v121_v63 = vld [vmem:[%s1206_s1 + $0x348] sm:$0xff] }
  0x3a   :  { %343 = vmatpush.xpose.msra.mxu0 %v19_v50  ;;  %363 = vmatpush.xpose.msra.mxu1 %v20_v51  ;;  %v75_v50 = vld [vmem:[%s1206_s1 + $0x1d8] sm:$0xff]  ;;  %v130_v51 = vld [vmem:[%s1206_s1 + $0x390] sm:$0xff] }
  0x3c   :  { %606 = vmatpush.xpose.msk.msra.mxu2 %vm179_vm0, %v21_v0  ;;  %v159_v0 = vld [vmem:[%s1206_s1 + $0x478] sm:$0xff] }
  0x3d   :  { %403 = vmatpush.xpose.msra.mxu3 %v67_v3  ;;  %v156_v3 = vld [vmem:[%s1206_s1 + $0x460] sm:$0xff] }
  0x3e   :  { %344 = vmatpush.xpose.msra.mxu0 %v16_v54  ;;  %364 = vmatpush.xpose.msra.mxu1 %v17_v55  ;;  %v72_v54 = vld [vmem:[%s1206_s1 + $0x1c0] sm:$0xff]  ;;  %v127_v55 = vld [vmem:[%s1206_s1 + $0x378] sm:$0xff] }
  0x40   :  { %607 = vmatpush.xpose.msk.msra.mxu2 %vm179_vm0, %v18_v4  ;;  %v119_v4 = vld [vmem:[%s1206_s1 + $0x338] sm:$0xff] }
  0x41   :  { %404 = vmatpush.xpose.msra.mxu3 %v64_v8  ;;  %345 = vmatmul.f32.vlgmr.msra.gmra.mxu0 %v959_v23  ;;  %v112_v8 = vld [vmem:[%s1206_s1 + $0x300] sm:$0xff] }
  0x42   :  { %409 = vmatpush.xpose.msrb.mxu0 %v110_v57  ;;  %609 = vmatpush.xpose.msk.msrb.mxu1 %vm179_vm0, %v111_v58  ;;  %v68_v57 = vld [vmem:[%s1206_s1 + $0x1a0] sm:$0xff]  ;;  %v69_v58 = vld [vmem:[%s1206_s1 + $0x1a8] sm:$0xff] }
  0x43   :  { %365 = vmatmul.f32.vlgmr.msra.gmra.mxu1 %v964_v24  ;;  %608 = vmatmul.msk.f32.vlgmr.msra.gmra.mxu2 %vm179_vm0, %v979_v29 }
  0x44   :  { %449 = vmatpush.xpose.msrb.mxu2 %v157_v5  ;;  %405 = vmatmul.f32.vlgmr.msra.gmra.mxu3 %v959_v23  ;;  %v115_v5 = vld [vmem:[%s1206_s1 + $0x318] sm:$0xff] }
  0x45   :  { %469 = vmatpush.xpose.msrb.mxu3 %v158_v9  ;;  %v150_v9 = vld [vmem:[%s1206_s1 + $0x430] sm:$0xff] }
  0x46   :  { %410 = vmatpush.xpose.msrb.mxu0 %v107_v61  ;;  %610 = vmatpush.xpose.msk.msrb.mxu1 %vm179_vm0, %v108_v62  ;;  %v65_v61 = vld [vmem:[%s1206_s1 + $0x188] sm:$0xff]  ;;  %v66_v62 = vld [vmem:[%s1206_s1 + $0x190] sm:$0xff] }
  0x48   :  { %450 = vmatpush.xpose.msrb.mxu2 %v154_v10  ;;  %v113_v10 = vld [vmem:[%s1206_s1 + $0x308] sm:$0xff] }
  0x49   :  { %470 = vmatpush.xpose.msrb.mxu3 %v155_v14  ;;  %v160_v14 = vld [vmem:[%s1206_s1 + $0x480] sm:$0xff] }
  0x4a   :  { %411 = vmatpush.xpose.msrb.mxu0 %v104_v1  ;;  %611 = vmatpush.xpose.msk.msrb.mxu1 %vm179_vm0, %v105_v2  ;;  %v122_v1 = vld [vmem:[%s1206_s1 + $0x350] sm:$0xff] }
  0x4b   :  { %v118_v2 = vld [vmem:[%s1206_s1 + $0x330] sm:$0xff] }
  0x4c   :  { %451 = vmatpush.xpose.msrb.mxu2 %v151_v15  ;;  %v144_v15 = vld [vmem:[%s1206_s1 + $0x400] sm:$0xff] }
  0x4d   :  { %471 = vmatpush.xpose.msrb.mxu3 %v152_v19  ;;  %v132_v19 = vld [vmem:[%s1206_s1 + $0x3a0] sm:$0xff] }
  0x4e   :  { %412 = vmatpush.xpose.msrb.mxu0 %v101_v6  ;;  %612 = vmatpush.xpose.msk.msrb.mxu1 %vm179_vm0, %v102_v7  ;;  %v153_v6 = vld [vmem:[%s1206_s1 + $0x448] sm:$0xff]  ;;  %v116_v7 = vld [vmem:[%s1206_s1 + $0x320] sm:$0xff] }
  0x50   :  { %452 = vmatpush.xpose.msrb.mxu2 %v148_v20  ;;  %v129_v20 = vld [vmem:[%s1206_s1 + $0x388] sm:$0xff] }
  0x51   :  { %472 = vmatpush.xpose.msrb.mxu3 %v149_v25  ;;  %v114_v25 = vld [vmem:[%s1206_s1 + $0x310] sm:$0xff] }
  0x52   :  { %413 = vmatpush.xpose.msrb.mxu0 %v98_v11  ;;  %613 = vmatpush.xpose.msk.msrb.mxu1 %vm179_vm0, %v99_v12  ;;  %v161_v11 = vld [vmem:[%s1206_s1 + $0x488] sm:$0xff]  ;;  %v162_v12 = vld [vmem:[%s1206_s1 + $0x490] sm:$0xff] }
  0x54   :  { %453 = vmatpush.xpose.msrb.mxu2 %v145_v28 }
  0x55   :  { %473 = vmatpush.xpose.msrb.mxu3 %v146_v30 }
  0x56   :  { %414 = vmatpush.xpose.msrb.mxu0 %v95_v16  ;;  %614 = vmatpush.xpose.msk.msrb.mxu1 %vm179_vm0, %v96_v17  ;;  %v141_v16 = vld [vmem:[%s1206_s1 + $0x3e8] sm:$0xff]  ;;  %v138_v17 = vld [vmem:[%s1206_s1 + $0x3d0] sm:$0xff] }
  0x58   :  { %454 = vmatpush.xpose.msrb.mxu2 %v142_v33 }
  0x59   :  { %474 = vmatpush.xpose.msrb.mxu3 %v143_v34 }
  0x5a   :  { %415 = vmatpush.xpose.msrb.mxu0 %v92_v21  ;;  %615 = vmatpush.xpose.msk.msrb.mxu1 %vm179_vm0, %v93_v22  ;;  %v126_v21 = vld [vmem:[%s1206_s1 + $0x370] sm:$0xff]  ;;  %v123_v22 = vld [vmem:[%s1206_s1 + $0x358] sm:$0xff] }
  0x5c   :  { %455 = vmatpush.xpose.msrb.mxu2 %v139_v37 }
  0x5d   :  { %475 = vmatpush.xpose.msrb.mxu3 %v140_v38 }
  0x5e   :  { %416 = vmatpush.xpose.msrb.mxu0 %v89_v26  ;;  %616 = vmatpush.xpose.msk.msrb.mxu1 %vm179_vm0, %v90_v27 }
  0x60   :  { %456 = vmatpush.xpose.msrb.mxu2 %v136_v41 }
  0x61   :  { %476 = vmatpush.xpose.msrb.mxu3 %v137_v44 }
  0x62   :  { %417 = vmatpush.xpose.msrb.mxu0 %v86_v31  ;;  %617 = vmatpush.xpose.msk.msrb.mxu1 %vm179_vm0, %v87_v32 }
  0x64   :  { %457 = vmatpush.xpose.msrb.mxu2 %v133_v47 }
  0x65   :  { %477 = vmatpush.xpose.msrb.mxu3 %v134_v48 }
  0x66   :  { %418 = vmatpush.xpose.msrb.mxu0 %v83_v35  ;;  %618 = vmatpush.xpose.msk.msrb.mxu1 %vm179_vm0, %v84_v36 }
  0x68   :  { %458 = vmatpush.xpose.msrb.mxu2 %v130_v51 }
  0x69   :  { %478 = vmatpush.xpose.msrb.mxu3 %v131_v52 }
  0x6a   :  { %419 = vmatpush.xpose.msrb.mxu0 %v80_v39  ;;  %619 = vmatpush.xpose.msk.msrb.mxu1 %vm179_vm0, %v81_v40 }
  0x6c   :  { %459 = vmatpush.xpose.msrb.mxu2 %v127_v55 }
  0x6d   :  { %479 = vmatpush.xpose.msrb.mxu3 %v128_v56 }
  0x6e   :  { %420 = vmatpush.xpose.msrb.mxu0 %v77_v45  ;;  %620 = vmatpush.xpose.msk.msrb.mxu1 %vm179_vm0, %v78_v46 }
  0x70   :  { %460 = vmatpush.xpose.msrb.mxu2 %v124_v59 }
  0x71   :  { %480 = vmatpush.xpose.msrb.mxu3 %v125_v60 }
  0x72   :  { %421 = vmatpush.xpose.msrb.mxu0 %v74_v49  ;;  %621 = vmatpush.xpose.msk.msrb.mxu1 %vm179_vm0, %v75_v50 }
  0x74   :  { %461 = vmatpush.xpose.msrb.mxu2 %v121_v63 }
  0x75   :  { %481 = vmatpush.xpose.msrb.mxu3 %v122_v1 }
  0x76   :  { %422 = vmatpush.xpose.msrb.mxu0 %v71_v53  ;;  %622 = vmatpush.xpose.msk.msrb.mxu1 %vm179_vm0, %v72_v54 }
  0x78   :  { %462 = vmatpush.xpose.msrb.mxu2 %v118_v2 }
  0x79   :  { %482 = vmatpush.xpose.msrb.mxu3 %v119_v4 }
  0x7a   :  { %423 = vmatpush.xpose.msrb.mxu0 %v68_v57  ;;  %623 = vmatpush.xpose.msk.msrb.mxu1 %vm179_vm0, %v69_v58 }
  0x7c   :  { %463 = vmatpush.xpose.msrb.mxu2 %v115_v5 }
  0x7d   :  { %483 = vmatpush.xpose.msrb.mxu3 %v116_v7 }
  0x7e   :  { %424 = vmatpush.xpose.msrb.mxu0 %v65_v61  ;;  %624 = vmatpush.xpose.msk.msrb.mxu1 %vm179_vm0, %v66_v62 }
  0x80   :  { %464 = vmatpush.xpose.msrb.mxu2 %v112_v8 }
  0x81   :  { %425 = vmatmul.f32.vlgmr.msrb.gmra.mxu0 %v964_v24  ;;  %625 = vmatmul.msk.f32.vlgmr.msrb.gmra.mxu1 %vm179_vm0, %v979_v29 }
  0x82   :  { %626 = vmatpush.xpose.msk.msra.mxu0 %vm179_vm0, %v159_v0  ;;  %484 = vmatpush.xpose.msrb.mxu3 %v113_v10 }
  0x83   :  { %465 = vmatmul.f32.vlgmr.msrb.gmra.mxu2 %v959_v23  ;;  %524 = vmatpush.xpose.msra.mxu1 %v160_v14 }
  0x84   :  { %544 = vmatpush.xpose.msra.mxu2 %v161_v11 }
  0x85   :  { %485 = vmatmul.f32.vlgmr.msrb.gmra.mxu3 %v964_v24 }
  0x86   :  { %627 = vmatpush.xpose.msk.msra.mxu0 %vm179_vm0, %v156_v3  ;;  %643 = vmatpush.xpose.msk.msra.mxu3 %vm179_vm0, %v162_v12 }
  0x89   :  { %525 = vmatmul.f32.vlgmr.msra.gmra.mxu1 %v959_v23  ;;  %v120_v23 = vld [vmem:[%s1206_s1 + $0x340] sm:$0xff] }
  0x8a   :  { %628 = vmatpush.xpose.msk.msra.mxu0 %vm179_vm0, %v153_v6 }
  0x8b   :  { %545 = vmatmul.f32.vlgmr.msra.gmra.mxu2 %v964_v24  ;;  %v117_v24 = vld [vmem:[%s1206_s1 + $0x328] sm:$0xff] }
  0x8d   :  { %644 = vmatmul.msk.f32.vlgmr.msra.gmra.mxu3 %vm179_vm0, %v979_v29 }
  0x8e   :  { %629 = vmatpush.xpose.msk.msra.mxu0 %vm179_vm0, %v150_v9 }
  0x92   :  { %630 = vmatpush.xpose.msk.msra.mxu0 %vm179_vm0, %v147_v13 }
  0x96   :  { %631 = vmatpush.xpose.msk.msra.mxu0 %vm179_vm0, %v144_v15 }
  0x9a   :  { %632 = vmatpush.xpose.msk.msra.mxu0 %vm179_vm0, %v141_v16 }
  0x9e   :  { %633 = vmatpush.xpose.msk.msra.mxu0 %vm179_vm0, %v138_v17 }
  0xa2   :  { %634 = vmatpush.xpose.msk.msra.mxu0 %vm179_vm0, %v135_v18 }
  0xa6   :  { %635 = vmatpush.xpose.msk.msra.mxu0 %vm179_vm0, %v132_v19  ;;  %v167_v28 = vpop.permute.xlu0 %166 }
  0xaa   :  { %636 = vmatpush.xpose.msk.msra.mxu0 %vm179_vm0, %v129_v20 }
  0xae   :  { %637 = vmatpush.xpose.msk.msra.mxu0 %vm179_vm0, %v126_v21 }
  0xb2   :  { %638 = vmatpush.xpose.msk.msra.mxu0 %vm179_vm0, %v123_v22 }
  0xb6   :  { %639 = vmatpush.xpose.msk.msra.mxu0 %vm179_vm0, %v120_v23 }
  0xba   :  { %640 = vmatpush.xpose.msk.msra.mxu0 %vm179_vm0, %v117_v24 }
  0xbe   :  { %641 = vmatpush.xpose.msk.msra.mxu0 %vm179_vm0, %v114_v25  ;;  %v346_v26 = vpop.f32.mrf.mxu0 }
  0xbf   :  { %v347_v31 = vadd.f32 %v346_v26, %v167_v28 }
  0xc0   :  { %v366_v27 = vpop.f32.mrf.mxu1 }
  0xc1   :  { %642 = vmatmul.msk.f32.vlgmr.msra.gmra.mxu0 %vm179_vm0, %v979_v29  ;;  %v367_v33 = vadd.f32 %v366_v27, %v347_v31 }
  0xc6   :  { %v386_v34 = vpop.f32.mrf.mxu2 }
  0xc7   :  { %v406_v30 = vpop.f32.mrf.mxu3  ;;  %v387_v38 = vadd.f32 %v386_v34, %v367_v33 }
  0xc8   :  { %v407_v32 = vadd.f32 %v406_v30, %v167_v28 }
  0xfe   :  { %v426_v35 = vpop.f32.mrf.mxu0  ;;  %v446_v36 = vpop.f32.mrf.mxu1 }
  0xff   :  { %v427_v37 = vadd.f32 %v426_v35, %v407_v32 }
 0x101   :  { %v447_v39 = vadd.f32 %v446_v36, %v427_v37 }
 0x103   :  { %647 = vtanh.f32 %v447_v39 }
 0x104   :  { %649 = vtanh.f32 %v387_v38 }
 0x106   :  { %v466_v43 = vpop.f32.mrf.mxu2  ;;  %v526_v45 = vpop.f32.mrf.mxu1 }
 0x107   :  { %v527_v46 = vadd.f32 %v526_v45, %v167_v28  ;;  %v467_v51 = vadd.f32 %v466_v43, %v167_v28 }
 0x108   :  { %v486_v44 = vpop.f32.mrf.mxu3 }
 0x109   :  { %v648_v40 = vpop.eup %647  ;;  %v487_v52 = vadd.f32 %v486_v44, %v467_v51 }
 0x10a   :  { %v577_v41 = vrot.slane %v648_v40, 4  ;;  %v650_v42 = vpop.eup %649 }
 0x10c   :  { %v580_v29 = vsel %vm579_vm1, %v650_v42, %v577_v41 }
 0x10d   :  { %584 = vst [vmem:[%s1209_s3] sm:$0xff] %v580_v29 }
 0x10e   :  { %v546_v47 = vpop.f32.mrf.mxu2 }
 0x10f   :  { %v547_v48 = vadd.f32 %v546_v47, %v527_v46 }
 0x110   :  { %v566_v49 = vpop.f32.mrf.mxu3 }
 0x111   :  { %v567_v50 = vadd.f32 %v566_v49, %v547_v48 }
 0x113   :  { %651 = vtanh.f32 %v567_v50 }
 0x119   :  { %v652_v55 = vpop.eup %651 }
 0x11a   :  { %v578_v56 = vrot.slane %v652_v55, 4 }
 0x13e   :  { %v506_v53 = vpop.f32.mrf.mxu0 }
 0x13f   :  { %v507_v54 = vadd.f32 %v506_v53, %v487_v52 }
 0x141   :  { %653 = vtanh.f32 %v507_v54 }
 0x147   :  { %v654_v57 = vpop.eup %653 }
 0x148   :  { %v581_v58 = vsel %vm579_vm1, %v654_v57, %v578_v56 }
 0x149   :  { %587 = vst.msk [vmem:[%s1209_s3 + $0x8] sm:$0xff] %vm586_vm3, %v581_v58 }

</bundles_post_ra>
